<compile_context>
chip_gen: v7x
topology: tpu7x:2x2x1
jax: 0.10.0
libtpu: 0.0.40
codegen_flags: <defaults>
</compile_context>

<pallas_src>
import functools
import math

import jax
import jax.numpy as jnp
from jax import lax
from jax.experimental import pallas as pl
from jax.experimental.pallas import tpu as pltpu


# ---------------------------------------------------------------------------
# In-kernel helpers
# ---------------------------------------------------------------------------

def _layernorm(x, g, b, eps=1e-5):
    xf = x.astype(jnp.float32)
    mu = jnp.mean(xf, axis=-1, keepdims=True)
    var = jnp.mean(jnp.square(xf - mu), axis=-1, keepdims=True)
    return (xf - mu) * lax.rsqrt(var + eps) * g + b


def _mha(q, k, v, n_heads, scale):
    """q:(Sq,D), k/v:(Sk,D) float32.  Heads are contiguous dh-wide column groups.

    Each head is isolated with a lane mask so every matmul stays full-width
    (D contraction / D-wide output) and lane dense — no 16-wide slices, concats
    or transposes ever materialize."""
    sq, d = q.shape
    dh = d // n_heads
    lane = lax.broadcasted_iota(jnp.int32, (1, d), 1)
    attn = jnp.zeros((sq, d), jnp.float32)
    for h in range(n_heads):
        m = (lane >= h * dh) & (lane < (h + 1) * dh)
        qh = jnp.where(m, q, 0.0).astype(jnp.bfloat16)
        kh = jnp.where(m, k, 0.0).astype(jnp.bfloat16)
        vh = jnp.where(m, v, 0.0).astype(jnp.bfloat16)
        s = lax.dot_general(qh, kh, (((1,), (1,)), ((), ())),
                            preferred_element_type=jnp.float32) * scale
        s = s - jnp.max(s, axis=-1, keepdims=True)
        p = jnp.exp(s)
        p = p * pl.reciprocal(jnp.sum(p, axis=-1, keepdims=True), approx=True)
        attn = attn + jnp.dot(p.astype(jnp.bfloat16), vh,
                              preferred_element_type=jnp.float32)
    return attn


# ---------------------------------------------------------------------------
# Fused Pallas kernels (one grid step == one batch element)
# ---------------------------------------------------------------------------

def _embed_kernel(patch_ref, pe_ref, w1_ref, b1_ref, g0_ref, be0_ref,
                  w2_ref, b2_ref, g1_ref, be1_ref, o_ref):
    # patch-linear (== Conv2d k=stride=p) + positional embedding + LN + embed linear + LN
    pt = patch_ref[0].astype(jnp.bfloat16)                         # (S, C*p*p)
    t = jnp.dot(pt, w1_ref[...], preferred_element_type=jnp.float32) + b1_ref[...]
    t = t + pe_ref[...]
    t = _layernorm(t, g0_ref[...], be0_ref[...])
    t = jnp.dot(t.astype(jnp.bfloat16), w2_ref[...],
                preferred_element_type=jnp.float32) + b2_ref[...]
    t = _layernorm(t, g1_ref[...], be1_ref[...])
    o_ref[0] = t.astype(o_ref.dtype)


def _decoder_block_kernel(x_ref, c_ref,
                          n1g_ref, n1b_ref, saq_ref, sak_ref, sav_ref,
                          n2g_ref, n2b_ref, caq_ref, cak_ref, cav_ref,
                          n3g_ref, n3b_ref, c1w_ref, c1b_ref,
                          dww_ref, dwb_ref, c2w_ref, c2b_ref,
                          o_ref, pad_ref, *, n_heads, scale, hp, wp):
    """Fully fused decoder block:
       LN + self-attn + residual | LN + cross-attn (cond K/V) + residual |
       LN + 1x1 conv + depthwise 3x3 + GELU + 1x1 conv + residual.
       Activations stay in VMEM for the whole block."""
    x = x_ref[0].astype(jnp.float32)                               # (S, D)
    cond = c_ref[0].astype(jnp.bfloat16)                           # (Sc, D)

    # ---- self-attention ----
    xn = _layernorm(x, n1g_ref[...], n1b_ref[...]).astype(jnp.bfloat16)
    q = jnp.dot(xn, saq_ref[...], preferred_element_type=jnp.float32)
    k = jnp.dot(xn, sak_ref[...], preferred_element_type=jnp.float32)
    v = jnp.dot(xn, sav_ref[...], preferred_element_type=jnp.float32)
    x = x + _mha(q, k, v, n_heads, scale)

    # ---- cross-attention (cond provides K/V) ----
    xn = _layernorm(x, n2g_ref[...], n2b_ref[...]).astype(jnp.bfloat16)
    q = jnp.dot(xn, caq_ref[...], preferred_element_type=jnp.float32)
    k = jnp.dot(cond, cak_ref[...], preferred_element_type=jnp.float32)
    v = jnp.dot(cond, cav_ref[...], preferred_element_type=jnp.float32)
    x = x + _mha(q, k, v, n_heads, scale)

    # ---- SepConv MLP: LN -> 1x1 conv -> depthwise 3x3 -> GELU -> 1x1 conv ----
    col0 = 8                   # sublane-aligned column offset of the image in the halo scratch
    hidden = c1w_ref.shape[1]
    xn = _layernorm(x, n3g_ref[...], n3b_ref[...]).astype(jnp.bfloat16)
    h1 = jnp.dot(xn, c1w_ref[...], preferred_element_type=jnp.float32) + c1b_ref[...]
    img = h1.reshape(hp, wp, hidden)

    # zero halo entirely in VMEM (no HBM pad round-trip); interior store is tile aligned.
    pad_ref[...] = jnp.zeros_like(pad_ref)
    pad_ref[1:hp + 1, col0:col0 + wp, :] = img
    xp = pad_ref[...]

    acc = jnp.zeros((hp, wp, hidden), jnp.float32) + dwb_ref[...]
    for dy in range(3):
        for dx in range(3):
            tap = xp[dy:dy + hp, col0 - 1 + dx:col0 - 1 + dx + wp, :]
            acc = acc + tap * dww_ref[dy * 3 + dx, :]

    # TODO(synk): PyTorch nn.GELU default is erf-exact; using tanh-approx GELU in-kernel.
    h2 = jax.nn.gelu(acc, approximate=True).reshape(hp * wp, hidden)
    h3 = jnp.dot(h2.astype(jnp.bfloat16), c2w_ref[...],
                 preferred_element_type=jnp.float32) + c2b_ref[...]
    o_ref[0] = (x + h3).astype(o_ref.dtype)


def _out_proj_kernel(x_ref, g_ref, w_ref, b_ref, o_ref, *, scale):
    # RMSNorm (l2norm * gamma * sqrt(D), F.normalize eps semantics) + output linear
    x = x_ref[0].astype(jnp.float32)
    nrm = jnp.sqrt(jnp.sum(x * x, axis=-1, keepdims=True))
    y = x / jnp.maximum(nrm, 1e-12) * g_ref[...] * scale
    o_ref[0] = (jnp.dot(y.astype(jnp.bfloat16), w_ref[...],
                        preferred_element_type=jnp.float32)
                + b_ref[...]).astype(o_ref.dtype)


# ---------------------------------------------------------------------------
# pallas_call wrappers
# ---------------------------------------------------------------------------

def _full_spec(shape):
    n = len(shape)
    return pl.BlockSpec(shape, lambda *_: (0,) * n)


def _batch_spec(shape):
    n = len(shape)
    return pl.BlockSpec((1,) + shape, lambda i: (i,) + (0,) * n)


_PARAMS = pltpu.CompilerParams(dimension_semantics=("parallel",))


def patchify_embed(patches, pos_emb, p_w, p_b, g0, b0, e_w, e_b, g1, b1):
    B, S, PD = patches.shape
    PDo = p_w.shape[1]
    D = e_w.shape[1]
    return pl.pallas_call(
        _embed_kernel,
        out_shape=jax.ShapeDtypeStruct((B, S, D), jnp.float32),
        grid=(B,),
        in_specs=[
            _batch_spec((S, PD)),
            _full_spec((S, PDo)),
            _full_spec((PD, PDo)), _full_spec((1, PDo)),
            _full_spec((1, PDo)), _full_spec((1, PDo)),
            _full_spec((PDo, D)), _full_spec((1, D)),
            _full_spec((1, D)), _full_spec((1, D)),
        ],
        out_specs=_batch_spec((S, D)),
        compiler_params=_PARAMS,
    )(patches, pos_emb, p_w, p_b.reshape(1, PDo), g0.reshape(1, PDo),
      b0.reshape(1, PDo), e_w, e_b.reshape(1, D), g1.reshape(1, D),
      b1.reshape(1, D))


def decoder_block(x, cond, hw, prm, n_heads):
    # TODO(synk): DecoderBlock class body not provided; tld structure assumed
    # (pre-LN self-attn, pre-LN cross-attn with cond as K/V, bias-free projections,
    # no attention out-projection, SepConv MLP).
    B, S, D = x.shape
    Sc = cond.shape[1]
    hp, wp = hw
    hidden = prm['c1_w'].shape[1]
    kern = functools.partial(_decoder_block_kernel, n_heads=n_heads,
                             scale=1.0 / math.sqrt(D // n_heads), hp=hp, wp=wp)
    return pl.pallas_call(
        kern,
        out_shape=jax.ShapeDtypeStruct((B, S, D), jnp.float32),
        grid=(B,),
        in_specs=[
            _batch_spec((S, D)),
            _batch_spec((Sc, D)),
            _full_spec((1, D)), _full_spec((1, D)),
            _full_spec((D, D)), _full_spec((D, D)), _full_spec((D, D)),
            _full_spec((1, D)), _full_spec((1, D)),
            _full_spec((D, D)), _full_spec((D, D)), _full_spec((D, D)),
            _full_spec((1, D)), _full_spec((1, D)),
            _full_spec((D, hidden)), _full_spec((1, hidden)),
            _full_spec((9, hidden)), _full_spec((1, hidden)),
            _full_spec((hidden, D)), _full_spec((1, D)),
        ],
        out_specs=_batch_spec((S, D)),
        scratch_shapes=[pltpu.VMEM((hp + 2, wp + 16, hidden), jnp.float32)],
        compiler_params=_PARAMS,
    )(x, cond,
      prm['n1_g'].reshape(1, D), prm['n1_b'].reshape(1, D),
      prm['sa_wq'], prm['sa_wk'], prm['sa_wv'],
      prm['n2_g'].reshape(1, D), prm['n2_b'].reshape(1, D),
      prm['ca_wq'], prm['ca_wk'], prm['ca_wv'],
      prm['n3_g'].reshape(1, D), prm['n3_b'].reshape(1, D),
      prm['c1_w'], prm['c1_b'].reshape(1, hidden),
      prm['dw_w'].reshape(9, hidden), prm['dw_b'].reshape(1, hidden),
      prm['c2_w'], prm['c2_b'].reshape(1, D))


def out_proj(x, g, w, b):
    B, S, D = x.shape
    PD = w.shape[1]
    kern = functools.partial(_out_proj_kernel, scale=float(D) ** 0.5)
    return pl.pallas_call(
        kern,
        out_shape=jax.ShapeDtypeStruct((B, S, PD), jnp.float32),
        grid=(B,),
        in_specs=[
            _batch_spec((S, D)),
            _full_spec((1, D)), _full_spec((D, PD)), _full_spec((1, PD)),
        ],
        out_specs=_batch_spec((S, PD)),
        compiler_params=_PARAMS,
    )(x, g.reshape(1, D), w, b.reshape(1, PD))


# ---------------------------------------------------------------------------
# Model glue (reshapes / param plumbing in plain JAX)
# ---------------------------------------------------------------------------

def sinusoidal_pos_embed(seq_len, dim):
    # TODO(synk): PositionalEmbedding class was not provided; using a fixed sinusoidal
    # embedding, precomputed once and stored in params.
    pos = jnp.arange(seq_len, dtype=jnp.float32)[:, None]
    i = jnp.arange(dim // 2, dtype=jnp.float32)[None, :]
    ang = pos / jnp.power(10000.0, 2.0 * i / dim)
    return jnp.concatenate([jnp.sin(ang), jnp.cos(ang)], axis=-1)   # (seq_len, dim)


def denoiser_forward(params, x, cond, cfg):
    p = cfg['patch_size']
    n_heads = cfg['n_heads']
    B, C, h, w = x.shape

    # zero-pad spatial dims up to a multiple of patch_size (nn.ZeroPad2d)
    H = math.ceil(h / p) * p
    W = math.ceil(w / p) * p
    x = jnp.pad(x, ((0, 0), (0, 0), (0, H - h), (0, W - w)))
    Hp, Wp = H // p, W // p
    S = Hp * Wp

    # patchify: Conv2d(k=stride=p) == extract (c, dy, dx)-flattened patches + linear
    patches = (x.reshape(B, C, Hp, p, Wp, p)
                 .transpose(0, 2, 4, 1, 3, 5)
                 .reshape(B, S, C * p * p))

    t = patchify_embed(patches, params['pos_embed'][:S],
                       params['patch_w'], params['patch_b'],
                       params['ln0_g'], params['ln0_b'],
                       params['embed_w'], params['embed_b'],
                       params['ln1_g'], params['ln1_b'])

    for blk in params['blocks']:
        t = decoder_block(t, cond, (Hp, Wp), blk, n_heads)

    t = out_proj(t, params['out_g'], params['out_w'], params['out_b'])

    # unpatchify: 'b (h w) (c p1 p2) -> b c (h p1) (w p2)', crop padding
    out = (t.reshape(B, Hp, Wp, C, p, p)
             .transpose(0, 3, 1, 4, 2, 5)
             .reshape(B, C, H, W))
    return out[:, :, :h, :w]


def init_params(key, cfg):
    p, C, D = cfg['patch_size'], cfg['n_channels'], cfg['embed_dim']
    patch_dim = C * p * p
    hidden = cfg['mlp_multiplier'] * D
    seq_len = (cfg['img_size'] // p) ** 2
    keys = iter(jax.random.split(key, 64))

    def w_(shape, dtype=jnp.bfloat16):
        # matmul weights stored in bf16 (f32 accumulation in-kernel)
        return (0.02 * jax.random.normal(next(keys), shape, jnp.float32)).astype(dtype)

    params = {
        'patch_w': w_((C * p * p, patch_dim)),
        'patch_b': jnp.zeros((patch_dim,), jnp.float32),
        'pos_embed': sinusoidal_pos_embed(seq_len, patch_dim),
        'ln0_g': jnp.ones((patch_dim,), jnp.float32), 'ln0_b': jnp.zeros((patch_dim,), jnp.float32),
        'embed_w': w_((patch_dim, D)), 'embed_b': jnp.zeros((D,), jnp.float32),
        'ln1_g': jnp.ones((D,), jnp.float32), 'ln1_b': jnp.zeros((D,), jnp.float32),
        'blocks': [],
        'out_g': jnp.ones((D,), jnp.float32),                       # RMSNorm gamma
        'out_w': w_((D, patch_dim)), 'out_b': jnp.zeros((patch_dim,), jnp.float32),
    }
    for _ in range(cfg['n_layers']):
        params['blocks'].append({
            'n1_g': jnp.ones((D,), jnp.float32), 'n1_b': jnp.zeros((D,), jnp.float32),
            'n2_g': jnp.ones((D,), jnp.float32), 'n2_b': jnp.zeros((D,), jnp.float32),
            'n3_g': jnp.ones((D,), jnp.float32), 'n3_b': jnp.zeros((D,), jnp.float32),
            # bias-free attention projections (qkv / q / kv split into separate mats)
            'sa_wq': w_((D, D)), 'sa_wk': w_((D, D)), 'sa_wv': w_((D, D)),
            'ca_wq': w_((D, D)), 'ca_wk': w_((D, D)), 'ca_wv': w_((D, D)),
            'c1_w': w_((D, hidden)), 'c1_b': jnp.zeros((hidden,), jnp.float32),
            'dw_w': 0.02 * jax.random.normal(next(keys), (3, 3, hidden), jnp.float32),
            'dw_b': jnp.zeros((hidden,), jnp.float32),
            'c2_w': w_((hidden, D)), 'c2_b': jnp.zeros((D,), jnp.float32),
        })
    return params


if __name__ == "__main__":
    cfg = dict(patch_size=2, img_size=16, embed_dim=64, n_layers=2,
               mlp_multiplier=2, n_channels=4, n_heads=4)   # n_heads: DecoderBlock not provided; fixed choice
    key = jax.random.PRNGKey(0)
    kp, kx, kc = jax.random.split(key, 3)
    params = init_params(kp, cfg)

    x = jax.random.normal(kx, (2, cfg['n_channels'], cfg['img_size'], cfg['img_size']), jnp.float32)
    cond = jax.random.normal(kc, (2, 8, cfg['embed_dim']), jnp.float32)

    fwd = jax.jit(lambda prm, xi, ci: denoiser_forward(prm, xi, ci, cfg))
    out = fwd(params, x, cond)
    jax.block_until_ready(out)
    assert out.shape == x.shape and out.dtype == jnp.float32
    print("KERNEL_OK")
</pallas_src>

<mosaic_0001>
module attributes {stable_mosaic.version = 11 : i64} {
  func.func @_out_proj_kernel(%arg0: i32, %arg1: memref<1x64x64xf32, #tpu.memory_space<vmem>>, %arg2: memref<1x64xf32, #tpu.memory_space<vmem>>, %arg3: memref<64x16xbf16, #tpu.memory_space<vmem>>, %arg4: memref<1x16xf32, #tpu.memory_space<vmem>>, %arg5: memref<1x64x16xf32, #tpu.memory_space<vmem>>) attributes {dimension_semantics = [#tpu.dimension_semantics<parallel>], iteration_bounds = array<i64: 2>, scalar_prefetch = 0 : i64, scratch_operands = 0 : i64, tpu.core_type = #tpu.core_type<tc>, window_params = [{transform_indices = @transform_0, window_bounds = array<i64: 1, 64, 64>}, {pipeline_mode = #tpu.pipeline_mode<synchronous>, transform_indices = @transform_1, window_bounds = array<i64: 1, 64>}, {pipeline_mode = #tpu.pipeline_mode<synchronous>, transform_indices = @transform_2, window_bounds = array<i64: 64, 16>}, {pipeline_mode = #tpu.pipeline_mode<synchronous>, transform_indices = @transform_3, window_bounds = array<i64: 1, 16>}, {transform_indices = @transform_4, window_bounds = array<i64: 1, 64, 16>}]} {
    %c0 = arith.constant 0 : index
    %c0_0 = arith.constant 0 : index
    %c0_1 = arith.constant 0 : index
    %0 = vector.load %arg1[%c0, %c0_0, %c0_1] : memref<1x64x64xf32, #tpu.memory_space<vmem>>, vector<1x64x64xf32>
    %1 = vector.shape_cast %0 : vector<1x64x64xf32> to vector<64x64xf32>
    %2 = arith.mulf %1, %1 : vector<64x64xf32>
    %cst = arith.constant dense<0.000000e+00> : vector<64xf32>
    %3 = vector.multi_reduction <add>, %2, %cst [1] : vector<64x64xf32> to vector<64xf32>
    %4 = vector.shape_cast %3 : vector<64xf32> to vector<64x1xf32>
    %5 = math.sqrt %4 : vector<64x1xf32>
    %cst_2 = arith.constant 9.99999996E-13 : f32
    %6 = vector.broadcast %cst_2 : f32 to vector<64x1xf32>
    %7 = arith.maximumf %5, %6 : vector<64x1xf32>
    %8 = vector.broadcast %7 : vector<64x1xf32> to vector<64x64xf32>
    %9 = arith.divf %1, %8 : vector<64x64xf32>
    %c0_3 = arith.constant 0 : index
    %c0_4 = arith.constant 0 : index
    %10 = vector.load %arg2[%c0_3, %c0_4] : memref<1x64xf32, #tpu.memory_space<vmem>>, vector<1x64xf32>
    %11 = vector.broadcast %10 : vector<1x64xf32> to vector<64x64xf32>
    %12 = arith.mulf %9, %11 : vector<64x64xf32>
    %cst_5 = arith.constant 8.000000e+00 : f32
    %13 = vector.broadcast %cst_5 : f32 to vector<64x64xf32>
    %14 = arith.mulf %12, %13 : vector<64x64xf32>
    %15 = arith.truncf %14 : vector<64x64xf32> to vector<64x64xbf16>
    %c0_6 = arith.constant 0 : index
    %c0_7 = arith.constant 0 : index
    %16 = vector.load %arg3[%c0_6, %c0_7] : memref<64x16xbf16, #tpu.memory_space<vmem>>, vector<64x16xbf16>
    %cst_8 = arith.constant dense<0.000000e+00> : vector<64x16xf32>
    %17 = tpu.matmul %15, %16, %cst_8 {dimension_numbers = #tpu.dot_dimension_numbers<[1], [0], [0], [1], [0, 0, 1, 1], [], []>} : vector<64x64xbf16>, vector<64x16xbf16>, vector<64x16xf32> -> vector<64x16xf32>
    %c0_9 = arith.constant 0 : index
    %c0_10 = arith.constant 0 : index
    %18 = vector.load %arg4[%c0_9, %c0_10] : memref<1x16xf32, #tpu.memory_space<vmem>>, vector<1x16xf32>
    %19 = vector.broadcast %18 : vector<1x16xf32> to vector<64x16xf32>
    %20 = arith.addf %17, %19 : vector<64x16xf32>
    %c0_11 = arith.constant 0 : index
    %c0_12 = arith.constant 0 : index
    %c0_13 = arith.constant 0 : index
    %21 = vector.load %arg5[%c0_11, %c0_12, %c0_13] : memref<1x64x16xf32, #tpu.memory_space<vmem>>, vector<1x64x16xf32>
    %22 = vector.shape_cast %21 : vector<1x64x16xf32> to vector<64x16xf32>
    %23 = vector.shape_cast %20 : vector<64x16xf32> to vector<1x64x16xf32>
    tpu.vector_store %arg5[%c0_11, %c0_12, %c0_13], %23 {strides = array<i32>} : memref<1x64x16xf32, #tpu.memory_space<vmem>>, vector<1x64x16xf32>,
    return
  }
  func.func @transform_0(%arg0: i32) -> (i32, i32, i32) {
    %c0_i32 = arith.constant 0 : i32
    %c0_i32_0 = arith.constant 0 : i32
    %c0_i32_1 = arith.constant 0 : i32
    return %arg0, %c0_i32, %c0_i32_0 : i32, i32, i32
  }
  func.func @transform_1(%arg0: i32) -> (i32, i32) {
    %c0_i32 = arith.constant 0 : i32
    %c0_i32_0 = arith.constant 0 : i32
    %c0_i32_1 = arith.constant 0 : i32
    return %c0_i32, %c0_i32_0 : i32, i32
  }
  func.func @transform_2(%arg0: i32) -> (i32, i32) {
    %c0_i32 = arith.constant 0 : i32
    %c0_i32_0 = arith.constant 0 : i32
    %c0_i32_1 = arith.constant 0 : i32
    return %c0_i32, %c0_i32_0 : i32, i32
  }
  func.func @transform_3(%arg0: i32) -> (i32, i32) {
    %c0_i32 = arith.constant 0 : i32
    %c0_i32_0 = arith.constant 0 : i32
    %c0_i32_1 = arith.constant 0 : i32
    return %c0_i32, %c0_i32_0 : i32, i32
  }
  func.func @transform_4(%arg0: i32) -> (i32, i32, i32) {
    %c0_i32 = arith.constant 0 : i32
    %c0_i32_0 = arith.constant 0 : i32
    %c0_i32_1 = arith.constant 0 : i32
    return %arg0, %c0_i32, %c0_i32_0 : i32, i32, i32
  }
}

module attributes {stable_mosaic.version = 11 : i64} {
  func.func @_embed_kernel(%arg0: i32, %arg1: memref<1x64x16xf32, #tpu.memory_space<vmem>>, %arg2: memref<64x16xf32, #tpu.memory_space<vmem>>, %arg3: memref<16x16xbf16, #tpu.memory_space<vmem>>, %arg4: memref<1x16xf32, #tpu.memory_space<vmem>>, %arg5: memref<1x16xf32, #tpu.memory_space<vmem>>, %arg6: memref<1x16xf32, #tpu.memory_space<vmem>>, %arg7: memref<16x64xbf16, #tpu.memory_space<vmem>>, %arg8: memref<1x64xf32, #tpu.memory_space<vmem>>, %arg9: memref<1x64xf32, #tpu.memory_space<vmem>>, %arg10: memref<1x64xf32, #tpu.memory_space<vmem>>, %arg11: memref<1x64x64xf32, #tpu.memory_space<vmem>>) attributes {dimension_semantics = [#tpu.dimension_semantics<parallel>], iteration_bounds = array<i64: 2>, scalar_prefetch = 0 : i64, scratch_operands = 0 : i64, tpu.core_type = #tpu.core_type<tc>, window_params = [{transform_indices = @transform_0, window_bounds = array<i64: 1, 64, 16>}, {pipeline_mode = #tpu.pipeline_mode<synchronous>, transform_indices = @transform_1, window_bounds = array<i64: 64, 16>}, {pipeline_mode = #tpu.pipeline_mode<synchronous>, transform_indices = @transform_2, window_bounds = array<i64: 16, 16>}, {pipeline_mode = #tpu.pipeline_mode<synchronous>, transform_indices = @transform_3, window_bounds = array<i64: 1, 16>}, {pipeline_mode = #tpu.pipeline_mode<synchronous>, transform_indices = @transform_4, window_bounds = array<i64: 1, 16>}, {pipeline_mode = #tpu.pipeline_mode<synchronous>, transform_indices = @transform_5, window_bounds = array<i64: 1, 16>}, {pipeline_mode = #tpu.pipeline_mode<synchronous>, transform_indices = @transform_6, window_bounds = array<i64: 16, 64>}, {pipeline_mode = #tpu.pipeline_mode<synchronous>, transform_indices = @transform_7, window_bounds = array<i64: 1, 64>}, {pipeline_mode = #tpu.pipeline_mode<synchronous>, transform_indices = @transform_8, window_bounds = array<i64: 1, 64>}, {pipeline_mode = #tpu.pipeline_mode<synchronous>, transform_indices = @transform_9, window_bounds = array<i64: 1, 64>}, {transform_indices = @transform_10, window_bounds = array<i64: 1, 64, 64>}]} {
    %c0 = arith.constant 0 : index
    %c0_0 = arith.constant 0 : index
    %c0_1 = arith.constant 0 : index
    %0 = vector.load %arg1[%c0, %c0_0, %c0_1] : memref<1x64x16xf32, #tpu.memory_space<vmem>>, vector<1x64x16xf32>
    %1 = vector.shape_cast %0 : vector<1x64x16xf32> to vector<64x16xf32>
    %2 = arith.truncf %1 : vector<64x16xf32> to vector<64x16xbf16>
    %c0_2 = arith.constant 0 : index
    %c0_3 = arith.constant 0 : index
    %3 = vector.load %arg3[%c0_2, %c0_3] : memref<16x16xbf16, #tpu.memory_space<vmem>>, vector<16x16xbf16>
    %cst = arith.constant dense<0.000000e+00> : vector<64x16xf32>
    %4 = tpu.matmul %2, %3, %cst {dimension_numbers = #tpu.dot_dimension_numbers<[1], [0], [0], [1], [0, 0, 1, 1], [], []>} : vector<64x16xbf16>, vector<16x16xbf16>, vector<64x16xf32> -> vector<64x16xf32>
    %c0_4 = arith.constant 0 : index
    %c0_5 = arith.constant 0 : index
    %5 = vector.load %arg4[%c0_4, %c0_5] : memref<1x16xf32, #tpu.memory_space<vmem>>, vector<1x16xf32>
    %6 = vector.broadcast %5 : vector<1x16xf32> to vector<64x16xf32>
    %7 = arith.addf %4, %6 : vector<64x16xf32>
    %c0_6 = arith.constant 0 : index
    %c0_7 = arith.constant 0 : index
    %8 = vector.load %arg2[%c0_6, %c0_7] : memref<64x16xf32, #tpu.memory_space<vmem>>, vector<64x16xf32>
    %9 = arith.addf %7, %8 : vector<64x16xf32>
    %c0_8 = arith.constant 0 : index
    %c0_9 = arith.constant 0 : index
    %10 = vector.load %arg5[%c0_8, %c0_9] : memref<1x16xf32, #tpu.memory_space<vmem>>, vector<1x16xf32>
    %c0_10 = arith.constant 0 : index
    %c0_11 = arith.constant 0 : index
    %11 = vector.load %arg6[%c0_10, %c0_11] : memref<1x16xf32, #tpu.memory_space<vmem>>, vector<1x16xf32>
    %cst_12 = arith.constant dense<0.000000e+00> : vector<64xf32>
    %12 = vector.multi_reduction <add>, %9, %cst_12 [1] : vector<64x16xf32> to vector<64xf32>
    %13 = vector.shape_cast %12 : vector<64xf32> to vector<64x1xf32>
    %cst_13 = arith.constant 1.600000e+01 : f32
    %14 = vector.broadcast %cst_13 : f32 to vector<64x1xf32>
    %15 = arith.divf %13, %14 : vector<64x1xf32>
    %16 = vector.broadcast %15 : vector<64x1xf32> to vector<64x16xf32>
    %17 = arith.subf %9, %16 : vector<64x16xf32>
    %18 = arith.mulf %17, %17 : vector<64x16xf32>
    %cst_14 = arith.constant dense<0.000000e+00> : vector<64xf32>
    %19 = vector.multi_reduction <add>, %18, %cst_14 [1] : vector<64x16xf32> to vector<64xf32>
    %20 = vector.shape_cast %19 : vector<64xf32> to vector<64x1xf32>
    %cst_15 = arith.constant 1.600000e+01 : f32
    %21 = vector.broadcast %cst_15 : f32 to vector<64x1xf32>
    %22 = arith.divf %20, %21 : vector<64x1xf32>
    %23 = vector.broadcast %15 : vector<64x1xf32> to vector<64x16xf32>
    %24 = arith.subf %9, %23 : vector<64x16xf32>
    %cst_16 = arith.constant 9.99999974E-6 : f32
    %25 = vector.broadcast %cst_16 : f32 to vector<64x1xf32>
    %26 = arith.addf %22, %25 : vector<64x1xf32>
    %27 = math.rsqrt %26 : vector<64x1xf32>
    %28 = vector.broadcast %27 : vector<64x1xf32> to vector<64x16xf32>
    %29 = arith.mulf %24, %28 : vector<64x16xf32>
    %30 = vector.broadcast %10 : vector<1x16xf32> to vector<64x16xf32>
    %31 = arith.mulf %29, %30 : vector<64x16xf32>
    %32 = vector.broadcast %11 : vector<1x16xf32> to vector<64x16xf32>
    %33 = arith.addf %31, %32 : vector<64x16xf32>
    %34 = arith.truncf %33 : vector<64x16xf32> to vector<64x16xbf16>
    %c0_17 = arith.constant 0 : index
    %c0_18 = arith.constant 0 : index
    %35 = vector.load %arg7[%c0_17, %c0_18] : memref<16x64xbf16, #tpu.memory_space<vmem>>, vector<16x64xbf16>
    %cst_19 = arith.constant dense<0.000000e+00> : vector<64x64xf32>
    %36 = tpu.matmul %34, %35, %cst_19 {dimension_numbers = #tpu.dot_dimension_numbers<[1], [0], [0], [1], [0, 0, 1, 1], [], []>} : vector<64x16xbf16>, vector<16x64xbf16>, vector<64x64xf32> -> vector<64x64xf32>
    %c0_20 = arith.constant 0 : index
    %c0_21 = arith.constant 0 : index
    %37 = vector.load %arg8[%c0_20, %c0_21] : memref<1x64xf32, #tpu.memory_space<vmem>>, vector<1x64xf32>
    %38 = vector.broadcast %37 : vector<1x64xf32> to vector<64x64xf32>
    %39 = arith.addf %36, %38 : vector<64x64xf32>
    %c0_22 = arith.constant 0 : index
    %c0_23 = arith.constant 0 : index
    %40 = vector.load %arg9[%c0_22, %c0_23] : memref<1x64xf32, #tpu.memory_space<vmem>>, vector<1x64xf32>
    %c0_24 = arith.constant 0 : index
    %c0_25 = arith.constant 0 : index
    %41 = vector.load %arg10[%c0_24, %c0_25] : memref<1x64xf32, #tpu.memory_space<vmem>>, vector<1x64xf32>
    %cst_26 = arith.constant dense<0.000000e+00> : vector<64xf32>
    %42 = vector.multi_reduction <add>, %39, %cst_26 [1] : vector<64x64xf32> to vector<64xf32>
    %43 = vector.shape_cast %42 : vector<64xf32> to vector<64x1xf32>
    %cst_27 = arith.constant 6.400000e+01 : f32
    %44 = vector.broadcast %cst_27 : f32 to vector<64x1xf32>
    %45 = arith.divf %43, %44 : vector<64x1xf32>
    %46 = vector.broadcast %45 : vector<64x1xf32> to vector<64x64xf32>
    %47 = arith.subf %39, %46 : vector<64x64xf32>
    %48 = arith.mulf %47, %47 : vector<64x64xf32>
    %cst_28 = arith.constant dense<0.000000e+00> : vector<64xf32>
    %49 = vector.multi_reduction <add>, %48, %cst_28 [1] : vector<64x64xf32> to vector<64xf32>
    %50 = vector.shape_cast %49 : vector<64xf32> to vector<64x1xf32>
    %cst_29 = arith.constant 6.400000e+01 : f32
    %51 = vector.broadcast %cst_29 : f32 to vector<64x1xf32>
    %52 = arith.divf %50, %51 : vector<64x1xf32>
    %53 = vector.broadcast %45 : vector<64x1xf32> to vector<64x64xf32>
    %54 = arith.subf %39, %53 : vector<64x64xf32>
    %cst_30 = arith.constant 9.99999974E-6 : f32
    %55 = vector.broadcast %cst_30 : f32 to vector<64x1xf32>
    %56 = arith.addf %52, %55 : vector<64x1xf32>
    %57 = math.rsqrt %56 : vector<64x1xf32>
    %58 = vector.broadcast %57 : vector<64x1xf32> to vector<64x64xf32>
    %59 = arith.mulf %54, %58 : vector<64x64xf32>
    %60 = vector.broadcast %40 : vector<1x64xf32> to vector<64x64xf32>
    %61 = arith.mulf %59, %60 : vector<64x64xf32>
    %62 = vector.broadcast %41 : vector<1x64xf32> to vector<64x64xf32>
    %63 = arith.addf %61, %62 : vector<64x64xf32>
    %c0_31 = arith.constant 0 : index
    %c0_32 = arith.constant 0 : index
    %c0_33 = arith.constant 0 : index
    %64 = vector.load %arg11[%c0_31, %c0_32, %c0_33] : memref<1x64x64xf32, #tpu.memory_space<vmem>>, vector<1x64x64xf32>
    %65 = vector.shape_cast %64 : vector<1x64x64xf32> to vector<64x64xf32>
    %66 = vector.shape_cast %63 : vector<64x64xf32> to vector<1x64x64xf32>
    tpu.vector_store %arg11[%c0_31, %c0_32, %c0_33], %66 {strides = array<i32>} : memref<1x64x64xf32, #tpu.memory_space<vmem>>, vector<1x64x64xf32>,
    return
  }
  func.func @transform_0(%arg0: i32) -> (i32, i32, i32) {
    %c0_i32 = arith.constant 0 : i32
    %c0_i32_0 = arith.constant 0 : i32
    %c0_i32_1 = arith.constant 0 : i32
    return %arg0, %c0_i32, %c0_i32_0 : i32, i32, i32
  }
  func.func @transform_1(%arg0: i32) -> (i32, i32) {
    %c0_i32 = arith.constant 0 : i32
    %c0_i32_0 = arith.constant 0 : i32
    %c0_i32_1 = arith.constant 0 : i32
    return %c0_i32, %c0_i32_0 : i32, i32
  }
  func.func @transform_2(%arg0: i32) -> (i32, i32) {
    %c0_i32 = arith.constant 0 : i32
    %c0_i32_0 = arith.constant 0 : i32
    %c0_i32_1 = arith.constant 0 : i32
    return %c0_i32, %c0_i32_0 : i32, i32
  }
  func.func @transform_3(%arg0: i32) -> (i32, i32) {
    %c0_i32 = arith.constant 0 : i32
    %c0_i32_0 = arith.constant 0 : i32
    %c0_i32_1 = arith.constant 0 : i32
    return %c0_i32, %c0_i32_0 : i32, i32
  }
  func.func @transform_4(%arg0: i32) -> (i32, i32) {
    %c0_i32 = arith.constant 0 : i32
    %c0_i32_0 = arith.constant 0 : i32
    %c0_i32_1 = arith.constant 0 : i32
    return %c0_i32, %c0_i32_0 : i32, i32
  }
  func.func @transform_5(%arg0: i32) -> (i32, i32) {
    %c0_i32 = arith.constant 0 : i32
    %c0_i32_0 = arith.constant 0 : i32
    %c0_i32_1 = arith.constant 0 : i32
    return %c0_i32, %c0_i32_0 : i32, i32
  }
  func.func @transform_6(%arg0: i32) -> (i32, i32) {
    %c0_i32 = arith.constant 0 : i32
    %c0_i32_0 = arith.constant 0 : i32
    %c0_i32_1 = arith.constant 0 : i32
    return %c0_i32, %c0_i32_0 : i32, i32
  }
  func.func @transform_7(%arg0: i32) -> (i32, i32) {
    %c0_i32 = arith.constant 0 : i32
    %c0_i32_0 = arith.constant 0 : i32
    %c0_i32_1 = arith.constant 0 : i32
    return %c0_i32, %c0_i32_0 : i32, i32
  }
  func.func @transform_8(%arg0: i32) -> (i32, i32) {
    %c0_i32 = arith.constant 0 : i32
    %c0_i32_0 = arith.constant 0 : i32
    %c0_i32_1 = arith.constant 0 : i32
    return %c0_i32, %c0_i32_0 : i32, i32
  }
  func.func @transform_9(%arg0: i32) -> (i32, i32) {
    %c0_i32 = arith.constant 0 : i32
    %c0_i32_0 = arith.constant 0 : i32
    %c0_i32_1 = arith.constant 0 : i32
    return %c0_i32, %c0_i32_0 : i32, i32
  }
  func.func @transform_10(%arg0: i32) -> (i32, i32, i32) {
    %c0_i32 = arith.constant 0 : i32
    %c0_i32_0 = arith.constant 0 : i32
    %c0_i32_1 = arith.constant 0 : i32
    return %arg0, %c0_i32, %c0_i32_0 : i32, i32, i32
  }
}

module attributes {stable_mosaic.version = 11 : i64} {
  func.func @_decoder_block_kernel(%arg0: i32, %arg1: memref<1x64x64xf32, #tpu.memory_space<vmem>>, %arg2: memref<1x8x64xf32, #tpu.memory_space<vmem>>, %arg3: memref<1x64xf32, #tpu.memory_space<vmem>>, %arg4: memref<1x64xf32, #tpu.memory_space<vmem>>, %arg5: memref<64x64xbf16, #tpu.memory_space<vmem>>, %arg6: memref<64x64xbf16, #tpu.memory_space<vmem>>, %arg7: memref<64x64xbf16, #tpu.memory_space<vmem>>, %arg8: memref<1x64xf32, #tpu.memory_space<vmem>>, %arg9: memref<1x64xf32, #tpu.memory_space<vmem>>, %arg10: memref<64x64xbf16, #tpu.memory_space<vmem>>, %arg11: memref<64x64xbf16, #tpu.memory_space<vmem>>, %arg12: memref<64x64xbf16, #tpu.memory_space<vmem>>, %arg13: memref<1x64xf32, #tpu.memory_space<vmem>>, %arg14: memref<1x64xf32, #tpu.memory_space<vmem>>, %arg15: memref<64x128xbf16, #tpu.memory_space<vmem>>, %arg16: memref<1x128xf32, #tpu.memory_space<vmem>>, %arg17: memref<9x128xf32, #tpu.memory_space<vmem>>, %arg18: memref<1x128xf32, #tpu.memory_space<vmem>>, %arg19: memref<128x64xbf16, #tpu.memory_space<vmem>>, %arg20: memref<1x64xf32, #tpu.memory_space<vmem>>, %arg21: memref<1x64x64xf32, #tpu.memory_space<vmem>>, %arg22: memref<10x24x128xf32, #tpu.memory_space<vmem>>) attributes {dimension_semantics = [#tpu.dimension_semantics<parallel>], iteration_bounds = array<i64: 2>, scalar_prefetch = 0 : i64, scratch_operands = 1 : i64, tpu.core_type = #tpu.core_type<tc>, window_params = [{transform_indices = @transform_0, window_bounds = array<i64: 1, 64, 64>}, {transform_indices = @transform_1, window_bounds = array<i64: 1, 8, 64>}, {pipeline_mode = #tpu.pipeline_mode<synchronous>, transform_indices = @transform_2, window_bounds = array<i64: 1, 64>}, {pipeline_mode = #tpu.pipeline_mode<synchronous>, transform_indices = @transform_3, window_bounds = array<i64: 1, 64>}, {pipeline_mode = #tpu.pipeline_mode<synchronous>, transform_indices = @transform_4, window_bounds = array<i64: 64, 64>}, {pipeline_mode = #tpu.pipeline_mode<synchronous>, transform_indices = @transform_5, window_bounds = array<i64: 64, 64>}, {pipeline_mode = #tpu.pipeline_mode<synchronous>, transform_indices = @transform_6, window_bounds = array<i64: 64, 64>}, {pipeline_mode = #tpu.pipeline_mode<synchronous>, transform_indices = @transform_7, window_bounds = array<i64: 1, 64>}, {pipeline_mode = #tpu.pipeline_mode<synchronous>, transform_indices = @transform_8, window_bounds = array<i64: 1, 64>}, {pipeline_mode = #tpu.pipeline_mode<synchronous>, transform_indices = @transform_9, window_bounds = array<i64: 64, 64>}, {pipeline_mode = #tpu.pipeline_mode<synchronous>, transform_indices = @transform_10, window_bounds = array<i64: 64, 64>}, {pipeline_mode = #tpu.pipeline_mode<synchronous>, transform_indices = @transform_11, window_bounds = array<i64: 64, 64>}, {pipeline_mode = #tpu.pipeline_mode<synchronous>, transform_indices = @transform_12, window_bounds = array<i64: 1, 64>}, {pipeline_mode = #tpu.pipeline_mode<synchronous>, transform_indices = @transform_13, window_bounds = array<i64: 1, 64>}, {pipeline_mode = #tpu.pipeline_mode<synchronous>, transform_indices = @transform_14, window_bounds = array<i64: 64, 128>}, {pipeline_mode = #tpu.pipeline_mode<synchronous>, transform_indices = @transform_15, window_bounds = array<i64: 1, 128>}, {pipeline_mode = #tpu.pipeline_mode<synchronous>, transform_indices = @transform_16, window_bounds = array<i64: 9, 128>}, {pipeline_mode = #tpu.pipeline_mode<synchronous>, transform_indices = @transform_17, window_bounds = array<i64: 1, 128>}, {pipeline_mode = #tpu.pipeline_mode<synchronous>, transform_indices = @transform_18, window_bounds = array<i64: 128, 64>}, {pipeline_mode = #tpu.pipeline_mode<synchronous>, transform_indices = @transform_19, window_bounds = array<i64: 1, 64>}, {transform_indices = @transform_20, window_bounds = array<i64: 1, 64, 64>}]} {
    %c0 = arith.constant 0 : index
    %c0_0 = arith.constant 0 : index
    %c0_1 = arith.constant 0 : index
    %0 = vector.load %arg1[%c0, %c0_0, %c0_1] : memref<1x64x64xf32, #tpu.memory_space<vmem>>, vector<1x64x64xf32>
    %1 = vector.shape_cast %0 : vector<1x64x64xf32> to vector<64x64xf32>
    %c0_2 = arith.constant 0 : index
    %c0_3 = arith.constant 0 : index
    %c0_4 = arith.constant 0 : index
    %2 = vector.load %arg2[%c0_2, %c0_3, %c0_4] : memref<1x8x64xf32, #tpu.memory_space<vmem>>, vector<1x8x64xf32>
    %3 = vector.shape_cast %2 : vector<1x8x64xf32> to vector<8x64xf32>
    %4 = arith.truncf %3 : vector<8x64xf32> to vector<8x64xbf16>
    %c0_5 = arith.constant 0 : index
    %c0_6 = arith.constant 0 : index
    %5 = vector.load %arg3[%c0_5, %c0_6] : memref<1x64xf32, #tpu.memory_space<vmem>>, vector<1x64xf32>
    %c0_7 = arith.constant 0 : index
    %c0_8 = arith.constant 0 : index
    %6 = vector.load %arg4[%c0_7, %c0_8] : memref<1x64xf32, #tpu.memory_space<vmem>>, vector<1x64xf32>
    %cst = arith.constant dense<0.000000e+00> : vector<64xf32>
    %7 = vector.multi_reduction <add>, %1, %cst [1] : vector<64x64xf32> to vector<64xf32>
    %8 = vector.shape_cast %7 : vector<64xf32> to vector<64x1xf32>
    %cst_9 = arith.constant 6.400000e+01 : f32
    %9 = vector.broadcast %cst_9 : f32 to vector<64x1xf32>
    %10 = arith.divf %8, %9 : vector<64x1xf32>
    %11 = vector.broadcast %10 : vector<64x1xf32> to vector<64x64xf32>
    %12 = arith.subf %1, %11 : vector<64x64xf32>
    %13 = arith.mulf %12, %12 : vector<64x64xf32>
    %cst_10 = arith.constant dense<0.000000e+00> : vector<64xf32>
    %14 = vector.multi_reduction <add>, %13, %cst_10 [1] : vector<64x64xf32> to vector<64xf32>
    %15 = vector.shape_cast %14 : vector<64xf32> to vector<64x1xf32>
    %cst_11 = arith.constant 6.400000e+01 : f32
    %16 = vector.broadcast %cst_11 : f32 to vector<64x1xf32>
    %17 = arith.divf %15, %16 : vector<64x1xf32>
    %18 = vector.broadcast %10 : vector<64x1xf32> to vector<64x64xf32>
    %19 = arith.subf %1, %18 : vector<64x64xf32>
    %cst_12 = arith.constant 9.99999974E-6 : f32
    %20 = vector.broadcast %cst_12 : f32 to vector<64x1xf32>
    %21 = arith.addf %17, %20 : vector<64x1xf32>
    %22 = math.rsqrt %21 : vector<64x1xf32>
    %23 = vector.broadcast %22 : vector<64x1xf32> to vector<64x64xf32>
    %24 = arith.mulf %19, %23 : vector<64x64xf32>
    %25 = vector.broadcast %5 : vector<1x64xf32> to vector<64x64xf32>
    %26 = arith.mulf %24, %25 : vector<64x64xf32>
    %27 = vector.broadcast %6 : vector<1x64xf32> to vector<64x64xf32>
    %28 = arith.addf %26, %27 : vector<64x64xf32>
    %29 = arith.truncf %28 : vector<64x64xf32> to vector<64x64xbf16>
    %c0_13 = arith.constant 0 : index
    %c0_14 = arith.constant 0 : index
    %30 = vector.load %arg5[%c0_13, %c0_14] : memref<64x64xbf16, #tpu.memory_space<vmem>>, vector<64x64xbf16>
    %cst_15 = arith.constant dense<0.000000e+00> : vector<64x64xf32>
    %31 = tpu.matmul %29, %30, %cst_15 {dimension_numbers = #tpu.dot_dimension_numbers<[1], [0], [0], [1], [0, 0, 1, 1], [], []>} : vector<64x64xbf16>, vector<64x64xbf16>, vector<64x64xf32> -> vector<64x64xf32>
    %c0_16 = arith.constant 0 : index
    %c0_17 = arith.constant 0 : index
    %32 = vector.load %arg6[%c0_16, %c0_17] : memref<64x64xbf16, #tpu.memory_space<vmem>>, vector<64x64xbf16>
    %cst_18 = arith.constant dense<0.000000e+00> : vector<64x64xf32>
    %33 = tpu.matmul %29, %32, %cst_18 {dimension_numbers = #tpu.dot_dimension_numbers<[1], [0], [0], [1], [0, 0, 1, 1], [], []>} : vector<64x64xbf16>, vector<64x64xbf16>, vector<64x64xf32> -> vector<64x64xf32>
    %c0_19 = arith.constant 0 : index
    %c0_20 = arith.constant 0 : index
    %34 = vector.load %arg7[%c0_19, %c0_20] : memref<64x64xbf16, #tpu.memory_space<vmem>>, vector<64x64xbf16>
    %cst_21 = arith.constant dense<0.000000e+00> : vector<64x64xf32>
    %35 = tpu.matmul %29, %34, %cst_21 {dimension_numbers = #tpu.dot_dimension_numbers<[1], [0], [0], [1], [0, 0, 1, 1], [], []>} : vector<64x64xbf16>, vector<64x64xbf16>, vector<64x64xf32> -> vector<64x64xf32>
    %36 = tpu.iota {dimensions = array<i32: 1>} : vector<1x64xi32>
    %cst_22 = arith.constant 0.000000e+00 : f32
    %37 = vector.broadcast %cst_22 : f32 to vector<64x64xf32>
    %c0_i32 = arith.constant 0 : i32
    %38 = vector.broadcast %c0_i32 : i32 to vector<1x64xi32>
    %39 = arith.cmpi sge, %36, %38 : vector<1x64xi32>
    %c16_i32 = arith.constant 16 : i32
    %40 = vector.broadcast %c16_i32 : i32 to vector<1x64xi32>
    %41 = arith.cmpi slt, %36, %40 : vector<1x64xi32>
    %42 = arith.andi %39, %41 : vector<1x64xi1>
    %cst_23 = arith.constant 0.000000e+00 : f32
    %43 = vector.shape_cast %42 : vector<1x64xi1> to vector<1x64xi1>
    %44 = vector.broadcast %43 : vector<1x64xi1> to vector<64x64xi1>
    %45 = vector.broadcast %cst_23 : f32 to vector<64x64xf32>
    %46 = arith.select %44, %31, %45 : vector<64x64xi1>, vector<64x64xf32>
    %47 = arith.truncf %46 : vector<64x64xf32> to vector<64x64xbf16>
    %cst_24 = arith.constant 0.000000e+00 : f32
    %48 = vector.shape_cast %42 : vector<1x64xi1> to vector<1x64xi1>
    %49 = vector.broadcast %48 : vector<1x64xi1> to vector<64x64xi1>
    %50 = vector.broadcast %cst_24 : f32 to vector<64x64xf32>
    %51 = arith.select %49, %33, %50 : vector<64x64xi1>, vector<64x64xf32>
    %52 = arith.truncf %51 : vector<64x64xf32> to vector<64x64xbf16>
    %cst_25 = arith.constant 0.000000e+00 : f32
    %53 = vector.shape_cast %42 : vector<1x64xi1> to vector<1x64xi1>
    %54 = vector.broadcast %53 : vector<1x64xi1> to vector<64x64xi1>
    %55 = vector.broadcast %cst_25 : f32 to vector<64x64xf32>
    %56 = arith.select %54, %35, %55 : vector<64x64xi1>, vector<64x64xf32>
    %57 = arith.truncf %56 : vector<64x64xf32> to vector<64x64xbf16>
    %cst_26 = arith.constant dense<0.000000e+00> : vector<64x64xf32>
    %58 = tpu.matmul %47, %52, %cst_26 {dimension_numbers = #tpu.dot_dimension_numbers<[1], [1], [0], [0], [0, 0, 1, 0], [], []>} : vector<64x64xbf16>, vector<64x64xbf16>, vector<64x64xf32> -> vector<64x64xf32>
    %cst_27 = arith.constant 2.500000e-01 : f32
    %59 = vector.broadcast %cst_27 : f32 to vector<64x64xf32>
    %60 = arith.mulf %58, %59 : vector<64x64xf32>
    %cst_28 = arith.constant dense<0xFF800000> : vector<64xf32>
    %61 = vector.multi_reduction <maximumf>, %60, %cst_28 [1] : vector<64x64xf32> to vector<64xf32>
    %62 = vector.shape_cast %61 : vector<64xf32> to vector<64x1xf32>
    %63 = vector.broadcast %62 : vector<64x1xf32> to vector<64x64xf32>
    %64 = arith.subf %60, %63 : vector<64x64xf32>
    %65 = math.exp %64 : vector<64x64xf32>
    %cst_29 = arith.constant dense<0.000000e+00> : vector<64xf32>
    %66 = vector.multi_reduction <add>, %65, %cst_29 [1] : vector<64x64xf32> to vector<64xf32>
    %67 = vector.shape_cast %66 : vector<64xf32> to vector<64x1xf32>
    %68 = tpu.reciprocal %67 {approx = true} : vector<64x1xf32> -> vector<64x1xf32>
    %69 = vector.broadcast %68 : vector<64x1xf32> to vector<64x64xf32>
    %70 = arith.mulf %65, %69 : vector<64x64xf32>
    %71 = arith.truncf %70 : vector<64x64xf32> to vector<64x64xbf16>
    %cst_30 = arith.constant dense<0.000000e+00> : vector<64x64xf32>
    %72 = tpu.matmul %71, %57, %cst_30 {dimension_numbers = #tpu.dot_dimension_numbers<[1], [0], [0], [1], [0, 0, 1, 1], [], []>} : vector<64x64xbf16>, vector<64x64xbf16>, vector<64x64xf32> -> vector<64x64xf32>
    %73 = arith.addf %37, %72 : vector<64x64xf32>
    %c16_i32_31 = arith.constant 16 : i32
    %74 = vector.broadcast %c16_i32_31 : i32 to vector<1x64xi32>
    %75 = arith.cmpi sge, %36, %74 : vector<1x64xi32>
    %c32_i32 = arith.constant 32 : i32
    %76 = vector.broadcast %c32_i32 : i32 to vector<1x64xi32>
    %77 = arith.cmpi slt, %36, %76 : vector<1x64xi32>
    %78 = arith.andi %75, %77 : vector<1x64xi1>
    %cst_32 = arith.constant 0.000000e+00 : f32
    %79 = vector.shape_cast %78 : vector<1x64xi1> to vector<1x64xi1>
    %80 = vector.broadcast %79 : vector<1x64xi1> to vector<64x64xi1>
    %81 = vector.broadcast %cst_32 : f32 to vector<64x64xf32>
    %82 = arith.select %80, %31, %81 : vector<64x64xi1>, vector<64x64xf32>
    %83 = arith.truncf %82 : vector<64x64xf32> to vector<64x64xbf16>
    %cst_33 = arith.constant 0.000000e+00 : f32
    %84 = vector.shape_cast %78 : vector<1x64xi1> to vector<1x64xi1>
    %85 = vector.broadcast %84 : vector<1x64xi1> to vector<64x64xi1>
    %86 = vector.broadcast %cst_33 : f32 to vector<64x64xf32>
    %87 = arith.select %85, %33, %86 : vector<64x64xi1>, vector<64x64xf32>
    %88 = arith.truncf %87 : vector<64x64xf32> to vector<64x64xbf16>
    %cst_34 = arith.constant 0.000000e+00 : f32
    %89 = vector.shape_cast %78 : vector<1x64xi1> to vector<1x64xi1>
    %90 = vector.broadcast %89 : vector<1x64xi1> to vector<64x64xi1>
    %91 = vector.broadcast %cst_34 : f32 to vector<64x64xf32>
    %92 = arith.select %90, %35, %91 : vector<64x64xi1>, vector<64x64xf32>
    %93 = arith.truncf %92 : vector<64x64xf32> to vector<64x64xbf16>
    %cst_35 = arith.constant dense<0.000000e+00> : vector<64x64xf32>
    %94 = tpu.matmul %83, %88, %cst_35 {dimension_numbers = #tpu.dot_dimension_numbers<[1], [1], [0], [0], [0, 0, 1, 0], [], []>} : vector<64x64xbf16>, vector<64x64xbf16>, vector<64x64xf32> -> vector<64x64xf32>
    %cst_36 = arith.constant 2.500000e-01 : f32
    %95 = vector.broadcast %cst_36 : f32 to vector<64x64xf32>
    %96 = arith.mulf %94, %95 : vector<64x64xf32>
    %cst_37 = arith.constant dense<0xFF800000> : vector<64xf32>
    %97 = vector.multi_reduction <maximumf>, %96, %cst_37 [1] : vector<64x64xf32> to vector<64xf32>
    %98 = vector.shape_cast %97 : vector<64xf32> to vector<64x1xf32>
    %99 = vector.broadcast %98 : vector<64x1xf32> to vector<64x64xf32>
    %100 = arith.subf %96, %99 : vector<64x64xf32>
    %101 = math.exp %100 : vector<64x64xf32>
    %cst_38 = arith.constant dense<0.000000e+00> : vector<64xf32>
    %102 = vector.multi_reduction <add>, %101, %cst_38 [1] : vector<64x64xf32> to vector<64xf32>
    %103 = vector.shape_cast %102 : vector<64xf32> to vector<64x1xf32>
    %104 = tpu.reciprocal %103 {approx = true} : vector<64x1xf32> -> vector<64x1xf32>
    %105 = vector.broadcast %104 : vector<64x1xf32> to vector<64x64xf32>
    %106 = arith.mulf %101, %105 : vector<64x64xf32>
    %107 = arith.truncf %106 : vector<64x64xf32> to vector<64x64xbf16>
    %cst_39 = arith.constant dense<0.000000e+00> : vector<64x64xf32>
    %108 = tpu.matmul %107, %93, %cst_39 {dimension_numbers = #tpu.dot_dimension_numbers<[1], [0], [0], [1], [0, 0, 1, 1], [], []>} : vector<64x64xbf16>, vector<64x64xbf16>, vector<64x64xf32> -> vector<64x64xf32>
    %109 = arith.addf %73, %108 : vector<64x64xf32>
    %c32_i32_40 = arith.constant 32 : i32
    %110 = vector.broadcast %c32_i32_40 : i32 to vector<1x64xi32>
    %111 = arith.cmpi sge, %36, %110 : vector<1x64xi32>
    %c48_i32 = arith.constant 48 : i32
    %112 = vector.broadcast %c48_i32 : i32 to vector<1x64xi32>
    %113 = arith.cmpi slt, %36, %112 : vector<1x64xi32>
    %114 = arith.andi %111, %113 : vector<1x64xi1>
    %cst_41 = arith.constant 0.000000e+00 : f32
    %115 = vector.shape_cast %114 : vector<1x64xi1> to vector<1x64xi1>
    %116 = vector.broadcast %115 : vector<1x64xi1> to vector<64x64xi1>
    %117 = vector.broadcast %cst_41 : f32 to vector<64x64xf32>
    %118 = arith.select %116, %31, %117 : vector<64x64xi1>, vector<64x64xf32>
    %119 = arith.truncf %118 : vector<64x64xf32> to vector<64x64xbf16>
    %cst_42 = arith.constant 0.000000e+00 : f32
    %120 = vector.shape_cast %114 : vector<1x64xi1> to vector<1x64xi1>
    %121 = vector.broadcast %120 : vector<1x64xi1> to vector<64x64xi1>
    %122 = vector.broadcast %cst_42 : f32 to vector<64x64xf32>
    %123 = arith.select %121, %33, %122 : vector<64x64xi1>, vector<64x64xf32>
    %124 = arith.truncf %123 : vector<64x64xf32> to vector<64x64xbf16>
    %cst_43 = arith.constant 0.000000e+00 : f32
    %125 = vector.shape_cast %114 : vector<1x64xi1> to vector<1x64xi1>
    %126 = vector.broadcast %125 : vector<1x64xi1> to vector<64x64xi1>
    %127 = vector.broadcast %cst_43 : f32 to vector<64x64xf32>
    %128 = arith.select %126, %35, %127 : vector<64x64xi1>, vector<64x64xf32>
    %129 = arith.truncf %128 : vector<64x64xf32> to vector<64x64xbf16>
    %cst_44 = arith.constant dense<0.000000e+00> : vector<64x64xf32>
    %130 = tpu.matmul %119, %124, %cst_44 {dimension_numbers = #tpu.dot_dimension_numbers<[1], [1], [0], [0], [0, 0, 1, 0], [], []>} : vector<64x64xbf16>, vector<64x64xbf16>, vector<64x64xf32> -> vector<64x64xf32>
    %cst_45 = arith.constant 2.500000e-01 : f32
    %131 = vector.broadcast %cst_45 : f32 to vector<64x64xf32>
    %132 = arith.mulf %130, %131 : vector<64x64xf32>
    %cst_46 = arith.constant dense<0xFF800000> : vector<64xf32>
    %133 = vector.multi_reduction <maximumf>, %132, %cst_46 [1] : vector<64x64xf32> to vector<64xf32>
    %134 = vector.shape_cast %133 : vector<64xf32> to vector<64x1xf32>
    %135 = vector.broadcast %134 : vector<64x1xf32> to vector<64x64xf32>
    %136 = arith.subf %132, %135 : vector<64x64xf32>
    %137 = math.exp %136 : vector<64x64xf32>
    %cst_47 = arith.constant dense<0.000000e+00> : vector<64xf32>
    %138 = vector.multi_reduction <add>, %137, %cst_47 [1] : vector<64x64xf32> to vector<64xf32>
    %139 = vector.shape_cast %138 : vector<64xf32> to vector<64x1xf32>
    %140 = tpu.reciprocal %139 {approx = true} : vector<64x1xf32> -> vector<64x1xf32>
    %141 = vector.broadcast %140 : vector<64x1xf32> to vector<64x64xf32>
    %142 = arith.mulf %137, %141 : vector<64x64xf32>
    %143 = arith.truncf %142 : vector<64x64xf32> to vector<64x64xbf16>
    %cst_48 = arith.constant dense<0.000000e+00> : vector<64x64xf32>
    %144 = tpu.matmul %143, %129, %cst_48 {dimension_numbers = #tpu.dot_dimension_numbers<[1], [0], [0], [1], [0, 0, 1, 1], [], []>} : vector<64x64xbf16>, vector<64x64xbf16>, vector<64x64xf32> -> vector<64x64xf32>
    %145 = arith.addf %109, %144 : vector<64x64xf32>
    %c48_i32_49 = arith.constant 48 : i32
    %146 = vector.broadcast %c48_i32_49 : i32 to vector<1x64xi32>
    %147 = arith.cmpi sge, %36, %146 : vector<1x64xi32>
    %c64_i32 = arith.constant 64 : i32
    %148 = vector.broadcast %c64_i32 : i32 to vector<1x64xi32>
    %149 = arith.cmpi slt, %36, %148 : vector<1x64xi32>
    %150 = arith.andi %147, %149 : vector<1x64xi1>
    %cst_50 = arith.constant 0.000000e+00 : f32
    %151 = vector.shape_cast %150 : vector<1x64xi1> to vector<1x64xi1>
    %152 = vector.broadcast %151 : vector<1x64xi1> to vector<64x64xi1>
    %153 = vector.broadcast %cst_50 : f32 to vector<64x64xf32>
    %154 = arith.select %152, %31, %153 : vector<64x64xi1>, vector<64x64xf32>
    %155 = arith.truncf %154 : vector<64x64xf32> to vector<64x64xbf16>
    %cst_51 = arith.constant 0.000000e+00 : f32
    %156 = vector.shape_cast %150 : vector<1x64xi1> to vector<1x64xi1>
    %157 = vector.broadcast %156 : vector<1x64xi1> to vector<64x64xi1>
    %158 = vector.broadcast %cst_51 : f32 to vector<64x64xf32>
    %159 = arith.select %157, %33, %158 : vector<64x64xi1>, vector<64x64xf32>
    %160 = arith.truncf %159 : vector<64x64xf32> to vector<64x64xbf16>
    %cst_52 = arith.constant 0.000000e+00 : f32
    %161 = vector.shape_cast %150 : vector<1x64xi1> to vector<1x64xi1>
    %162 = vector.broadcast %161 : vector<1x64xi1> to vector<64x64xi1>
    %163 = vector.broadcast %cst_52 : f32 to vector<64x64xf32>
    %164 = arith.select %162, %35, %163 : vector<64x64xi1>, vector<64x64xf32>
    %165 = arith.truncf %164 : vector<64x64xf32> to vector<64x64xbf16>
    %cst_53 = arith.constant dense<0.000000e+00> : vector<64x64xf32>
    %166 = tpu.matmul %155, %160, %cst_53 {dimension_numbers = #tpu.dot_dimension_numbers<[1], [1], [0], [0], [0, 0, 1, 0], [], []>} : vector<64x64xbf16>, vector<64x64xbf16>, vector<64x64xf32> -> vector<64x64xf32>
    %cst_54 = arith.constant 2.500000e-01 : f32
    %167 = vector.broadcast %cst_54 : f32 to vector<64x64xf32>
    %168 = arith.mulf %166, %167 : vector<64x64xf32>
    %cst_55 = arith.constant dense<0xFF800000> : vector<64xf32>
    %169 = vector.multi_reduction <maximumf>, %168, %cst_55 [1] : vector<64x64xf32> to vector<64xf32>
    %170 = vector.shape_cast %169 : vector<64xf32> to vector<64x1xf32>
    %171 = vector.broadcast %170 : vector<64x1xf32> to vector<64x64xf32>
    %172 = arith.subf %168, %171 : vector<64x64xf32>
    %173 = math.exp %172 : vector<64x64xf32>
    %cst_56 = arith.constant dense<0.000000e+00> : vector<64xf32>
    %174 = vector.multi_reduction <add>, %173, %cst_56 [1] : vector<64x64xf32> to vector<64xf32>
    %175 = vector.shape_cast %174 : vector<64xf32> to vector<64x1xf32>
    %176 = tpu.reciprocal %175 {approx = true} : vector<64x1xf32> -> vector<64x1xf32>
    %177 = vector.broadcast %176 : vector<64x1xf32> to vector<64x64xf32>
    %178 = arith.mulf %173, %177 : vector<64x64xf32>
    %179 = arith.truncf %178 : vector<64x64xf32> to vector<64x64xbf16>
    %cst_57 = arith.constant dense<0.000000e+00> : vector<64x64xf32>
    %180 = tpu.matmul %179, %165, %cst_57 {dimension_numbers = #tpu.dot_dimension_numbers<[1], [0], [0], [1], [0, 0, 1, 1], [], []>} : vector<64x64xbf16>, vector<64x64xbf16>, vector<64x64xf32> -> vector<64x64xf32>
    %181 = arith.addf %145, %180 : vector<64x64xf32>
    %182 = arith.addf %1, %181 : vector<64x64xf32>
    %c0_58 = arith.constant 0 : index
    %c0_59 = arith.constant 0 : index
    %183 = vector.load %arg8[%c0_58, %c0_59] : memref<1x64xf32, #tpu.memory_space<vmem>>, vector<1x64xf32>
    %c0_60 = arith.constant 0 : index
    %c0_61 = arith.constant 0 : index
    %184 = vector.load %arg9[%c0_60, %c0_61] : memref<1x64xf32, #tpu.memory_space<vmem>>, vector<1x64xf32>
    %cst_62 = arith.constant dense<0.000000e+00> : vector<64xf32>
    %185 = vector.multi_reduction <add>, %182, %cst_62 [1] : vector<64x64xf32> to vector<64xf32>
    %186 = vector.shape_cast %185 : vector<64xf32> to vector<64x1xf32>
    %cst_63 = arith.constant 6.400000e+01 : f32
    %187 = vector.broadcast %cst_63 : f32 to vector<64x1xf32>
    %188 = arith.divf %186, %187 : vector<64x1xf32>
    %189 = vector.broadcast %188 : vector<64x1xf32> to vector<64x64xf32>
    %190 = arith.subf %182, %189 : vector<64x64xf32>
    %191 = arith.mulf %190, %190 : vector<64x64xf32>
    %cst_64 = arith.constant dense<0.000000e+00> : vector<64xf32>
    %192 = vector.multi_reduction <add>, %191, %cst_64 [1] : vector<64x64xf32> to vector<64xf32>
    %193 = vector.shape_cast %192 : vector<64xf32> to vector<64x1xf32>
    %cst_65 = arith.constant 6.400000e+01 : f32
    %194 = vector.broadcast %cst_65 : f32 to vector<64x1xf32>
    %195 = arith.divf %193, %194 : vector<64x1xf32>
    %196 = vector.broadcast %188 : vector<64x1xf32> to vector<64x64xf32>
    %197 = arith.subf %182, %196 : vector<64x64xf32>
    %cst_66 = arith.constant 9.99999974E-6 : f32
    %198 = vector.broadcast %cst_66 : f32 to vector<64x1xf32>
    %199 = arith.addf %195, %198 : vector<64x1xf32>
    %200 = math.rsqrt %199 : vector<64x1xf32>
    %201 = vector.broadcast %200 : vector<64x1xf32> to vector<64x64xf32>
    %202 = arith.mulf %197, %201 : vector<64x64xf32>
    %203 = vector.broadcast %183 : vector<1x64xf32> to vector<64x64xf32>
    %204 = arith.mulf %202, %203 : vector<64x64xf32>
    %205 = vector.broadcast %184 : vector<1x64xf32> to vector<64x64xf32>
    %206 = arith.addf %204, %205 : vector<64x64xf32>
    %207 = arith.truncf %206 : vector<64x64xf32> to vector<64x64xbf16>
    %c0_67 = arith.constant 0 : index
    %c0_68 = arith.constant 0 : index
    %208 = vector.load %arg10[%c0_67, %c0_68] : memref<64x64xbf16, #tpu.memory_space<vmem>>, vector<64x64xbf16>
    %cst_69 = arith.constant dense<0.000000e+00> : vector<64x64xf32>
    %209 = tpu.matmul %207, %208, %cst_69 {dimension_numbers = #tpu.dot_dimension_numbers<[1], [0], [0], [1], [0, 0, 1, 1], [], []>} : vector<64x64xbf16>, vector<64x64xbf16>, vector<64x64xf32> -> vector<64x64xf32>
    %c0_70 = arith.constant 0 : index
    %c0_71 = arith.constant 0 : index
    %210 = vector.load %arg11[%c0_70, %c0_71] : memref<64x64xbf16, #tpu.memory_space<vmem>>, vector<64x64xbf16>
    %cst_72 = arith.constant dense<0.000000e+00> : vector<8x64xf32>
    %211 = tpu.matmul %4, %210, %cst_72 {dimension_numbers = #tpu.dot_dimension_numbers<[1], [0], [0], [1], [0, 0, 1, 1], [], []>} : vector<8x64xbf16>, vector<64x64xbf16>, vector<8x64xf32> -> vector<8x64xf32>
    %c0_73 = arith.constant 0 : index
    %c0_74 = arith.constant 0 : index
    %212 = vector.load %arg12[%c0_73, %c0_74] : memref<64x64xbf16, #tpu.memory_space<vmem>>, vector<64x64xbf16>
    %cst_75 = arith.constant dense<0.000000e+00> : vector<8x64xf32>
    %213 = tpu.matmul %4, %212, %cst_75 {dimension_numbers = #tpu.dot_dimension_numbers<[1], [0], [0], [1], [0, 0, 1, 1], [], []>} : vector<8x64xbf16>, vector<64x64xbf16>, vector<8x64xf32> -> vector<8x64xf32>
    %214 = tpu.iota {dimensions = array<i32: 1>} : vector<1x64xi32>
    %cst_76 = arith.constant 0.000000e+00 : f32
    %215 = vector.broadcast %cst_76 : f32 to vector<64x64xf32>
    %c0_i32_77 = arith.constant 0 : i32
    %216 = vector.broadcast %c0_i32_77 : i32 to vector<1x64xi32>
    %217 = arith.cmpi sge, %214, %216 : vector<1x64xi32>
    %c16_i32_78 = arith.constant 16 : i32
    %218 = vector.broadcast %c16_i32_78 : i32 to vector<1x64xi32>
    %219 = arith.cmpi slt, %214, %218 : vector<1x64xi32>
    %220 = arith.andi %217, %219 : vector<1x64xi1>
    %cst_79 = arith.constant 0.000000e+00 : f32
    %221 = vector.shape_cast %220 : vector<1x64xi1> to vector<1x64xi1>
    %222 = vector.broadcast %221 : vector<1x64xi1> to vector<64x64xi1>
    %223 = vector.broadcast %cst_79 : f32 to vector<64x64xf32>
    %224 = arith.select %222, %209, %223 : vector<64x64xi1>, vector<64x64xf32>
    %225 = arith.truncf %224 : vector<64x64xf32> to vector<64x64xbf16>
    %cst_80 = arith.constant 0.000000e+00 : f32
    %226 = vector.shape_cast %220 : vector<1x64xi1> to vector<1x64xi1>
    %227 = vector.broadcast %226 : vector<1x64xi1> to vector<8x64xi1>
    %228 = vector.broadcast %cst_80 : f32 to vector<8x64xf32>
    %229 = arith.select %227, %211, %228 : vector<8x64xi1>, vector<8x64xf32>
    %230 = arith.truncf %229 : vector<8x64xf32> to vector<8x64xbf16>
    %cst_81 = arith.constant 0.000000e+00 : f32
    %231 = vector.shape_cast %220 : vector<1x64xi1> to vector<1x64xi1>
    %232 = vector.broadcast %231 : vector<1x64xi1> to vector<8x64xi1>
    %233 = vector.broadcast %cst_81 : f32 to vector<8x64xf32>
    %234 = arith.select %232, %213, %233 : vector<8x64xi1>, vector<8x64xf32>
    %235 = arith.truncf %234 : vector<8x64xf32> to vector<8x64xbf16>
    %cst_82 = arith.constant dense<0.000000e+00> : vector<64x8xf32>
    %236 = tpu.matmul %225, %230, %cst_82 {dimension_numbers = #tpu.dot_dimension_numbers<[1], [1], [0], [0], [0, 0, 1, 0], [], []>} : vector<64x64xbf16>, vector<8x64xbf16>, vector<64x8xf32> -> vector<64x8xf32>
    %cst_83 = arith.constant 2.500000e-01 : f32
    %237 = vector.broadcast %cst_83 : f32 to vector<64x8xf32>
    %238 = arith.mulf %236, %237 : vector<64x8xf32>
    %cst_84 = arith.constant dense<0xFF800000> : vector<64xf32>
    %239 = vector.multi_reduction <maximumf>, %238, %cst_84 [1] : vector<64x8xf32> to vector<64xf32>
    %240 = vector.shape_cast %239 : vector<64xf32> to vector<64x1xf32>
    %241 = vector.broadcast %240 : vector<64x1xf32> to vector<64x8xf32>
    %242 = arith.subf %238, %241 : vector<64x8xf32>
    %243 = math.exp %242 : vector<64x8xf32>
    %cst_85 = arith.constant dense<0.000000e+00> : vector<64xf32>
    %244 = vector.multi_reduction <add>, %243, %cst_85 [1] : vector<64x8xf32> to vector<64xf32>
    %245 = vector.shape_cast %244 : vector<64xf32> to vector<64x1xf32>
    %246 = tpu.reciprocal %245 {approx = true} : vector<64x1xf32> -> vector<64x1xf32>
    %247 = vector.broadcast %246 : vector<64x1xf32> to vector<64x8xf32>
    %248 = arith.mulf %243, %247 : vector<64x8xf32>
    %249 = arith.truncf %248 : vector<64x8xf32> to vector<64x8xbf16>
    %cst_86 = arith.constant dense<0.000000e+00> : vector<64x64xf32>
    %250 = tpu.matmul %249, %235, %cst_86 {dimension_numbers = #tpu.dot_dimension_numbers<[1], [0], [0], [1], [0, 0, 1, 1], [], []>} : vector<64x8xbf16>, vector<8x64xbf16>, vector<64x64xf32> -> vector<64x64xf32>
    %251 = arith.addf %215, %250 : vector<64x64xf32>
    %c16_i32_87 = arith.constant 16 : i32
    %252 = vector.broadcast %c16_i32_87 : i32 to vector<1x64xi32>
    %253 = arith.cmpi sge, %214, %252 : vector<1x64xi32>
    %c32_i32_88 = arith.constant 32 : i32
    %254 = vector.broadcast %c32_i32_88 : i32 to vector<1x64xi32>
    %255 = arith.cmpi slt, %214, %254 : vector<1x64xi32>
    %256 = arith.andi %253, %255 : vector<1x64xi1>
    %cst_89 = arith.constant 0.000000e+00 : f32
    %257 = vector.shape_cast %256 : vector<1x64xi1> to vector<1x64xi1>
    %258 = vector.broadcast %257 : vector<1x64xi1> to vector<64x64xi1>
    %259 = vector.broadcast %cst_89 : f32 to vector<64x64xf32>
    %260 = arith.select %258, %209, %259 : vector<64x64xi1>, vector<64x64xf32>
    %261 = arith.truncf %260 : vector<64x64xf32> to vector<64x64xbf16>
    %cst_90 = arith.constant 0.000000e+00 : f32
    %262 = vector.shape_cast %256 : vector<1x64xi1> to vector<1x64xi1>
    %263 = vector.broadcast %262 : vector<1x64xi1> to vector<8x64xi1>
    %264 = vector.broadcast %cst_90 : f32 to vector<8x64xf32>
    %265 = arith.select %263, %211, %264 : vector<8x64xi1>, vector<8x64xf32>
    %266 = arith.truncf %265 : vector<8x64xf32> to vector<8x64xbf16>
    %cst_91 = arith.constant 0.000000e+00 : f32
    %267 = vector.shape_cast %256 : vector<1x64xi1> to vector<1x64xi1>
    %268 = vector.broadcast %267 : vector<1x64xi1> to vector<8x64xi1>
    %269 = vector.broadcast %cst_91 : f32 to vector<8x64xf32>
    %270 = arith.select %268, %213, %269 : vector<8x64xi1>, vector<8x64xf32>
    %271 = arith.truncf %270 : vector<8x64xf32> to vector<8x64xbf16>
    %cst_92 = arith.constant dense<0.000000e+00> : vector<64x8xf32>
    %272 = tpu.matmul %261, %266, %cst_92 {dimension_numbers = #tpu.dot_dimension_numbers<[1], [1], [0], [0], [0, 0, 1, 0], [], []>} : vector<64x64xbf16>, vector<8x64xbf16>, vector<64x8xf32> -> vector<64x8xf32>
    %cst_93 = arith.constant 2.500000e-01 : f32
    %273 = vector.broadcast %cst_93 : f32 to vector<64x8xf32>
    %274 = arith.mulf %272, %273 : vector<64x8xf32>
    %cst_94 = arith.constant dense<0xFF800000> : vector<64xf32>
    %275 = vector.multi_reduction <maximumf>, %274, %cst_94 [1] : vector<64x8xf32> to vector<64xf32>
    %276 = vector.shape_cast %275 : vector<64xf32> to vector<64x1xf32>
    %277 = vector.broadcast %276 : vector<64x1xf32> to vector<64x8xf32>
    %278 = arith.subf %274, %277 : vector<64x8xf32>
    %279 = math.exp %278 : vector<64x8xf32>
    %cst_95 = arith.constant dense<0.000000e+00> : vector<64xf32>
    %280 = vector.multi_reduction <add>, %279, %cst_95 [1] : vector<64x8xf32> to vector<64xf32>
    %281 = vector.shape_cast %280 : vector<64xf32> to vector<64x1xf32>
    %282 = tpu.reciprocal %281 {approx = true} : vector<64x1xf32> -> vector<64x1xf32>
    %283 = vector.broadcast %282 : vector<64x1xf32> to vector<64x8xf32>
    %284 = arith.mulf %279, %283 : vector<64x8xf32>
    %285 = arith.truncf %284 : vector<64x8xf32> to vector<64x8xbf16>
    %cst_96 = arith.constant dense<0.000000e+00> : vector<64x64xf32>
    %286 = tpu.matmul %285, %271, %cst_96 {dimension_numbers = #tpu.dot_dimension_numbers<[1], [0], [0], [1], [0, 0, 1, 1], [], []>} : vector<64x8xbf16>, vector<8x64xbf16>, vector<64x64xf32> -> vector<64x64xf32>
    %287 = arith.addf %251, %286 : vector<64x64xf32>
    %c32_i32_97 = arith.constant 32 : i32
    %288 = vector.broadcast %c32_i32_97 : i32 to vector<1x64xi32>
    %289 = arith.cmpi sge, %214, %288 : vector<1x64xi32>
    %c48_i32_98 = arith.constant 48 : i32
    %290 = vector.broadcast %c48_i32_98 : i32 to vector<1x64xi32>
    %291 = arith.cmpi slt, %214, %290 : vector<1x64xi32>
    %292 = arith.andi %289, %291 : vector<1x64xi1>
    %cst_99 = arith.constant 0.000000e+00 : f32
    %293 = vector.shape_cast %292 : vector<1x64xi1> to vector<1x64xi1>
    %294 = vector.broadcast %293 : vector<1x64xi1> to vector<64x64xi1>
    %295 = vector.broadcast %cst_99 : f32 to vector<64x64xf32>
    %296 = arith.select %294, %209, %295 : vector<64x64xi1>, vector<64x64xf32>
    %297 = arith.truncf %296 : vector<64x64xf32> to vector<64x64xbf16>
    %cst_100 = arith.constant 0.000000e+00 : f32
    %298 = vector.shape_cast %292 : vector<1x64xi1> to vector<1x64xi1>
    %299 = vector.broadcast %298 : vector<1x64xi1> to vector<8x64xi1>
    %300 = vector.broadcast %cst_100 : f32 to vector<8x64xf32>
    %301 = arith.select %299, %211, %300 : vector<8x64xi1>, vector<8x64xf32>
    %302 = arith.truncf %301 : vector<8x64xf32> to vector<8x64xbf16>
    %cst_101 = arith.constant 0.000000e+00 : f32
    %303 = vector.shape_cast %292 : vector<1x64xi1> to vector<1x64xi1>
    %304 = vector.broadcast %303 : vector<1x64xi1> to vector<8x64xi1>
    %305 = vector.broadcast %cst_101 : f32 to vector<8x64xf32>
    %306 = arith.select %304, %213, %305 : vector<8x64xi1>, vector<8x64xf32>
    %307 = arith.truncf %306 : vector<8x64xf32> to vector<8x64xbf16>
    %cst_102 = arith.constant dense<0.000000e+00> : vector<64x8xf32>
    %308 = tpu.matmul %297, %302, %cst_102 {dimension_numbers = #tpu.dot_dimension_numbers<[1], [1], [0], [0], [0, 0, 1, 0], [], []>} : vector<64x64xbf16>, vector<8x64xbf16>, vector<64x8xf32> -> vector<64x8xf32>
    %cst_103 = arith.constant 2.500000e-01 : f32
    %309 = vector.broadcast %cst_103 : f32 to vector<64x8xf32>
    %310 = arith.mulf %308, %309 : vector<64x8xf32>
    %cst_104 = arith.constant dense<0xFF800000> : vector<64xf32>
    %311 = vector.multi_reduction <maximumf>, %310, %cst_104 [1] : vector<64x8xf32> to vector<64xf32>
    %312 = vector.shape_cast %311 : vector<64xf32> to vector<64x1xf32>
    %313 = vector.broadcast %312 : vector<64x1xf32> to vector<64x8xf32>
    %314 = arith.subf %310, %313 : vector<64x8xf32>
    %315 = math.exp %314 : vector<64x8xf32>
    %cst_105 = arith.constant dense<0.000000e+00> : vector<64xf32>
    %316 = vector.multi_reduction <add>, %315, %cst_105 [1] : vector<64x8xf32> to vector<64xf32>
    %317 = vector.shape_cast %316 : vector<64xf32> to vector<64x1xf32>
    %318 = tpu.reciprocal %317 {approx = true} : vector<64x1xf32> -> vector<64x1xf32>
    %319 = vector.broadcast %318 : vector<64x1xf32> to vector<64x8xf32>
    %320 = arith.mulf %315, %319 : vector<64x8xf32>
    %321 = arith.truncf %320 : vector<64x8xf32> to vector<64x8xbf16>
    %cst_106 = arith.constant dense<0.000000e+00> : vector<64x64xf32>
    %322 = tpu.matmul %321, %307, %cst_106 {dimension_numbers = #tpu.dot_dimension_numbers<[1], [0], [0], [1], [0, 0, 1, 1], [], []>} : vector<64x8xbf16>, vector<8x64xbf16>, vector<64x64xf32> -> vector<64x64xf32>
    %323 = arith.addf %287, %322 : vector<64x64xf32>
    %c48_i32_107 = arith.constant 48 : i32
    %324 = vector.broadcast %c48_i32_107 : i32 to vector<1x64xi32>
    %325 = arith.cmpi sge, %214, %324 : vector<1x64xi32>
    %c64_i32_108 = arith.constant 64 : i32
    %326 = vector.broadcast %c64_i32_108 : i32 to vector<1x64xi32>
    %327 = arith.cmpi slt, %214, %326 : vector<1x64xi32>
    %328 = arith.andi %325, %327 : vector<1x64xi1>
    %cst_109 = arith.constant 0.000000e+00 : f32
    %329 = vector.shape_cast %328 : vector<1x64xi1> to vector<1x64xi1>
    %330 = vector.broadcast %329 : vector<1x64xi1> to vector<64x64xi1>
    %331 = vector.broadcast %cst_109 : f32 to vector<64x64xf32>
    %332 = arith.select %330, %209, %331 : vector<64x64xi1>, vector<64x64xf32>
    %333 = arith.truncf %332 : vector<64x64xf32> to vector<64x64xbf16>
    %cst_110 = arith.constant 0.000000e+00 : f32
    %334 = vector.shape_cast %328 : vector<1x64xi1> to vector<1x64xi1>
    %335 = vector.broadcast %334 : vector<1x64xi1> to vector<8x64xi1>
    %336 = vector.broadcast %cst_110 : f32 to vector<8x64xf32>
    %337 = arith.select %335, %211, %336 : vector<8x64xi1>, vector<8x64xf32>
    %338 = arith.truncf %337 : vector<8x64xf32> to vector<8x64xbf16>
    %cst_111 = arith.constant 0.000000e+00 : f32
    %339 = vector.shape_cast %328 : vector<1x64xi1> to vector<1x64xi1>
    %340 = vector.broadcast %339 : vector<1x64xi1> to vector<8x64xi1>
    %341 = vector.broadcast %cst_111 : f32 to vector<8x64xf32>
    %342 = arith.select %340, %213, %341 : vector<8x64xi1>, vector<8x64xf32>
    %343 = arith.truncf %342 : vector<8x64xf32> to vector<8x64xbf16>
    %cst_112 = arith.constant dense<0.000000e+00> : vector<64x8xf32>
    %344 = tpu.matmul %333, %338, %cst_112 {dimension_numbers = #tpu.dot_dimension_numbers<[1], [1], [0], [0], [0, 0, 1, 0], [], []>} : vector<64x64xbf16>, vector<8x64xbf16>, vector<64x8xf32> -> vector<64x8xf32>
    %cst_113 = arith.constant 2.500000e-01 : f32
    %345 = vector.broadcast %cst_113 : f32 to vector<64x8xf32>
    %346 = arith.mulf %344, %345 : vector<64x8xf32>
    %cst_114 = arith.constant dense<0xFF800000> : vector<64xf32>
    %347 = vector.multi_reduction <maximumf>, %346, %cst_114 [1] : vector<64x8xf32> to vector<64xf32>
    %348 = vector.shape_cast %347 : vector<64xf32> to vector<64x1xf32>
    %349 = vector.broadcast %348 : vector<64x1xf32> to vector<64x8xf32>
    %350 = arith.subf %346, %349 : vector<64x8xf32>
    %351 = math.exp %350 : vector<64x8xf32>
    %cst_115 = arith.constant dense<0.000000e+00> : vector<64xf32>
    %352 = vector.multi_reduction <add>, %351, %cst_115 [1] : vector<64x8xf32> to vector<64xf32>
    %353 = vector.shape_cast %352 : vector<64xf32> to vector<64x1xf32>
    %354 = tpu.reciprocal %353 {approx = true} : vector<64x1xf32> -> vector<64x1xf32>
    %355 = vector.broadcast %354 : vector<64x1xf32> to vector<64x8xf32>
    %356 = arith.mulf %351, %355 : vector<64x8xf32>
    %357 = arith.truncf %356 : vector<64x8xf32> to vector<64x8xbf16>
    %cst_116 = arith.constant dense<0.000000e+00> : vector<64x64xf32>
    %358 = tpu.matmul %357, %343, %cst_116 {dimension_numbers = #tpu.dot_dimension_numbers<[1], [0], [0], [1], [0, 0, 1, 1], [], []>} : vector<64x8xbf16>, vector<8x64xbf16>, vector<64x64xf32> -> vector<64x64xf32>
    %359 = arith.addf %323, %358 : vector<64x64xf32>
    %360 = arith.addf %182, %359 : vector<64x64xf32>
    %c0_117 = arith.constant 0 : index
    %c0_118 = arith.constant 0 : index
    %361 = vector.load %arg13[%c0_117, %c0_118] : memref<1x64xf32, #tpu.memory_space<vmem>>, vector<1x64xf32>
    %c0_119 = arith.constant 0 : index
    %c0_120 = arith.constant 0 : index
    %362 = vector.load %arg14[%c0_119, %c0_120] : memref<1x64xf32, #tpu.memory_space<vmem>>, vector<1x64xf32>
    %cst_121 = arith.constant dense<0.000000e+00> : vector<64xf32>
    %363 = vector.multi_reduction <add>, %360, %cst_121 [1] : vector<64x64xf32> to vector<64xf32>
    %364 = vector.shape_cast %363 : vector<64xf32> to vector<64x1xf32>
    %cst_122 = arith.constant 6.400000e+01 : f32
    %365 = vector.broadcast %cst_122 : f32 to vector<64x1xf32>
    %366 = arith.divf %364, %365 : vector<64x1xf32>
    %367 = vector.broadcast %366 : vector<64x1xf32> to vector<64x64xf32>
    %368 = arith.subf %360, %367 : vector<64x64xf32>
    %369 = arith.mulf %368, %368 : vector<64x64xf32>
    %cst_123 = arith.constant dense<0.000000e+00> : vector<64xf32>
    %370 = vector.multi_reduction <add>, %369, %cst_123 [1] : vector<64x64xf32> to vector<64xf32>
    %371 = vector.shape_cast %370 : vector<64xf32> to vector<64x1xf32>
    %cst_124 = arith.constant 6.400000e+01 : f32
    %372 = vector.broadcast %cst_124 : f32 to vector<64x1xf32>
    %373 = arith.divf %371, %372 : vector<64x1xf32>
    %374 = vector.broadcast %366 : vector<64x1xf32> to vector<64x64xf32>
    %375 = arith.subf %360, %374 : vector<64x64xf32>
    %cst_125 = arith.constant 9.99999974E-6 : f32
    %376 = vector.broadcast %cst_125 : f32 to vector<64x1xf32>
    %377 = arith.addf %373, %376 : vector<64x1xf32>
    %378 = math.rsqrt %377 : vector<64x1xf32>
    %379 = vector.broadcast %378 : vector<64x1xf32> to vector<64x64xf32>
    %380 = arith.mulf %375, %379 : vector<64x64xf32>
    %381 = vector.broadcast %361 : vector<1x64xf32> to vector<64x64xf32>
    %382 = arith.mulf %380, %381 : vector<64x64xf32>
    %383 = vector.broadcast %362 : vector<1x64xf32> to vector<64x64xf32>
    %384 = arith.addf %382, %383 : vector<64x64xf32>
    %385 = arith.truncf %384 : vector<64x64xf32> to vector<64x64xbf16>
    %c0_126 = arith.constant 0 : index
    %c0_127 = arith.constant 0 : index
    %386 = vector.load %arg15[%c0_126, %c0_127] : memref<64x128xbf16, #tpu.memory_space<vmem>>, vector<64x128xbf16>
    %cst_128 = arith.constant dense<0.000000e+00> : vector<64x128xf32>
    %387 = tpu.matmul %385, %386, %cst_128 {dimension_numbers = #tpu.dot_dimension_numbers<[1], [0], [0], [1], [0, 0, 1, 1], [], []>} : vector<64x64xbf16>, vector<64x128xbf16>, vector<64x128xf32> -> vector<64x128xf32>
    %c0_129 = arith.constant 0 : index
    %c0_130 = arith.constant 0 : index
    %388 = vector.load %arg16[%c0_129, %c0_130] : memref<1x128xf32, #tpu.memory_space<vmem>>, vector<1x128xf32>
    %389 = vector.broadcast %388 : vector<1x128xf32> to vector<64x128xf32>
    %390 = arith.addf %387, %389 : vector<64x128xf32>
    %391 = vector.shape_cast %390 : vector<64x128xf32> to vector<8x8x128xf32>
    %cst_131 = arith.constant 0.000000e+00 : f32
    %392 = vector.broadcast %cst_131 : f32 to vector<10x24x128xf32>
    %c0_132 = arith.constant 0 : index
    %c0_133 = arith.constant 0 : index
    %c0_134 = arith.constant 0 : index
    %393 = vector.load %arg22[%c0_132, %c0_133, %c0_134] : memref<10x24x128xf32, #tpu.memory_space<vmem>>, vector<10x24x128xf32>
    tpu.vector_store %arg22[%c0_132, %c0_133, %c0_134], %392 {strides = array<i32>} : memref<10x24x128xf32, #tpu.memory_space<vmem>>, vector<10x24x128xf32>,
    %c1 = arith.constant 1 : index
    %c8 = arith.constant 8 : index
    %c0_135 = arith.constant 0 : index
    %394 = vector.load %arg22[%c1, %c8, %c0_135] : memref<10x24x128xf32, #tpu.memory_space<vmem>>, vector<8x8x128xf32>
    tpu.vector_store %arg22[%c1, %c8, %c0_135], %391 {strides = array<i32>} : memref<10x24x128xf32, #tpu.memory_space<vmem>>, vector<8x8x128xf32>,
    %c0_136 = arith.constant 0 : index
    %c0_137 = arith.constant 0 : index
    %c0_138 = arith.constant 0 : index
    %395 = vector.load %arg22[%c0_136, %c0_137, %c0_138] : memref<10x24x128xf32, #tpu.memory_space<vmem>>, vector<10x24x128xf32>
    %cst_139 = arith.constant 0.000000e+00 : f32
    %396 = vector.broadcast %cst_139 : f32 to vector<8x8x128xf32>
    %c0_140 = arith.constant 0 : index
    %c0_141 = arith.constant 0 : index
    %397 = vector.load %arg18[%c0_140, %c0_141] : memref<1x128xf32, #tpu.memory_space<vmem>>, vector<1x128xf32>
    %398 = vector.shape_cast %397 : vector<1x128xf32> to vector<1x1x128xf32>
    %399 = vector.broadcast %398 : vector<1x1x128xf32> to vector<8x8x128xf32>
    %400 = arith.addf %396, %399 : vector<8x8x128xf32>
    %401 = vector.extract_strided_slice %395 {offsets = [0, 7, 0], sizes = [8, 8, 128], strides = [1, 1, 1]} : vector<10x24x128xf32> to vector<8x8x128xf32>
    %c0_142 = arith.constant 0 : index
    %c0_143 = arith.constant 0 : index
    %402 = vector.load %arg17[%c0_142, %c0_143] : memref<9x128xf32, #tpu.memory_space<vmem>>, vector<1x128xf32>
    %403 = vector.shape_cast %402 : vector<1x128xf32> to vector<128xf32>
    %404 = vector.shape_cast %403 : vector<128xf32> to vector<1x1x128xf32>
    %405 = vector.broadcast %404 : vector<1x1x128xf32> to vector<8x8x128xf32>
    %406 = arith.mulf %401, %405 : vector<8x8x128xf32>
    %407 = arith.addf %400, %406 : vector<8x8x128xf32>
    %408 = vector.extract_strided_slice %395 {offsets = [0, 8, 0], sizes = [8, 8, 128], strides = [1, 1, 1]} : vector<10x24x128xf32> to vector<8x8x128xf32>
    %c1_144 = arith.constant 1 : index
    %c0_145 = arith.constant 0 : index
    %409 = vector.load %arg17[%c1_144, %c0_145] : memref<9x128xf32, #tpu.memory_space<vmem>>, vector<1x128xf32>
    %410 = vector.shape_cast %409 : vector<1x128xf32> to vector<128xf32>
    %411 = vector.shape_cast %410 : vector<128xf32> to vector<1x1x128xf32>
    %412 = vector.broadcast %411 : vector<1x1x128xf32> to vector<8x8x128xf32>
    %413 = arith.mulf %408, %412 : vector<8x8x128xf32>
    %414 = arith.addf %407, %413 : vector<8x8x128xf32>
    %415 = vector.extract_strided_slice %395 {offsets = [0, 9, 0], sizes = [8, 8, 128], strides = [1, 1, 1]} : vector<10x24x128xf32> to vector<8x8x128xf32>
    %c2 = arith.constant 2 : index
    %c0_146 = arith.constant 0 : index
    %416 = vector.load %arg17[%c2, %c0_146] : memref<9x128xf32, #tpu.memory_space<vmem>>, vector<1x128xf32>
    %417 = vector.shape_cast %416 : vector<1x128xf32> to vector<128xf32>
    %418 = vector.shape_cast %417 : vector<128xf32> to vector<1x1x128xf32>
    %419 = vector.broadcast %418 : vector<1x1x128xf32> to vector<8x8x128xf32>
    %420 = arith.mulf %415, %419 : vector<8x8x128xf32>
    %421 = arith.addf %414, %420 : vector<8x8x128xf32>
    %422 = vector.extract_strided_slice %395 {offsets = [1, 7, 0], sizes = [8, 8, 128], strides = [1, 1, 1]} : vector<10x24x128xf32> to vector<8x8x128xf32>
    %c3 = arith.constant 3 : index
    %c0_147 = arith.constant 0 : index
    %423 = vector.load %arg17[%c3, %c0_147] : memref<9x128xf32, #tpu.memory_space<vmem>>, vector<1x128xf32>
    %424 = vector.shape_cast %423 : vector<1x128xf32> to vector<128xf32>
    %425 = vector.shape_cast %424 : vector<128xf32> to vector<1x1x128xf32>
    %426 = vector.broadcast %425 : vector<1x1x128xf32> to vector<8x8x128xf32>
    %427 = arith.mulf %422, %426 : vector<8x8x128xf32>
    %428 = arith.addf %421, %427 : vector<8x8x128xf32>
    %429 = vector.extract_strided_slice %395 {offsets = [1, 8, 0], sizes = [8, 8, 128], strides = [1, 1, 1]} : vector<10x24x128xf32> to vector<8x8x128xf32>
    %c4 = arith.constant 4 : index
    %c0_148 = arith.constant 0 : index
    %430 = vector.load %arg17[%c4, %c0_148] : memref<9x128xf32, #tpu.memory_space<vmem>>, vector<1x128xf32>
    %431 = vector.shape_cast %430 : vector<1x128xf32> to vector<128xf32>
    %432 = vector.shape_cast %431 : vector<128xf32> to vector<1x1x128xf32>
    %433 = vector.broadcast %432 : vector<1x1x128xf32> to vector<8x8x128xf32>
    %434 = arith.mulf %429, %433 : vector<8x8x128xf32>
    %435 = arith.addf %428, %434 : vector<8x8x128xf32>
    %436 = vector.extract_strided_slice %395 {offsets = [1, 9, 0], sizes = [8, 8, 128], strides = [1, 1, 1]} : vector<10x24x128xf32> to vector<8x8x128xf32>
    %c5 = arith.constant 5 : index
    %c0_149 = arith.constant 0 : index
    %437 = vector.load %arg17[%c5, %c0_149] : memref<9x128xf32, #tpu.memory_space<vmem>>, vector<1x128xf32>
    %438 = vector.shape_cast %437 : vector<1x128xf32> to vector<128xf32>
    %439 = vector.shape_cast %438 : vector<128xf32> to vector<1x1x128xf32>
    %440 = vector.broadcast %439 : vector<1x1x128xf32> to vector<8x8x128xf32>
    %441 = arith.mulf %436, %440 : vector<8x8x128xf32>
    %442 = arith.addf %435, %441 : vector<8x8x128xf32>
    %443 = vector.extract_strided_slice %395 {offsets = [2, 7, 0], sizes = [8, 8, 128], strides = [1, 1, 1]} : vector<10x24x128xf32> to vector<8x8x128xf32>
    %c6 = arith.constant 6 : index
    %c0_150 = arith.constant 0 : index
    %444 = vector.load %arg17[%c6, %c0_150] : memref<9x128xf32, #tpu.memory_space<vmem>>, vector<1x128xf32>
    %445 = vector.shape_cast %444 : vector<1x128xf32> to vector<128xf32>
    %446 = vector.shape_cast %445 : vector<128xf32> to vector<1x1x128xf32>
    %447 = vector.broadcast %446 : vector<1x1x128xf32> to vector<8x8x128xf32>
    %448 = arith.mulf %443, %447 : vector<8x8x128xf32>
    %449 = arith.addf %442, %448 : vector<8x8x128xf32>
    %450 = vector.extract_strided_slice %395 {offsets = [2, 8, 0], sizes = [8, 8, 128], strides = [1, 1, 1]} : vector<10x24x128xf32> to vector<8x8x128xf32>
    %c7 = arith.constant 7 : index
    %c0_151 = arith.constant 0 : index
    %451 = vector.load %arg17[%c7, %c0_151] : memref<9x128xf32, #tpu.memory_space<vmem>>, vector<1x128xf32>
    %452 = vector.shape_cast %451 : vector<1x128xf32> to vector<128xf32>
    %453 = vector.shape_cast %452 : vector<128xf32> to vector<1x1x128xf32>
    %454 = vector.broadcast %453 : vector<1x1x128xf32> to vector<8x8x128xf32>
    %455 = arith.mulf %450, %454 : vector<8x8x128xf32>
    %456 = arith.addf %449, %455 : vector<8x8x128xf32>
    %457 = vector.extract_strided_slice %395 {offsets = [2, 9, 0], sizes = [8, 8, 128], strides = [1, 1, 1]} : vector<10x24x128xf32> to vector<8x8x128xf32>
    %c8_152 = arith.constant 8 : index
    %c0_153 = arith.constant 0 : index
    %458 = vector.load %arg17[%c8_152, %c0_153] : memref<9x128xf32, #tpu.memory_space<vmem>>, vector<1x128xf32>
    %459 = vector.shape_cast %458 : vector<1x128xf32> to vector<128xf32>
    %460 = vector.shape_cast %459 : vector<128xf32> to vector<1x1x128xf32>
    %461 = vector.broadcast %460 : vector<1x1x128xf32> to vector<8x8x128xf32>
    %462 = arith.mulf %457, %461 : vector<8x8x128xf32>
    %463 = arith.addf %456, %462 : vector<8x8x128xf32>
    %464 = arith.mulf %463, %463 : vector<8x8x128xf32>
    %465 = arith.mulf %463, %464 : vector<8x8x128xf32>
    %cst_154 = arith.constant 4.471500e-02 : f32
    %466 = vector.broadcast %cst_154 : f32 to vector<8x8x128xf32>
    %467 = arith.mulf %466, %465 : vector<8x8x128xf32>
    %468 = arith.addf %463, %467 : vector<8x8x128xf32>
    %cst_155 = arith.constant 0.797884583 : f32
    %469 = vector.broadcast %cst_155 : f32 to vector<8x8x128xf32>
    %470 = arith.mulf %469, %468 : vector<8x8x128xf32>
    %471 = math.tanh %470 : vector<8x8x128xf32>
    %cst_156 = arith.constant 1.000000e+00 : f32
    %472 = vector.broadcast %cst_156 : f32 to vector<8x8x128xf32>
    %473 = arith.addf %472, %471 : vector<8x8x128xf32>
    %cst_157 = arith.constant 5.000000e-01 : f32
    %474 = vector.broadcast %cst_157 : f32 to vector<8x8x128xf32>
    %475 = arith.mulf %474, %473 : vector<8x8x128xf32>
    %476 = arith.mulf %463, %475 : vector<8x8x128xf32>
    %477 = vector.shape_cast %476 : vector<8x8x128xf32> to vector<64x128xf32>
    %478 = arith.truncf %477 : vector<64x128xf32> to vector<64x128xbf16>
    %c0_158 = arith.constant 0 : index
    %c0_159 = arith.constant 0 : index
    %479 = vector.load %arg19[%c0_158, %c0_159] : memref<128x64xbf16, #tpu.memory_space<vmem>>, vector<128x64xbf16>
    %cst_160 = arith.constant dense<0.000000e+00> : vector<64x64xf32>
    %480 = tpu.matmul %478, %479, %cst_160 {dimension_numbers = #tpu.dot_dimension_numbers<[1], [0], [0], [1], [0, 0, 1, 1], [], []>} : vector<64x128xbf16>, vector<128x64xbf16>, vector<64x64xf32> -> vector<64x64xf32>
    %c0_161 = arith.constant 0 : index
    %c0_162 = arith.constant 0 : index
    %481 = vector.load %arg20[%c0_161, %c0_162] : memref<1x64xf32, #tpu.memory_space<vmem>>, vector<1x64xf32>
    %482 = vector.broadcast %481 : vector<1x64xf32> to vector<64x64xf32>
    %483 = arith.addf %480, %482 : vector<64x64xf32>
    %484 = arith.addf %360, %483 : vector<64x64xf32>
    %c0_163 = arith.constant 0 : index
    %c0_164 = arith.constant 0 : index
    %c0_165 = arith.constant 0 : index
    %485 = vector.load %arg21[%c0_163, %c0_164, %c0_165] : memref<1x64x64xf32, #tpu.memory_space<vmem>>, vector<1x64x64xf32>
    %486 = vector.shape_cast %485 : vector<1x64x64xf32> to vector<64x64xf32>
    %487 = vector.shape_cast %484 : vector<64x64xf32> to vector<1x64x64xf32>
    tpu.vector_store %arg21[%c0_163, %c0_164, %c0_165], %487 {strides = array<i32>} : memref<1x64x64xf32, #tpu.memory_space<vmem>>, vector<1x64x64xf32>,
    return
  }
  func.func @transform_0(%arg0: i32) -> (i32, i32, i32) {
    %c0_i32 = arith.constant 0 : i32
    %c0_i32_0 = arith.constant 0 : i32
    %c0_i32_1 = arith.constant 0 : i32
    return %arg0, %c0_i32, %c0_i32_0 : i32, i32, i32
  }
  func.func @transform_1(%arg0: i32) -> (i32, i32, i32) {
    %c0_i32 = arith.constant 0 : i32
    %c0_i32_0 = arith.constant 0 : i32
    %c0_i32_1 = arith.constant 0 : i32
    return %arg0, %c0_i32, %c0_i32_0 : i32, i32, i32
  }
  func.func @transform_2(%arg0: i32) -> (i32, i32) {
    %c0_i32 = arith.constant 0 : i32
    %c0_i32_0 = arith.constant 0 : i32
    %c0_i32_1 = arith.constant 0 : i32
    return %c0_i32, %c0_i32_0 : i32, i32
  }
  func.func @transform_3(%arg0: i32) -> (i32, i32) {
    %c0_i32 = arith.constant 0 : i32
    %c0_i32_0 = arith.constant 0 : i32
    %c0_i32_1 = arith.constant 0 : i32
    return %c0_i32, %c0_i32_0 : i32, i32
  }
  func.func @transform_4(%arg0: i32) -> (i32, i32) {
    %c0_i32 = arith.constant 0 : i32
    %c0_i32_0 = arith.constant 0 : i32
    %c0_i32_1 = arith.constant 0 : i32
    return %c0_i32, %c0_i32_0 : i32, i32
  }
  func.func @transform_5(%arg0: i32) -> (i32, i32) {
    %c0_i32 = arith.constant 0 : i32
    %c0_i32_0 = arith.constant 0 : i32
    %c0_i32_1 = arith.constant 0 : i32
    return %c0_i32, %c0_i32_0 : i32, i32
  }
  func.func @transform_6(%arg0: i32) -> (i32, i32) {
    %c0_i32 = arith.constant 0 : i32
    %c0_i32_0 = arith.constant 0 : i32
    %c0_i32_1 = arith.constant 0 : i32
    return %c0_i32, %c0_i32_0 : i32, i32
  }
  func.func @transform_7(%arg0: i32) -> (i32, i32) {
    %c0_i32 = arith.constant 0 : i32
    %c0_i32_0 = arith.constant 0 : i32
    %c0_i32_1 = arith.constant 0 : i32
    return %c0_i32, %c0_i32_0 : i32, i32
  }
  func.func @transform_8(%arg0: i32) -> (i32, i32) {
    %c0_i32 = arith.constant 0 : i32
    %c0_i32_0 = arith.constant 0 : i32
    %c0_i32_1 = arith.constant 0 : i32
    return %c0_i32, %c0_i32_0 : i32, i32
  }
  func.func @transform_9(%arg0: i32) -> (i32, i32) {
    %c0_i32 = arith.constant 0 : i32
    %c0_i32_0 = arith.constant 0 : i32
    %c0_i32_1 = arith.constant 0 : i32
    return %c0_i32, %c0_i32_0 : i32, i32
  }
  func.func @transform_10(%arg0: i32) -> (i32, i32) {
    %c0_i32 = arith.constant 0 : i32
    %c0_i32_0 = arith.constant 0 : i32
    %c0_i32_1 = arith.constant 0 : i32
    return %c0_i32, %c0_i32_0 : i32, i32
  }
  func.func @transform_11(%arg0: i32) -> (i32, i32) {
    %c0_i32 = arith.constant 0 : i32
    %c0_i32_0 = arith.constant 0 : i32
    %c0_i32_1 = arith.constant 0 : i32
    return %c0_i32, %c0_i32_0 : i32, i32
  }
  func.func @transform_12(%arg0: i32) -> (i32, i32) {
    %c0_i32 = arith.constant 0 : i32
    %c0_i32_0 = arith.constant 0 : i32
    %c0_i32_1 = arith.constant 0 : i32
    return %c0_i32, %c0_i32_0 : i32, i32
  }
  func.func @transform_13(%arg0: i32) -> (i32, i32) {
    %c0_i32 = arith.constant 0 : i32
    %c0_i32_0 = arith.constant 0 : i32
    %c0_i32_1 = arith.constant 0 : i32
    return %c0_i32, %c0_i32_0 : i32, i32
  }
  func.func @transform_14(%arg0: i32) -> (i32, i32) {
    %c0_i32 = arith.constant 0 : i32
    %c0_i32_0 = arith.constant 0 : i32
    %c0_i32_1 = arith.constant 0 : i32
    return %c0_i32, %c0_i32_0 : i32, i32
  }
  func.func @transform_15(%arg0: i32) -> (i32, i32) {
    %c0_i32 = arith.constant 0 : i32
    %c0_i32_0 = arith.constant 0 : i32
    %c0_i32_1 = arith.constant 0 : i32
    return %c0_i32, %c0_i32_0 : i32, i32
  }
  func.func @transform_16(%arg0: i32) -> (i32, i32) {
    %c0_i32 = arith.constant 0 : i32
    %c0_i32_0 = arith.constant 0 : i32
    %c0_i32_1 = arith.constant 0 : i32
    return %c0_i32, %c0_i32_0 : i32, i32
  }
  func.func @transform_17(%arg0: i32) -> (i32, i32) {
    %c0_i32 = arith.constant 0 : i32
    %c0_i32_0 = arith.constant 0 : i32
    %c0_i32_1 = arith.constant 0 : i32
    return %c0_i32, %c0_i32_0 : i32, i32
  }
  func.func @transform_18(%arg0: i32) -> (i32, i32) {
    %c0_i32 = arith.constant 0 : i32
    %c0_i32_0 = arith.constant 0 : i32
    %c0_i32_1 = arith.constant 0 : i32
    return %c0_i32, %c0_i32_0 : i32, i32
  }
  func.func @transform_19(%arg0: i32) -> (i32, i32) {
    %c0_i32 = arith.constant 0 : i32
    %c0_i32_0 = arith.constant 0 : i32
    %c0_i32_1 = arith.constant 0 : i32
    return %c0_i32, %c0_i32_0 : i32, i32
  }
  func.func @transform_20(%arg0: i32) -> (i32, i32, i32) {
    %c0_i32 = arith.constant 0 : i32
    %c0_i32_0 = arith.constant 0 : i32
    %c0_i32_1 = arith.constant 0 : i32
    return %arg0, %c0_i32, %c0_i32_0 : i32, i32, i32
  }
}

</mosaic_0001>

<bundles_post_ra>
// kernel: _lambda_.7
= control target key start
LH: loop header
LB: loop body
LE: loop exit
PB: predicated region body
PF: predicated region fallthrough
CT: control target
= control target key end

     0   :  { %s659_s15 = smov 0   ;;  %s777_s0 = inlined_call_operand.vmem [shape: f32[2,64,64], index: 0, kind: input, shape index: {}]   ;;  %s778_s1 = inlined_call_operand.vmem [shape: f32[1,64], index: 1, kind: input, shape index: {}]   ;;  %s779_s2 = inlined_call_operand.vmem [shape: bf16[64,16], index: 2, kind: input, shape index: {}]   ;;  %s780_s3 = inlined_call_operand.vmem [shape: f32[1,16], index: 3, kind: input, shape index: {}]   ;;  %s781_s4 = inlined_call_operand.vmem [shape: f32[2,64,16], index: 4, kind: output, shape index: {}]  }
   0x1 LB: > { %s527_s16 = sadd.s32 4294967295, %s632_s15   ;;  %p531_p0 = scmp.ge.s32.totalorder %s632_s15, 1  ;;  %s632_s15 = sphi %s659_s15, %s14_s15  }
   0x2   : > { %p162_p1 = scmp.lt.s32.totalorder %s632_s15, 3 }
   0x4   : > { %p163_p2 = pnand %p531_p0, %p162_p1 }
   0x5   : > { %p188_p3 = scmp.lt.s32.totalorder (!%p163_p2), %s527_s16, 1  ;;  %vm215_vm0 = vcmask (!%p163_p2), 523264   ;;  %v590_v24 = vld [vmem:[%s779_s2] sm:$0xff] (!%p163_p2)   ;;  %v591_v25 = vld [vmem:[%s779_s2 + $0x8] sm:$0xff] (!%p163_p2)   ;;  %v592_v26 = vld [vmem:[%s779_s2 + $0x10] sm:$0xff] (!%p163_p2)  }
   0x6   : > { %166 = sbr.rel (%p163_p2) target bundleno = 429 (0x1ad), region = 36  ;;  %558 = vmatprep.subr.bf16.mxu0 (!%p163_p2), %v590_v24  ;;  %574 = vmatprep.subr.bf16.mxu1 (!%p163_p2), %v590_v24  ;;  %v593_v27 = vld [vmem:[%s779_s2 + $0x18] sm:$0xff] (!%p163_p2)  }
   0x7   : > { %559 = vmatpush3.bf16.msra.mxu0 (!%p163_p2), %v590_v24  ;;  %578 = vmatpush3.bf16.msra.mxu1 (!%p163_p2), %v590_v24 }
   0x8   : > { %560 = vmatprep.subr.bf16.mxu0 (!%p163_p2), %v591_v25  ;;  %575 = vmatprep.subr.bf16.mxu1 (!%p163_p2), %v591_v25 }
   0xb   : > { %561 = vmatpush3.bf16.msra.mxu0 (!%p163_p2), %v591_v25  ;;  %579 = vmatpush3.bf16.msra.mxu1 (!%p163_p2), %v591_v25 }
   0xc   : > { %562 = vmatprep.subr.bf16.mxu0 (!%p163_p2), %v592_v26  ;;  %576 = vmatprep.subr.bf16.mxu1 (!%p163_p2), %v592_v26 }
   0xd   : > { %s783_s16 = smov (!%p188_p3, %s527_s16), 1 }
   0xe   : > { %s548_s17 = sshll.u32 %s783_s16, 6 }
   0xf   : > { %s192_s20 = scalar_lea.vmem %s777_s0, %s548_s17  ;;  %563 = vmatpush3.bf16.msra.mxu0 %v592_v26  ;;  %580 = vmatpush3.bf16.msra.mxu1 %v592_v26  ;;  %s197_s9 = scalar_lea.vmem %s781_s4, %s548_s17 }
  0x10   : > { %v675_v0 = vld [vmem:[%s192_s20 + $0x20] sm:$0xff]  ;;  %v679_v2 = vld [vmem:[%s192_s20 + $0x28] sm:$0xff]  ;;  %v691_v8 = vld [vmem:[%s192_s20 + $0x18] sm:$0xff]  ;;  %564 = vmatprep.subr.bf16.mxu0 %v593_v27  ;;  %577 = vmatprep.subr.bf16.mxu1 %v593_v27 }
  0x11   : > { %v677_v1 = vld [vmem:[%s192_s20] sm:$0xff]  ;;  %v211_v3 = vmul.f32 %v675_v0, %v675_v0  ;;  %v212_v5 = vmul.f32 %v679_v2, %v679_v2  ;;  %v687_v6 = vld [vmem:[%s192_s20 + $0x8] sm:$0xff]  ;;  %v693_v9 = vld [vmem:[%s192_s20 + $0x10] sm:$0xff]  ;;  %v210_v14 = vmul.f32 %v691_v8, %v691_v8 }
  0x12   : > { %v207_v4 = vmul.f32 %v677_v1, %v677_v1  ;;  %v208_v7 = vmul.f32 %v687_v6, %v687_v6  ;;  %v209_v15 = vmul.f32 %v693_v9, %v693_v9  ;;  %v703_v16 = vld [vmem:[%s192_s20 + $0x38] sm:$0xff]  ;;  %v705_v17 = vld [vmem:[%s192_s20 + $0x30] sm:$0xff] }
  0x13   : > { %v228_v10 = vsel %vm215_vm0, %v211_v3, 0.0  ;;  %v231_v12 = vsel %vm215_vm0, %v212_v5, 0.0  ;;  %v225_v18 = vsel %vm215_vm0, %v210_v14, 0.0  ;;  %v214_v20 = vmul.f32 %v703_v16, %v703_v16  ;;  %565 = vmatpush3.bf16.msra.mxu0 %v593_v27  ;;  %581 = vmatpush3.bf16.msra.mxu1 %v593_v27 }
  0x14   : > { %v216_v11 = vsel %vm215_vm0, %v207_v4, 0.0  ;;  %229 = vadd.xlane.f32.xlu1 %v228_v10  ;;  %v219_v13 = vsel %vm215_vm0, %v208_v7, 0.0  ;;  %v222_v19 = vsel %vm215_vm0, %v209_v15, 0.0  ;;  %v213_v21 = vmul.f32 %v705_v17, %v705_v17 }
  0x15   : > { %217 = vadd.xlane.f32.xlu0 %v216_v11  ;;  %v237_v22 = vsel %vm215_vm0, %v214_v20, 0.0 }
  0x16   : > { %v234_v23 = vsel %vm215_vm0, %v213_v21, 0.0 }
  0x18   : > { %232 = vadd.xlane.f32.xlu1 %v231_v12 }
  0x19   : > { %220 = vadd.xlane.f32.xlu0 %v219_v13 }
  0x1c   : > { %226 = vadd.xlane.f32.xlu1 %v225_v18 }
  0x1d   : > { %223 = vadd.xlane.f32.xlu0 %v222_v19 }
  0x20   : > { %238 = vadd.xlane.f32.xlu1 %v237_v22 }
  0x21   : > { %235 = vadd.xlane.f32.xlu0 %v234_v23 }
  0xa1   : > { %v230_v28 = vpop.xlane.xlu1 %229 }
  0xa2   : > { %v218_v29 = vpop.xlane.xlu0 %217  ;;  %594 = vrsqrt.f32 %v230_v28  ;;  %vm270_vm1 = vcmp.eq.f32.partialorder %v230_v28, inf  ;;  %vm272_vm2 = vcmp.eq.f32.partialorder %v230_v28, 0.0  ;;  %v273_v39 = vand.u32 2147483648, %v230_v28 }
  0xa3   : > { %596 = vrsqrt.f32 %v218_v29  ;;  %vm242_vm3 = vcmp.eq.f32.partialorder %v218_v29, inf  ;;  %v245_v42 = vand.u32 2147483648, %v218_v29  ;;  %vm244_vm4 = vcmp.eq.f32.partialorder %v218_v29, 0.0 }
  0xa5   : > { %v233_v30 = vpop.xlane.xlu1 %232 }
  0xa6   : > { %v221_v31 = vpop.xlane.xlu0 %220  ;;  %598 = vrsqrt.f32 %v233_v30  ;;  %vm277_vm5 = vcmp.eq.f32.partialorder %v233_v30, inf  ;;  %vm279_vm6 = vcmp.eq.f32.partialorder %v233_v30, 0.0  ;;  %v280_v51 = vand.u32 2147483648, %v233_v30 }
  0xa7   : > { %600 = vrsqrt.f32 %v221_v31  ;;  %vm249_vm7 = vcmp.eq.f32.partialorder %v221_v31, inf  ;;  %v252_v54 = vand.u32 2147483648, %v221_v31  ;;  %vm251_vm8 = vcmp.eq.f32.partialorder %v221_v31, 0.0 }
  0xa9   : > { %v227_v32 = vpop.xlane.xlu1 %226 }
  0xaa   : > { %v224_v33 = vpop.xlane.xlu0 %223  ;;  %602 = vrsqrt.f32 %v227_v32  ;;  %vm263_vm9 = vcmp.eq.f32.partialorder %v227_v32, inf  ;;  %vm265_vm10 = vcmp.eq.f32.partialorder %v227_v32, 0.0  ;;  %v266_v63 = vand.u32 2147483648, %v227_v32 }
  0xab   : > { %604 = vrsqrt.f32 %v224_v33  ;;  %vm256_vm11 = vcmp.eq.f32.partialorder %v224_v33, inf  ;;  %v259_v5 = vand.u32 2147483648, %v224_v33  ;;  %vm258_vm12 = vcmp.eq.f32.partialorder %v224_v33, 0.0 }
  0xac   : > { %v595_v34 = vpop.eup %594 }
  0xad   : > { %v597_v35 = vpop.eup %596  ;;  %v269_v36 = vmul.f32 %v595_v34, %v230_v28  ;;  %v727_v37 = vpop.xlane.xlu1 %238 }
  0xae   : > { %v729_v38 = vpop.xlane.xlu0 %235  ;;  %v241_v40 = vmul.f32 %v597_v35, %v218_v29  ;;  %606 = vrsqrt.f32 %v727_v37  ;;  %vm291_vm13 = vcmp.eq.f32.partialorder %v727_v37, inf  ;;  %vm293_vm14 = vcmp.eq.f32.partialorder %v727_v37, 0.0 }
  0xaf   : > { %v271_v41 = vsel %vm270_vm1, %v230_v28, %v269_v36  ;;  %608 = vrsqrt.f32 %v729_v38  ;;  %v294_v19 = vand.u32 2147483648, %v727_v37  ;;  %vm284_vm15 = vcmp.eq.f32.partialorder %v729_v38, inf }
  0xb0   : > { %v599_v43 = vpop.eup %598  ;;  %v274_v44 = vsel %vm272_vm2, %v273_v39, %v271_v41  ;;  %v243_v45 = vsel %vm242_vm3, %v218_v29, %v241_v40  ;;  %v287_v22 = vand.u32 2147483648, %v729_v38  ;;  %vm286_vm1 = vcmp.eq.f32.partialorder %v729_v38, 0.0 }
  0xb1   : > { %v601_v46 = vpop.eup %600  ;;  %v300_v47 = vmax.f32 %v274_v44, 1e-12  ;;  %v246_v48 = vsel %vm244_vm4, %v245_v42, %v243_v45  ;;  %v276_v49 = vmul.f32 %v599_v43, %v233_v30  ;;  %vm463_vm2 = vcmask 130048  }
  0xb2   : > { %v296_v50 = vmax.f32 %v246_v48, 1e-12  ;;  %v248_v52 = vmul.f32 %v601_v46, %v221_v31 }
  0xb3   : > { %610 = vrcp.f32 %v300_v47  ;;  %v278_v53 = vsel %vm277_vm5, %v233_v30, %v276_v49 }
  0xb4   : > { %v603_v55 = vpop.eup %602  ;;  %612 = vrcp.f32 %v296_v50  ;;  %v281_v56 = vsel %vm279_vm6, %v280_v51, %v278_v53  ;;  %v250_v57 = vsel %vm249_vm7, %v221_v31, %v248_v52 }
  0xb5   : > { %v605_v58 = vpop.eup %604  ;;  %v301_v59 = vmax.f32 %v281_v56, 1e-12  ;;  %v253_v60 = vsel %vm251_vm8, %v252_v54, %v250_v57  ;;  %v262_v61 = vmul.f32 %v603_v55, %v227_v32 }
  0xb6   : > { %v297_v62 = vmax.f32 %v253_v60, 1e-12  ;;  %v255_v3 = vmul.f32 %v605_v58, %v224_v33 }
  0xb7   : > { %614 = vrcp.f32 %v301_v59  ;;  %v264_v4 = vsel %vm263_vm9, %v227_v32, %v262_v61  ;;  %v536_v32 = vld [vmem:[%s778_s1] ss:$0 sm:$0xff] }
  0xb8   : > { %v607_v7 = vpop.eup %606  ;;  %616 = vrcp.f32 %v297_v62  ;;  %v267_v10 = vsel %vm265_vm10, %v266_v63, %v264_v4  ;;  %v257_v11 = vsel %vm256_vm11, %v224_v33, %v255_v3  ;;  %v537_v59 = vld [vmem:[%s780_s3] ss:$0 sm:$0xff] }
  0xb9   : > { %v609_v12 = vpop.eup %608  ;;  %v299_v13 = vmax.f32 %v267_v10, 1e-12  ;;  %v260_v14 = vsel %vm258_vm12, %v259_v5, %v257_v11  ;;  %v290_v15 = vmul.f32 %v607_v7, %v727_v37 }
  0xba   : > { %v298_v18 = vmax.f32 %v260_v14, 1e-12  ;;  %v283_v20 = vmul.f32 %v609_v12, %v729_v38 }
  0xbb   : > { %618 = vrcp.f32 %v299_v13  ;;  %v292_v21 = vsel %vm291_vm13, %v727_v37, %v290_v15 }
  0xbc   : > { %620 = vrcp.f32 %v298_v18  ;;  %v295_v23 = vsel %vm293_vm14, %v294_v19, %v292_v21  ;;  %v285_v24 = vsel %vm284_vm15, %v729_v38, %v283_v20 }
  0xbd   : > { %v611_v25 = vpop.eup %610  ;;  %v303_v26 = vmax.f32 %v295_v23, 1e-12  ;;  %v288_v27 = vsel %vm286_vm1, %v287_v22, %v285_v24 }
  0xbe   : > { %v613_v28 = vpop.eup %612  ;;  %v302_v29 = vmax.f32 %v288_v27, 1e-12  ;;  %v313_v30 = vmul.f32 %v611_v25, %v675_v0 }
  0xbf   : > { %622 = vrcp.f32 %v303_v26  ;;  %v305_v31 = vmul.f32 %v613_v28, %v677_v1 }
  0xc0   : > { %624 = vrcp.f32 %v302_v29  ;;  %v331_v36 = vmul.f32 %v536_v32, %v313_v30 }
  0xc1   : > { %v615_v33 = vpop.eup %614  ;;  %v327_v38 = vmul.f32 %v536_v32, %v305_v31 }
  0xc2   : > { %v617_v34 = vpop.eup %616  ;;  %v315_v35 = vmul.f32 %v615_v33, %v679_v2  ;;  %v339_v42 = vmul.f32 8.0, %v331_v36 }
  0xc3   : > { %v307_v37 = vmul.f32 %v617_v34, %v687_v6  ;;  %v335_v44 = vmul.f32 8.0, %v327_v38 }
  0xc4   : > { %v332_v39 = vmul.f32 %v536_v32, %v315_v35 }
  0xc5   : > { %v619_v40 = vpop.eup %618  ;;  %v328_v41 = vmul.f32 %v536_v32, %v307_v37 }
  0xc6   : > { %v621_v0 = vpop.eup %620  ;;  %v340_v43 = vmul.f32 8.0, %v332_v39  ;;  %v311_v1 = vmul.f32 %v619_v40, %v691_v8 }
  0xc7   : > { %v336_v45 = vmul.f32 8.0, %v328_v41  ;;  %v309_v46 = vmul.f32 %v621_v0, %v693_v9 }
  0xc8   : > { %v345_v47 = vpack.c.bf16 %v340_v43, %v339_v42  ;;  %v330_v48 = vmul.f32 %v536_v32, %v311_v1 }
  0xc9   : > { %v623_v49 = vpop.eup %622  ;;  %v343_v2 = vpack.c.bf16 %v336_v45, %v335_v44  ;;  %v329_v50 = vmul.f32 %v536_v32, %v309_v46 }
  0xca   : > { %v625_v51 = vpop.eup %624  ;;  %570 = vmatprep.mubr.msk.bf16.mxu1 %vm215_vm0, %v345_v47  ;;  %v338_v6 = vmul.f32 8.0, %v330_v48  ;;  %v319_v52 = vmul.f32 %v623_v49, %v703_v16 }
  0xcb   : > { %566 = vmatprep.mubr.msk.bf16.mxu0 %vm215_vm0, %v343_v2  ;;  %v337_v53 = vmul.f32 8.0, %v329_v50  ;;  %v317_v8 = vmul.f32 %v625_v51, %v705_v17 }
  0xcc   : > { %v334_v54 = vmul.f32 %v536_v32, %v319_v52 }
  0xcd   : > { %v344_v55 = vpack.c.bf16 %v338_v6, %v337_v53  ;;  %v333_v9 = vmul.f32 %v536_v32, %v317_v8 }
  0xce   : > { %v342_v56 = vmul.f32 8.0, %v334_v54 }
  0xcf   : > { %567 = vmatmul.mubr.msk.bf16.vlgmr.msra.gmra.mrb[0].mxu0 %vm215_vm0, %v344_v55  ;;  %v341_v57 = vmul.f32 8.0, %v333_v9 }
  0xd1   : > { %v346_v58 = vpack.c.bf16 %v342_v56, %v341_v57 }
  0xd3   : > { %571 = vmatmul.mubr.msk.bf16.vlgmr.msra.gmra.mrb[0].mxu1 %vm215_vm0, %v346_v58 }
 0x1a2   : > { %v568_v16 = vpop.f32.mrb[0].mxu0 }
 0x1a3   : > { %v441_v17 = vadd.f32 %v568_v16, %v537_v59  ;;  %v432_v60 = vpop.f32.mrb[1].mxu0 }
 0x1a4   : > { %v433_v61 = vadd.f32 %v537_v59, %v432_v60  ;;  %v569_v62 = vpop.f32.mrb[2].mxu0 }
 0x1a5   : > { %466 = vst.msk [vmem:[%s197_s9 + $0x10] sm:$0xff] %vm463_vm2, %v441_v17  ;;  %v444_v63 = vadd.f32 %v569_v62, %v537_v59  ;;  %v435_v3 = vpop.f32.mrb[3].mxu0 }
 0x1a6   : > { %464 = vst.msk [vmem:[%s197_s9] sm:$0xff] %vm463_vm2, %v433_v61  ;;  %v436_v4 = vadd.f32 %v537_v59, %v435_v3  ;;  %v572_v5 = vpop.f32.mrb[0].mxu1 }
 0x1a7   : > { %467 = vst.msk [vmem:[%s197_s9 + $0x18] sm:$0xff] %vm463_vm2, %v444_v63  ;;  %v457_v7 = vadd.f32 %v572_v5, %v537_v59  ;;  %v448_v10 = vpop.f32.mrb[1].mxu1 }
 0x1a8   : > { %465 = vst.msk [vmem:[%s197_s9 + $0x8] sm:$0xff] %vm463_vm2, %v436_v4  ;;  %v449_v11 = vadd.f32 %v537_v59, %v448_v10  ;;  %v573_v12 = vpop.f32.mrb[2].mxu1 }
 0x1a9   : > { %470 = vst.msk [vmem:[%s197_s9 + $0x30] sm:$0xff] %vm463_vm2, %v457_v7  ;;  %v460_v13 = vadd.f32 %v573_v12, %v537_v59  ;;  %v451_v14 = vpop.f32.mrb[3].mxu1 }
 0x1aa   : > { %468 = vst.msk [vmem:[%s197_s9 + $0x20] sm:$0xff] %vm463_vm2, %v449_v11  ;;  %v452_v15 = vadd.f32 %v537_v59, %v451_v14 }
 0x1ab   : > { %471 = vst.msk [vmem:[%s197_s9 + $0x38] sm:$0xff] %vm463_vm2, %v460_v13 }
 0x1ac   : > { %469 = vst.msk [vmem:[%s197_s9 + $0x28] sm:$0xff] %vm463_vm2, %v452_v15 }
 0x1ad PF: > { %s14_s15 = sadd.s32 1, %s632_s15  }
 0x1ae   : > { %p11_p4 = scmp.ge.s32.totalorder %s14_s15, 4  }
 0x1b0   :  { %13 = sbr.rel (!%p11_p4) target bundleno = 1 (0x1), region = 66 }

// kernel: _lambda_.4
= control target key start
LH: loop header
LB: loop body
LE: loop exit
PB: predicated region body
PF: predicated region fallthrough
CT: control target
= control target key end

     0   :  { %s1076_s13 = smov 0   ;;  %s1286_s0 = inlined_call_operand.vmem [shape: f32[2,64,16], index: 0, kind: input, shape index: {}]   ;;  %s1287_s1 = inlined_call_operand.vmem [shape: f32[64,16], index: 1, kind: input, shape index: {}]   ;;  %s1288_s2 = inlined_call_operand.vmem [shape: bf16[16,16], index: 2, kind: input, shape index: {}]   ;;  %s1289_s3 = inlined_call_operand.vmem [shape: f32[1,16], index: 3, kind: input, shape index: {}]   ;;  %s1290_s4 = inlined_call_operand.vmem [shape: f32[1,16], index: 4, kind: input, shape index: {}]   ;;  %s1291_s5 = inlined_call_operand.vmem [shape: f32[1,16], index: 5, kind: input, shape index: {}]   ;;  %s1292_s6 = inlined_call_operand.vmem [shape: bf16[16,64], index: 6, kind: input, shape index: {}]   ;;  %s1293_s7 = inlined_call_operand.vmem [shape: f32[1,64], index: 7, kind: input, shape index: {}]   ;;  %s1294_s8 = inlined_call_operand.vmem [shape: f32[1,64], index: 8, kind: input, shape index: {}]   ;;  %s1295_s9 = inlined_call_operand.vmem [shape: f32[1,64], index: 9, kind: input, shape index: {}]   ;;  %s1296_s10 = inlined_call_operand.vmem [shape: f32[2,64,64], index: 10, kind: output, shape index: {}]  }
   0x1 LB: > { %s912_s14 = sadd.s32 4294967295, %s1019_s13   ;;  %p916_p0 = scmp.ge.s32.totalorder %s1019_s13, 1  ;;  %s1019_s13 = sphi %s1076_s13, %s20_s13  }
   0x2   : > { %p312_p1 = scmp.lt.s32.totalorder %s1019_s13, 3 }
   0x4   : > { %p313_p2 = pnand %p916_p0, %p312_p1 }
   0x5   : > { %v979_v0 = vld [vmem:[%s1288_s2] sm:$0xff] (!%p313_p2)   ;;  %p350_p3 = scmp.lt.s32.totalorder (!%p313_p2), %s912_s14, 1  ;;  %vm388_vm0 = vcmask (!%p313_p2), 130048   ;;  %v468_v15 = vld [vmem:[%s1287_s1 + $0x10] sm:$0xff] (!%p313_p2)  ;;  %v469_v21 = vld [vmem:[%s1287_s1 + $0x18] sm:$0xff] (!%p313_p2)  ;;  %vm715_vm1 = vcmask (!%p313_p2), 523264  }
   0x6   : > { %316 = sbr.rel (%p313_p2) target bundleno = 1103 (0x44f), region = 60  ;;  %951 = vmatprep.subr.bf16.mxu0 (!%p313_p2), %v979_v0  ;;  %v921_v13 = vld [vmem:[%s1289_s3] ss:$0 sm:$0xff] (!%p313_p2)  ;;  %v467_v25 = vld [vmem:[%s1287_s1 + $0x8] sm:$0xff] (!%p313_p2)  ;;  %v472_v42 = vld [vmem:[%s1287_s1 + $0x30] sm:$0xff] (!%p313_p2) }
   0x7   : > { %952 = vmatpush3.bf16.msra.mxu0 (!%p313_p2), %v979_v0  ;;  %v466_v18 = vld [vmem:[%s1287_s1] sm:$0xff] (!%p313_p2)  ;;  %v471_v41 = vld [vmem:[%s1287_s1 + $0x28] sm:$0xff] (!%p313_p2)  ;;  %v473_v46 = vld [vmem:[%s1287_s1 + $0x38] sm:$0xff] (!%p313_p2) }
   0x8   : > { %v470_v35 = vld [vmem:[%s1287_s1 + $0x20] sm:$0xff] (!%p313_p2) }
   0xd   : > { %s1298_s14 = smov (!%p350_p3, %s912_s14), 1 }
   0xe   : > { %s939_s17 = sshll.u32 %s1298_s14, 6 }
   0xf   : > { %s354_s20 = scalar_lea.vmem %s1286_s0, %s939_s17  ;;  %s1259_s19 = scalar_lea.vmem %s1296_s10, %s939_s17 }
  0x10   : > { %v361_v1 = vld [vmem:[%s354_s20] sm:$0xff]  ;;  %v362_v2 = vld [vmem:[%s354_s20 + $0x8] sm:$0xff]  ;;  %v363_v3 = vld [vmem:[%s354_s20 + $0x10] sm:$0xff] }
  0x11   : > { %v369_v4 = vpack.c.bf16 %v362_v2, %v361_v1  ;;  %v364_v5 = vld [vmem:[%s354_s20 + $0x18] sm:$0xff]  ;;  %v365_v6 = vld [vmem:[%s354_s20 + $0x20] sm:$0xff]  ;;  %v366_v7 = vld [vmem:[%s354_s20 + $0x28] sm:$0xff] }
  0x12   : > { %v370_v8 = vpack.c.bf16 %v364_v5, %v363_v3  ;;  %v371_v9 = vpack.c.bf16 %v366_v7, %v365_v6  ;;  %v367_v10 = vld [vmem:[%s354_s20 + $0x30] sm:$0xff]  ;;  %v368_v11 = vld [vmem:[%s354_s20 + $0x38] sm:$0xff] }
  0x13   : > { %953 = vmatprep.mubr.msk.bf16.mxu0 %vm388_vm0, %v369_v4  ;;  %v372_v12 = vpack.c.bf16 %v368_v11, %v367_v10 }
  0x14   : > { %954 = vmatmul.mubr.msk.bf16.vlgmr.msra.gmra.mrb[0].mxu0 %vm388_vm0, %v370_v8 }
  0x15   : > { %957 = vmatprep.mubr.msk.bf16.mxu0 %vm388_vm0, %v371_v9 }
  0x1c   : > { %958 = vmatmul.mubr.msk.bf16.gmra.mrb[4].mxu0 %vm388_vm0, %v372_v12 }
  0xe7   : > { %v955_v14 = vpop.f32.mrb[0].mxu0 }
  0xe8   : > { %v444_v16 = vadd.f32 %v955_v14, %v921_v13  ;;  %v435_v17 = vpop.f32.mrb[1].mxu0 }
  0xe9   : > { %v436_v19 = vadd.f32 %v921_v13, %v435_v17  ;;  %v956_v20 = vpop.f32.mrb[2].mxu0 }
  0xea   : > { %v447_v22 = vadd.f32 %v956_v20, %v921_v13  ;;  %v438_v23 = vpop.f32.mrb[3].mxu0  ;;  %v476_v24 = vadd.f32 %v468_v15, %v444_v16 }
  0xeb   : > { %v439_v26 = vadd.f32 %v921_v13, %v438_v23  ;;  %v474_v27 = vadd.f32 %v466_v18, %v436_v19 }
  0xec   : > { %v490_v28 = vsel %vm388_vm0, %v476_v24, 0.0  ;;  %v477_v29 = vadd.f32 %v469_v21, %v447_v22 }
  0xed   : > { %491 = vadd.xlane.f32.xlu1 %v490_v28  ;;  %v484_v30 = vsel %vm388_vm0, %v474_v27, 0.0  ;;  %v475_v31 = vadd.f32 %v467_v25, %v439_v26 }
  0xee   : > { %485 = vadd.xlane.f32.xlu0 %v484_v30  ;;  %v493_v34 = vsel %vm388_vm0, %v477_v29, 0.0  ;;  %v980_v30 = vld [vmem:[%s1292_s6] sm:$0xff]  }
  0xef   : > { %v959_v32 = vpop.f32.mrb[4].mxu0  ;;  %v487_v39 = vsel %vm388_vm0, %v475_v31, 0.0  ;;  %961 = vmatprep.subr.bf16.mxu1 %v980_v30 }
  0xf0   : > { %v451_v33 = vpop.f32.mrb[5].mxu0  ;;  %v460_v36 = vadd.f32 %v959_v32, %v921_v13  ;;  %962 = vmatpush3.bf16.msra.mxu1 %v980_v30 }
  0xf1   : > { %v452_v37 = vadd.f32 %v921_v13, %v451_v33  ;;  %494 = vadd.xlane.f32.xlu1 %v493_v34  ;;  %v960_v38 = vpop.f32.mrb[6].mxu0 }
  0xf2   : > { %v454_v40 = vpop.f32.mrb[7].mxu0  ;;  %488 = vadd.xlane.f32.xlu0 %v487_v39  ;;  %v463_v43 = vadd.f32 %v960_v38, %v921_v13  ;;  %v480_v49 = vadd.f32 %v472_v42, %v460_v36 }
  0xf3   : > { %v455_v44 = vadd.f32 %v921_v13, %v454_v40  ;;  %v478_v45 = vadd.f32 %v470_v35, %v452_v37 }
  0xf4   : > { %v481_v51 = vadd.f32 %v473_v46, %v463_v43  ;;  %v502_v52 = vsel %vm388_vm0, %v480_v49, 0.0 }
  0xf5   : > { %v496_v47 = vsel %vm388_vm0, %v478_v45, 0.0  ;;  %v479_v48 = vadd.f32 %v471_v41, %v455_v44 }
  0xf6   : > { %497 = vadd.xlane.f32.xlu0 %v496_v47  ;;  %v505_v53 = vsel %vm388_vm0, %v481_v51, 0.0 }
  0xf7   : > { %v499_v50 = vsel %vm388_vm0, %v479_v48, 0.0 }
  0xf8   : > { %500 = vadd.xlane.f32.xlu1 %v499_v50 }
  0xfa   : > { %503 = vadd.xlane.f32.xlu0 %v502_v52 }
  0xfc   : > { %506 = vadd.xlane.f32.xlu1 %v505_v53 }
 0x17a   : > { %v492_v54 = vpop.xlane.xlu1 %491 }
 0x17b   : > { %v511_v55 = vmul.f32 0.0625, %v492_v54  ;;  %v486_v56 = vpop.xlane.xlu0 %485 }
 0x17c   : > { %v509_v57 = vmul.f32 0.0625, %v486_v56  ;;  %v927_v56 = vld [vmem:[%s1290_s4] ss:$0 sm:$0xff] }
 0x17d   : > { %v1134_v58 = vsub.f32 %v476_v24, %v511_v55 }
 0x17e   : > { %v1136_v59 = vsub.f32 %v474_v27, %v509_v57  ;;  %v495_v60 = vpop.xlane.xlu1 %494 }
 0x17f   : > { %v512_v61 = vmul.f32 0.0625, %v495_v60  ;;  %v489_v62 = vpop.xlane.xlu0 %488  ;;  %v527_v4 = vmul.f32 %v1134_v58, %v1134_v58 }
 0x180   : > { %v510_v63 = vmul.f32 0.0625, %v489_v62  ;;  %v525_v0 = vmul.f32 %v1136_v59, %v1136_v59 }
 0x181   : > { %v1140_v1 = vsub.f32 %v477_v29, %v512_v61  ;;  %v539_v12 = vsel %vm388_vm0, %v527_v4, 0.0 }
 0x182   : > { %v1142_v2 = vsub.f32 %v475_v31, %v510_v63  ;;  %v533_v3 = vsel %vm388_vm0, %v525_v0, 0.0 }
 0x183   : > { %534 = vadd.xlane.f32.xlu0 %v533_v3  ;;  %v498_v5 = vpop.xlane.xlu0 %497  ;;  %v528_v9 = vmul.f32 %v1140_v1, %v1140_v1 }
 0x184   : > { %v513_v6 = vmul.f32 0.0625, %v498_v5  ;;  %v526_v7 = vmul.f32 %v1142_v2, %v1142_v2 }
 0x185   : > { %v501_v8 = vpop.xlane.xlu1 %500  ;;  %v542_v19 = vsel %vm388_vm0, %v528_v9, 0.0 }
 0x186   : > { %v1151_v10 = vsub.f32 %v478_v45, %v513_v6  ;;  %v514_v11 = vmul.f32 0.0625, %v501_v8  ;;  %v536_v13 = vsel %vm388_vm0, %v526_v7, 0.0 }
 0x187   : > { %540 = vadd.xlane.f32.xlu0 %v539_v12  ;;  %537 = vadd.xlane.f32.xlu1 %v536_v13  ;;  %v504_v14 = vpop.xlane.xlu0 %503 }
 0x188   : > { %v1155_v15 = vsub.f32 %v479_v48, %v514_v11  ;;  %v515_v16 = vmul.f32 0.0625, %v504_v14  ;;  %v529_v17 = vmul.f32 %v1151_v10, %v1151_v10 }
 0x189   : > { %v507_v18 = vpop.xlane.xlu1 %506 }
 0x18a   : > { %v1160_v20 = vsub.f32 %v480_v49, %v515_v16  ;;  %v516_v21 = vmul.f32 0.0625, %v507_v18  ;;  %v545_v22 = vsel %vm388_vm0, %v529_v17, 0.0  ;;  %v530_v23 = vmul.f32 %v1155_v15, %v1155_v15 }
 0x18b   : > { %543 = vadd.xlane.f32.xlu1 %v542_v19  ;;  %546 = vadd.xlane.f32.xlu0 %v545_v22 }
 0x18c   : > { %v1165_v24 = vsub.f32 %v481_v51, %v516_v21  ;;  %v531_v25 = vmul.f32 %v1160_v20, %v1160_v20  ;;  %v548_v26 = vsel %vm388_vm0, %v530_v23, 0.0 }
 0x18e   : > { %v551_v27 = vsel %vm388_vm0, %v531_v25, 0.0  ;;  %v532_v28 = vmul.f32 %v1165_v24, %v1165_v24 }
 0x18f   : > { %549 = vadd.xlane.f32.xlu1 %v548_v26  ;;  %552 = vadd.xlane.f32.xlu0 %v551_v27 }
 0x190   : > { %v554_v29 = vsel %vm388_vm0, %v532_v28, 0.0 }
 0x193   : > { %555 = vadd.xlane.f32.xlu1 %v554_v29 }
 0x210   : > { %v535_v31 = vpop.xlane.xlu0 %534 }
 0x211   : > { %v557_v32 = vmul.f32 0.0625, %v535_v31 }
 0x213   : > { %v565_v33 = vadd.f32 1e-05, %v557_v32 }
 0x214   : > { %v538_v34 = vpop.xlane.xlu1 %537  ;;  %v541_v35 = vpop.xlane.xlu0 %540 }
 0x215   : > { %981 = vrsqrt.f32 %v565_v33  ;;  %v558_v36 = vmul.f32 0.0625, %v538_v34  ;;  %v559_v37 = vmul.f32 0.0625, %v541_v35 }
 0x217   : > { %v566_v38 = vadd.f32 1e-05, %v558_v36  ;;  %v567_v39 = vadd.f32 1e-05, %v559_v37 }
 0x218   : > { %v544_v40 = vpop.xlane.xlu1 %543  ;;  %v547_v41 = vpop.xlane.xlu0 %546 }
 0x219   : > { %983 = vrsqrt.f32 %v566_v38  ;;  %v560_v42 = vmul.f32 0.0625, %v544_v40  ;;  %v561_v43 = vmul.f32 0.0625, %v547_v41 }
 0x21a   : > { %985 = vrsqrt.f32 %v567_v39 }
 0x21b   : > { %v568_v44 = vadd.f32 1e-05, %v560_v42  ;;  %v569_v45 = vadd.f32 1e-05, %v561_v43 }
 0x21c   : > { %v550_v46 = vpop.xlane.xlu1 %549  ;;  %v553_v47 = vpop.xlane.xlu0 %552 }
 0x21d   : > { %987 = vrsqrt.f32 %v568_v44  ;;  %v562_v48 = vmul.f32 0.0625, %v550_v46  ;;  %v563_v49 = vmul.f32 0.0625, %v553_v47 }
 0x21e   : > { %989 = vrsqrt.f32 %v569_v45 }
 0x21f   : > { %v982_v50 = vpop.eup %981  ;;  %v570_v51 = vadd.f32 1e-05, %v562_v48  ;;  %v571_v52 = vadd.f32 1e-05, %v563_v49 }
 0x220   : > { %v556_v53 = vpop.xlane.xlu1 %555  ;;  %v581_v54 = vmul.f32 %v982_v50, %v1136_v59  ;;  %v928_v59 = vld [vmem:[%s1291_s5] ss:$0 sm:$0xff] }
 0x221   : > { %991 = vrsqrt.f32 %v570_v51  ;;  %v564_v55 = vmul.f32 0.0625, %v556_v53 }
 0x222   : > { %993 = vrsqrt.f32 %v571_v52  ;;  %v595_v63 = vmul.f32 %v927_v56, %v581_v54 }
 0x223   : > { %v984_v57 = vpop.eup %983  ;;  %v572_v60 = vadd.f32 1e-05, %v564_v55 }
 0x224   : > { %v986_v61 = vpop.eup %985  ;;  %v582_v62 = vmul.f32 %v984_v57, %v1142_v2  ;;  %v609_v7 = vadd.f32 %v928_v59, %v595_v63 }
 0x225   : > { %v583_v0 = vmul.f32 %v986_v61, %v1134_v58  ;;  %995 = vrsqrt.f32 %v572_v60 }
 0x226   : > { %v596_v3 = vmul.f32 %v927_v56, %v582_v62 }
 0x227   : > { %v988_v4 = vpop.eup %987  ;;  %v597_v9 = vmul.f32 %v927_v56, %v583_v0 }
 0x228   : > { %v990_v5 = vpop.eup %989  ;;  %v584_v6 = vmul.f32 %v988_v4, %v1140_v1  ;;  %v610_v8 = vadd.f32 %v928_v59, %v596_v3 }
 0x229   : > { %v585_v11 = vmul.f32 %v990_v5, %v1151_v10  ;;  %v611_v16 = vadd.f32 %v928_v59, %v597_v9 }
 0x22a   : > { %v617_v12 = vpack.c.bf16 %v610_v8, %v609_v7  ;;  %v598_v2 = vmul.f32 %v927_v56, %v584_v6 }
 0x22b   : > { %v992_v13 = vpop.eup %991  ;;  %v599_v18 = vmul.f32 %v927_v56, %v585_v11 }
 0x22c   : > { %v994_v14 = vpop.eup %993  ;;  %v586_v58 = vmul.f32 %v992_v13, %v1155_v15  ;;  %963 = vmatprep.mubr.msk.bf16.mxu1 %vm388_vm0, %v617_v12  ;;  %v612_v17 = vadd.f32 %v928_v59, %v598_v2 }
 0x22d   : > { %v587_v19 = vmul.f32 %v994_v14, %v1160_v20  ;;  %v613_v10 = vadd.f32 %v928_v59, %v599_v18  ;;  %v929_v20 = vld [vmem:[%s1293_s7] ss:$0 sm:$0xff] }
 0x22e   : > { %v618_v21 = vpack.c.bf16 %v612_v17, %v611_v16  ;;  %v600_v1 = vmul.f32 %v927_v56, %v586_v58 }
 0x22f   : > { %v996_v22 = vpop.eup %995  ;;  %v601_v26 = vmul.f32 %v927_v56, %v587_v19 }
 0x230   : > { %v588_v23 = vmul.f32 %v996_v22, %v1165_v24  ;;  %964 = vmatmul.mubr.msk.bf16.vlgmr.msra.gmra.mrb[0].mxu1 %vm388_vm0, %v618_v21  ;;  %v614_v25 = vadd.f32 %v928_v59, %v600_v1 }
 0x231   : > { %v615_v15 = vadd.f32 %v928_v59, %v601_v26 }
 0x232   : > { %v619_v27 = vpack.c.bf16 %v614_v25, %v613_v10  ;;  %v602_v28 = vmul.f32 %v927_v56, %v588_v23 }
 0x234   : > { %967 = vmatprep.mubr.msk.bf16.mxu1 %vm388_vm0, %v619_v27  ;;  %v616_v29 = vadd.f32 %v928_v59, %v602_v28 }
 0x236   : > { %v620_v30 = vpack.c.bf16 %v616_v29, %v615_v15 }
 0x238   : > { %968 = vmatmul.mubr.msk.bf16.gmra.mrb[4].mxu1 %vm388_vm0, %v620_v30 }
 0x303   : > { %v965_v31 = vpop.f32.mrb[0].mxu1 }
 0x304   : > { %v691_v24 = vadd.f32 %v965_v31, %v929_v20  ;;  %v682_v32 = vpop.f32.mrb[1].mxu1 }
 0x305   : > { %v966_v33 = vpop.f32.mrb[2].mxu1  ;;  %v683_v34 = vadd.f32 %v929_v20, %v682_v32 }
 0x306   : > { %v694_v35 = vadd.f32 %v966_v33, %v929_v20  ;;  %v685_v36 = vpop.f32.mrb[3].mxu1  ;;  %v722_v37 = vsel %vm715_vm1, %v691_v24, 0.0 }
 0x307   : > { %723 = vadd.xlane.f32.xlu0 %v722_v37  ;;  %v686_v38 = vadd.f32 %v929_v20, %v685_v36  ;;  %v716_v40 = vsel %vm715_vm1, %v683_v34, 0.0 }
 0x308   : > { %v725_v39 = vsel %vm715_vm1, %v694_v35, 0.0 }
 0x309   : > { %726 = vadd.xlane.f32.xlu1 %v725_v39  ;;  %v719_v43 = vsel %vm715_vm1, %v686_v38, 0.0 }
 0x30b   : > { %717 = vadd.xlane.f32.xlu0 %v716_v40  ;;  %v969_v41 = vpop.f32.mrb[4].mxu1 }
 0x30c   : > { %v698_v42 = vpop.f32.mrb[5].mxu1  ;;  %v707_v47 = vadd.f32 %v969_v41, %v929_v20 }
 0x30d   : > { %v699_v44 = vadd.f32 %v929_v20, %v698_v42  ;;  %720 = vadd.xlane.f32.xlu1 %v719_v43  ;;  %v970_v45 = vpop.f32.mrb[6].mxu1 }
 0x30e   : > { %v701_v46 = vpop.f32.mrb[7].mxu1  ;;  %v710_v50 = vadd.f32 %v970_v45, %v929_v20  ;;  %v734_v52 = vsel %vm715_vm1, %v707_v47, 0.0 }
 0x30f   : > { %v702_v48 = vadd.f32 %v929_v20, %v701_v46  ;;  %v728_v49 = vsel %vm715_vm1, %v699_v44, 0.0 }
 0x310   : > { %729 = vadd.xlane.f32.xlu0 %v728_v49  ;;  %v737_v53 = vsel %vm715_vm1, %v710_v50, 0.0 }
 0x311   : > { %v731_v51 = vsel %vm715_vm1, %v702_v48, 0.0 }
 0x312   : > { %732 = vadd.xlane.f32.xlu1 %v731_v51  ;;  %v935_v51 = vld [vmem:[%s1294_s8] ss:$0 sm:$0xff] }
 0x314   : > { %735 = vadd.xlane.f32.xlu0 %v734_v52 }
 0x316   : > { %738 = vadd.xlane.f32.xlu1 %v737_v53 }
 0x394   : > { %v724_v54 = vpop.xlane.xlu0 %723 }
 0x395   : > { %v743_v55 = vmul.f32 0.015625, %v724_v54 }
 0x396   : > { %v727_v56 = vpop.xlane.xlu1 %726 }
 0x397   : > { %v1206_v57 = vsub.f32 %v691_v24, %v743_v55  ;;  %v744_v60 = vmul.f32 0.015625, %v727_v56 }
 0x398   : > { %v718_v61 = vpop.xlane.xlu0 %717 }
 0x399   : > { %v1208_v62 = vsub.f32 %v694_v35, %v744_v60  ;;  %v741_v63 = vmul.f32 0.015625, %v718_v61  ;;  %v759_v0 = vmul.f32 %v1206_v57, %v1206_v57  ;;  %v936_v60 = vld [vmem:[%s1295_s9] ss:$0 sm:$0xff] }
 0x39a   : > { %v721_v59 = vpop.xlane.xlu1 %720 }
 0x39b   : > { %v1212_v3 = vsub.f32 %v683_v34, %v741_v63  ;;  %v742_v4 = vmul.f32 0.015625, %v721_v59  ;;  %v771_v5 = vsel %vm715_vm1, %v759_v0, 0.0  ;;  %v760_v6 = vmul.f32 %v1208_v62, %v1208_v62 }
 0x39c   : > { %772 = vadd.xlane.f32.xlu0 %v771_v5 }
 0x39d   : > { %v1217_v7 = vsub.f32 %v686_v38, %v742_v4  ;;  %v730_v8 = vpop.xlane.xlu0 %729  ;;  %v774_v9 = vsel %vm715_vm1, %v760_v6, 0.0  ;;  %v757_v11 = vmul.f32 %v1212_v3, %v1212_v3 }
 0x39e   : > { %v745_v12 = vmul.f32 0.015625, %v730_v8  ;;  %775 = vadd.xlane.f32.xlu1 %v774_v9 }
 0x39f   : > { %v733_v2 = vpop.xlane.xlu1 %732  ;;  %v765_v13 = vsel %vm715_vm1, %v757_v11, 0.0  ;;  %v758_v14 = vmul.f32 %v1217_v7, %v1217_v7 }
 0x3a0   : > { %v1225_v58 = vsub.f32 %v699_v44, %v745_v12  ;;  %v746_v16 = vmul.f32 0.015625, %v733_v2  ;;  %766 = vadd.xlane.f32.xlu0 %v765_v13 }
 0x3a1   : > { %v736_v17 = vpop.xlane.xlu0 %735  ;;  %v768_v18 = vsel %vm715_vm1, %v758_v14, 0.0 }
 0x3a2   : > { %v1228_v19 = vsub.f32 %v702_v48, %v746_v16  ;;  %v747_v21 = vmul.f32 0.015625, %v736_v17  ;;  %769 = vadd.xlane.f32.xlu1 %v768_v18  ;;  %v761_v1 = vmul.f32 %v1225_v58, %v1225_v58 }
 0x3a3   : > { %v739_v22 = vpop.xlane.xlu1 %738 }
 0x3a4   : > { %v1232_v23 = vsub.f32 %v707_v47, %v747_v21  ;;  %v748_v10 = vmul.f32 0.015625, %v739_v22  ;;  %v777_v25 = vsel %vm715_vm1, %v761_v1, 0.0  ;;  %v762_v26 = vmul.f32 %v1228_v19, %v1228_v19 }
 0x3a5   : > { %778 = vadd.xlane.f32.xlu0 %v777_v25 }
 0x3a6   : > { %v1237_v27 = vsub.f32 %v710_v50, %v748_v10  ;;  %v780_v28 = vsel %vm715_vm1, %v762_v26, 0.0  ;;  %v763_v15 = vmul.f32 %v1232_v23, %v1232_v23 }
 0x3a7   : > { %781 = vadd.xlane.f32.xlu1 %v780_v28 }
 0x3a8   : > { %v783_v29 = vsel %vm715_vm1, %v763_v15, 0.0  ;;  %v764_v30 = vmul.f32 %v1237_v27, %v1237_v27 }
 0x3a9   : > { %784 = vadd.xlane.f32.xlu0 %v783_v29 }
 0x3aa   : > { %v786_v20 = vsel %vm715_vm1, %v764_v30, 0.0 }
 0x3ab   : > { %787 = vadd.xlane.f32.xlu1 %v786_v20 }
 0x429   : > { %v773_v31 = vpop.xlane.xlu0 %772 }
 0x42a   : > { %v791_v24 = vmul.f32 0.015625, %v773_v31 }
 0x42b   : > { %v776_v32 = vpop.xlane.xlu1 %775 }
 0x42c   : > { %v799_v33 = vadd.f32 1e-05, %v791_v24  ;;  %v792_v34 = vmul.f32 0.015625, %v776_v32 }
 0x42d   : > { %v767_v35 = vpop.xlane.xlu0 %766 }
 0x42e   : > { %997 = vrsqrt.f32 %v799_v33  ;;  %v800_v36 = vadd.f32 1e-05, %v792_v34  ;;  %v789_v37 = vmul.f32 0.015625, %v767_v35 }
 0x42f   : > { %v770_v38 = vpop.xlane.xlu1 %769 }
 0x430   : > { %999 = vrsqrt.f32 %v800_v36  ;;  %v797_v39 = vadd.f32 1e-05, %v789_v37  ;;  %v790_v40 = vmul.f32 0.015625, %v770_v38 }
 0x432   : > { %1001 = vrsqrt.f32 %v797_v39  ;;  %v798_v41 = vadd.f32 1e-05, %v790_v40  ;;  %v779_v42 = vpop.xlane.xlu0 %778 }
 0x433   : > { %v793_v43 = vmul.f32 0.015625, %v779_v42 }
 0x434   : > { %1003 = vrsqrt.f32 %v798_v41  ;;  %v782_v44 = vpop.xlane.xlu1 %781 }
 0x435   : > { %v801_v45 = vadd.f32 1e-05, %v793_v43  ;;  %v794_v46 = vmul.f32 0.015625, %v782_v44 }
 0x436   : > { %v785_v47 = vpop.xlane.xlu0 %784 }
 0x437   : > { %1005 = vrsqrt.f32 %v801_v45  ;;  %v802_v48 = vadd.f32 1e-05, %v794_v46  ;;  %v795_v49 = vmul.f32 0.015625, %v785_v47 }
 0x438   : > { %v998_v50 = vpop.eup %997  ;;  %v788_v52 = vpop.xlane.xlu1 %787 }
 0x439   : > { %v815_v53 = vmul.f32 %v998_v50, %v1206_v57  ;;  %1007 = vrsqrt.f32 %v802_v48  ;;  %v803_v54 = vadd.f32 1e-05, %v795_v49  ;;  %v796_v55 = vmul.f32 0.015625, %v788_v52 }
 0x43a   : > { %v1000_v56 = vpop.eup %999 }
 0x43b   : > { %v829_v61 = vmul.f32 %v935_v51, %v815_v53  ;;  %v816_v63 = vmul.f32 %v1000_v56, %v1208_v62  ;;  %1009 = vrsqrt.f32 %v803_v54  ;;  %v804_v0 = vadd.f32 1e-05, %v796_v55 }
 0x43c   : > { %v1002_v59 = vpop.eup %1001 }
 0x43d   : > { %v843_v57 = vadd.f32 %v936_v60, %v829_v61  ;;  %v830_v4 = vmul.f32 %v935_v51, %v816_v63  ;;  %v813_v5 = vmul.f32 %v1002_v59, %v1212_v3  ;;  %1011 = vrsqrt.f32 %v804_v0 }
 0x43e   : > { %v1004_v6 = vpop.eup %1003 }
 0x43f   : > { %851 = vst.msk [vmem:[%s1259_s19 + $0x10] sm:$0xff] %vm715_vm1, %v843_v57  ;;  %v844_v62 = vadd.f32 %v936_v60, %v830_v4  ;;  %v827_v8 = vmul.f32 %v935_v51, %v813_v5  ;;  %v814_v9 = vmul.f32 %v1004_v6, %v1217_v7 }
 0x441   : > { %v1006_v11 = vpop.eup %1005  ;;  %852 = vst.msk [vmem:[%s1259_s19 + $0x18] sm:$0xff] %vm715_vm1, %v844_v62  ;;  %v841_v12 = vadd.f32 %v936_v60, %v827_v8  ;;  %v828_v2 = vmul.f32 %v935_v51, %v814_v9 }
 0x442   : > { %v817_v13 = vmul.f32 %v1006_v11, %v1225_v58 }
 0x443   : > { %v1008_v14 = vpop.eup %1007  ;;  %849 = vst.msk [vmem:[%s1259_s19] sm:$0xff] %vm715_vm1, %v841_v12  ;;  %v842_v3 = vadd.f32 %v936_v60, %v828_v2 }
 0x444   : > { %v831_v16 = vmul.f32 %v935_v51, %v817_v13  ;;  %v818_v17 = vmul.f32 %v1008_v14, %v1228_v19 }
 0x445   : > { %v1010_v18 = vpop.eup %1009  ;;  %850 = vst.msk [vmem:[%s1259_s19 + $0x8] sm:$0xff] %vm715_vm1, %v842_v3 }
 0x446   : > { %v845_v7 = vadd.f32 %v936_v60, %v831_v16  ;;  %v832_v21 = vmul.f32 %v935_v51, %v818_v17  ;;  %v819_v1 = vmul.f32 %v1010_v18, %v1232_v23 }
 0x447   : > { %v1012_v22 = vpop.eup %1011 }
 0x448   : > { %853 = vst.msk [vmem:[%s1259_s19 + $0x20] sm:$0xff] %vm715_vm1, %v845_v7  ;;  %v846_v58 = vadd.f32 %v936_v60, %v832_v21  ;;  %v833_v10 = vmul.f32 %v935_v51, %v819_v1  ;;  %v820_v25 = vmul.f32 %v1012_v22, %v1237_v27 }
 0x44a   : > { %854 = vst.msk [vmem:[%s1259_s19 + $0x28] sm:$0xff] %vm715_vm1, %v846_v58  ;;  %v847_v26 = vadd.f32 %v936_v60, %v833_v10  ;;  %v834_v28 = vmul.f32 %v935_v51, %v820_v25 }
 0x44c   : > { %855 = vst.msk [vmem:[%s1259_s19 + $0x30] sm:$0xff] %vm715_vm1, %v847_v26  ;;  %v848_v19 = vadd.f32 %v936_v60, %v834_v28 }
 0x44e   : > { %856 = vst.msk [vmem:[%s1259_s19 + $0x38] sm:$0xff] %vm715_vm1, %v848_v19 }
 0x44f PF: > { %s20_s13 = sadd.s32 1, %s1019_s13  }
 0x450   : > { %p17_p4 = scmp.ge.s32.totalorder %s20_s13, 4  }
 0x452   :  { %19 = sbr.rel (!%p17_p4) target bundleno = 1 (0x1), region = 90 }

// kernel: _lambda_.5
= control target key start
LH: loop header
LB: loop body
LE: loop exit
PB: predicated region body
PF: predicated region fallthrough
CT: control target
= control target key end

     0   :  { %s8647_s0 = inlined_call_operand.vmem [shape: f32[2,64,64], index: 0, kind: input, shape index: {}]   ;;  %s8648_s1 = inlined_call_operand.vmem [shape: f32[2,8,64], index: 1, kind: input, shape index: {}]   ;;  %s8649_s2 = inlined_call_operand.vmem [shape: f32[1,64], index: 2, kind: input, shape index: {}]   ;;  %s8650_s3 = inlined_call_operand.vmem [shape: f32[1,64], index: 3, kind: input, shape index: {}]   ;;  %s8651_s4 = inlined_call_operand.vmem [shape: bf16[64,64], index: 4, kind: input, shape index: {}]   ;;  %s8652_s5 = inlined_call_operand.vmem [shape: bf16[64,64], index: 5, kind: input, shape index: {}]   ;;  %s8653_s6 = inlined_call_operand.vmem [shape: bf16[64,64], index: 6, kind: input, shape index: {}]   ;;  %s8654_s7 = inlined_call_operand.vmem [shape: f32[1,64], index: 7, kind: input, shape index: {}]   ;;  %s8655_s8 = inlined_call_operand.vmem [shape: f32[1,64], index: 8, kind: input, shape index: {}]   ;;  %s8656_s9 = inlined_call_operand.vmem [shape: bf16[64,64], index: 9, kind: input, shape index: {}]   ;;  %s8657_s10 = inlined_call_operand.vmem [shape: bf16[64,64], index: 10, kind: input, shape index: {}]   ;;  %s8658_s11 = inlined_call_operand.vmem [shape: bf16[64,64], index: 11, kind: input, shape index: {}]   ;;  %s8659_s12 = inlined_call_operand.vmem [shape: f32[1,64], index: 12, kind: input, shape index: {}]   ;;  %s8660_s13 = inlined_call_operand.vmem [shape: f32[1,64], index: 13, kind: input, shape index: {}]   ;;  %s8661_s14 = inlined_call_operand.vmem [shape: bf16[64,128], index: 14, kind: input, shape index: {}]   ;;  %s8662_s15 = inlined_call_operand.vmem [shape: f32[1,128], index: 15, kind: input, shape index: {}]   ;;  %s8663_s16 = inlined_call_operand.vmem [shape: f32[9,128], index: 16, kind: input, shape index: {}]   ;;  %s8664_s17 = inlined_call_operand.vmem [shape: f32[1,128], index: 17, kind: input, shape index: {}]   ;;  %s8665_s18 = inlined_call_operand.vmem [shape: bf16[128,64], index: 18, kind: input, shape index: {}]   ;;  %s8666_s19 = inlined_call_operand.vmem [shape: f32[1,64], index: 19, kind: input, shape index: {}]   ;;  %s8667_s20 = inlined_call_operand.vmem [shape: f32[2,64,64], index: 20, kind: output, shape index: {}]  }
   0x1   :  { %8674 = sst [smem:[#allocation8_spill]] %s8647_s0 }
   0x2   :  { %8675 = sst [smem:[#allocation9_spill]] %s8648_s1  ;;  %s6460_s1 = smov 0  }
   0x3   :  { %8676 = sst [smem:[#allocation10_spill]] %s8649_s2 }
   0x4   :  { %8677 = sst [smem:[#allocation11_spill]] %s8650_s3 }
   0x5   :  { %8678 = sst [smem:[#allocation12_spill]] %s8651_s4 }
   0x6 LB: > { %s5176_s22 = sadd.s32 4294967295, %s6351_s1   ;;  %p5180_p0 = scmp.ge.s32.totalorder %s6351_s1, 1  ;;  %s6351_s1 = sphi %s6460_s1, %s30_s1  }
   0x7   : > { %p571_p1 = scmp.lt.s32.totalorder %s6351_s1, 3 }
   0x9   : > { %p572_p2 = pnand %p5180_p0, %p571_p1 }
   0xb   : > { %575 = sbr.rel (%p572_p2) target bundleno = 3670 (0xe56), region = 100 }
  0x12   : > { %p633_p3 = scmp.lt.s32.totalorder %s5176_s22, 1  ;;  %vm660_vm0 = vcmask 523264   ;;  %s8679_s25 = sld [smem:[#allocation8_spill]]  ;;  %v5966_v57 = vld [vmem:[%s8652_s5] sm:$0xff]   ;;  %v5968_v59 = vld [vmem:[%s8652_s5 + $0x8] sm:$0xff]   ;;  %v5970_v61 = vld [vmem:[%s8652_s5 + $0x10] sm:$0xff]  }
  0x13   : > { %s8680_s28 = sld [smem:[#allocation12_spill]]  ;;  %5560 = vmatprep.subr.bf16.mxu1 %v5966_v57  ;;  %v5972_v63 = vld [vmem:[%s8652_s5 + $0x18] sm:$0xff]   ;;  %s8681_s26 = sld [smem:[#allocation10_spill]]  ;;  %vm6354_vm15 = vmmov 0  }
  0x14   : > { %s8715_s22 = smov (!%p633_p3, %s5176_s22), 1  ;;  %5561 = vmatpush3.bf16.msra.mxu1 %v5966_v57  ;;  %s8682_s29 = sld [smem:[#allocation11_spill]] }
  0x15   : > { %s5376_s23 = sshll.u32 %s8715_s22, 6  ;;  %5562 = vmatprep.subr.bf16.mxu1 %v5968_v59  ;;  %s5183_s4 = sshll.u32 %s8715_s22, 3 }
  0x16   : > { %s8697_s0 = sld [smem:[#allocation9_spill]] }
  0x18   : > { %s6476_s3 = scalar_lea.vmem %s8679_s25, %s5376_s23  ;;  %5563 = vmatpush3.bf16.msra.mxu1 %v5968_v59  ;;  %s646_s25 = scalar_lea.vmem %s8667_s20, %s5376_s23 }
  0x19   : > { %v648_v0 = vld [vmem:[%s6476_s3] sm:$0xff]  ;;  %v650_v1 = vld [vmem:[%s6476_s3 + $0x10] sm:$0xff]  ;;  %v649_v2 = vld [vmem:[%s6476_s3 + $0x8] sm:$0xff]  ;;  %5564 = vmatprep.subr.bf16.mxu1 %v5970_v61 }
  0x1a   : > { %v661_v3 = vsel %vm660_vm0, %v648_v0, 0.0  ;;  %v667_v4 = vsel %vm660_vm0, %v650_v1, 0.0  ;;  %v651_v5 = vld [vmem:[%s6476_s3 + $0x18] sm:$0xff]  ;;  %v652_v6 = vld [vmem:[%s6476_s3 + $0x20] sm:$0xff]  ;;  %v653_v7 = vld [vmem:[%s6476_s3 + $0x28] sm:$0xff]  ;;  %v664_v8 = vsel %vm660_vm0, %v649_v2, 0.0 }
  0x1b   : > { %662 = vadd.xlane.f32.xlu0 %v661_v3  ;;  %668 = vadd.xlane.f32.xlu1 %v667_v4  ;;  %v670_v9 = vsel %vm660_vm0, %v651_v5, 0.0  ;;  %v673_v10 = vsel %vm660_vm0, %v652_v6, 0.0  ;;  %v676_v11 = vsel %vm660_vm0, %v653_v7, 0.0  ;;  %v654_v12 = vld [vmem:[%s6476_s3 + $0x30] sm:$0xff]  ;;  %v655_v13 = vld [vmem:[%s6476_s3 + $0x38] sm:$0xff]  ;;  %v5965_v56 = vld [vmem:[%s8680_s28] sm:$0xff]  }
  0x1c   : > { %v679_v14 = vsel %vm660_vm0, %v654_v12, 0.0  ;;  %v682_v15 = vsel %vm660_vm0, %v655_v13, 0.0  ;;  %5544 = vmatprep.subr.bf16.mxu0 %v5965_v56  ;;  %v5967_v58 = vld [vmem:[%s8680_s28 + $0x8] sm:$0xff]   ;;  %v5969_v60 = vld [vmem:[%s8680_s28 + $0x10] sm:$0xff]   ;;  %v5971_v62 = vld [vmem:[%s8680_s28 + $0x18] sm:$0xff]   ;;  %5565 = vmatpush3.bf16.msra.mxu1 %v5970_v61  ;;  %s641_s21 = scalar_lea.vmem %s8697_s0, %s5183_s4 }
  0x1d   : > { %5545 = vmatpush3.bf16.msra.mxu0 %v5965_v56  ;;  %5566 = vmatprep.subr.bf16.mxu1 %v5972_v63 }
  0x1e   : > { %5546 = vmatprep.subr.bf16.mxu0 %v5967_v58 }
  0x1f   : > { %665 = vadd.xlane.f32.xlu0 %v664_v8  ;;  %671 = vadd.xlane.f32.xlu1 %v670_v9 }
  0x20   : > { %5567 = vmatpush3.bf16.msra.mxu1 %v5972_v63 }
  0x21   : > { %5547 = vmatpush3.bf16.msra.mxu0 %v5967_v58 }
  0x22   : > { %5548 = vmatprep.subr.bf16.mxu0 %v5969_v60 }
  0x23   : > { %674 = vadd.xlane.f32.xlu0 %v673_v10  ;;  %677 = vadd.xlane.f32.xlu1 %v676_v11 }
  0x25   : > { %5549 = vmatpush3.bf16.msra.mxu0 %v5969_v60 }
  0x26   : > { %5550 = vmatprep.subr.bf16.mxu0 %v5971_v62 }
  0x27   : > { %680 = vadd.xlane.f32.xlu0 %v679_v14  ;;  %683 = vadd.xlane.f32.xlu1 %v682_v15 }
  0x29   : > { %5551 = vmatpush3.bf16.msra.mxu0 %v5971_v62  ;;  %v5975_v62 = vld [vmem:[%s8653_s6 + $0x10] sm:$0xff]  }
  0xa8   : > { %v663_v16 = vpop.xlane.xlu0 %662  ;;  %v669_v17 = vpop.xlane.xlu1 %668 }
  0xa9   : > { %v686_v18 = vmul.f32 0.015625, %v663_v16  ;;  %v688_v19 = vmul.f32 0.015625, %v669_v17 }
  0xab   : > { %v6494_v20 = vsub.f32 %v648_v0, %v686_v18  ;;  %v6496_v21 = vsub.f32 %v650_v1, %v688_v19  ;;  %v6561_v0 = vld [vmem:[%s8653_s6] sm:$0xff]  }
  0xac   : > { %v666_v22 = vpop.xlane.xlu0 %665  ;;  %v672_v23 = vpop.xlane.xlu1 %671  ;;  %5576 = vmatprep.subr.bf16.mxu0 %v6561_v0 }
  0xad   : > { %v687_v24 = vmul.f32 0.015625, %v666_v22  ;;  %v689_v25 = vmul.f32 0.015625, %v672_v23  ;;  %v702_v26 = vmul.f32 %v6494_v20, %v6494_v20  ;;  %v704_v27 = vmul.f32 %v6496_v21, %v6496_v21 }
  0xaf   : > { %v6502_v28 = vsub.f32 %v649_v2, %v687_v24  ;;  %v6504_v29 = vsub.f32 %v651_v5, %v689_v25  ;;  %v710_v30 = vsel %vm660_vm0, %v702_v26, 0.0  ;;  %v716_v33 = vsel %vm660_vm0, %v704_v27, 0.0 }
  0xb0   : > { %711 = vadd.xlane.f32.xlu0 %v710_v30  ;;  %v675_v31 = vpop.xlane.xlu0 %674  ;;  %v678_v32 = vpop.xlane.xlu1 %677  ;;  %v5186_v30 = vld [vmem:[%s8681_s26] ss:$0 sm:$0xff] }
  0xb1   : > { %v690_v34 = vmul.f32 0.015625, %v675_v31  ;;  %v691_v35 = vmul.f32 0.015625, %v678_v32  ;;  %v703_v36 = vmul.f32 %v6502_v28, %v6502_v28  ;;  %v705_v37 = vmul.f32 %v6504_v29, %v6504_v29 }
  0xb3   : > { %v6512_v38 = vsub.f32 %v652_v6, %v690_v34  ;;  %v6514_v39 = vsub.f32 %v653_v7, %v691_v35  ;;  %v713_v40 = vsel %vm660_vm0, %v703_v36, 0.0  ;;  %v719_v43 = vsel %vm660_vm0, %v705_v37, 0.0  ;;  %v5187_v36 = vld [vmem:[%s8682_s29] ss:$0 sm:$0xff] }
  0xb4   : > { %717 = vadd.xlane.f32.xlu0 %v716_v33  ;;  %714 = vadd.xlane.f32.xlu1 %v713_v40  ;;  %v681_v41 = vpop.xlane.xlu0 %680  ;;  %v684_v42 = vpop.xlane.xlu1 %683 }
  0xb5   : > { %v692_v44 = vmul.f32 0.015625, %v681_v41  ;;  %v693_v45 = vmul.f32 0.015625, %v684_v42  ;;  %v706_v46 = vmul.f32 %v6512_v38, %v6512_v38  ;;  %v707_v47 = vmul.f32 %v6514_v39, %v6514_v39 }
  0xb7   : > { %v6522_v48 = vsub.f32 %v654_v12, %v692_v44  ;;  %v6524_v49 = vsub.f32 %v655_v13, %v693_v45  ;;  %v722_v50 = vsel %vm660_vm0, %v706_v46, 0.0  ;;  %v725_v51 = vsel %vm660_vm0, %v707_v47, 0.0 }
  0xb8   : > { %720 = vadd.xlane.f32.xlu1 %v719_v43  ;;  %723 = vadd.xlane.f32.xlu0 %v722_v50 }
  0xb9   : > { %v708_v52 = vmul.f32 %v6522_v48, %v6522_v48  ;;  %v709_v53 = vmul.f32 %v6524_v49, %v6524_v49 }
  0xbb   : > { %v728_v54 = vsel %vm660_vm0, %v708_v52, 0.0  ;;  %v731_v55 = vsel %vm660_vm0, %v709_v53, 0.0 }
  0xbc   : > { %726 = vadd.xlane.f32.xlu1 %v725_v51  ;;  %729 = vadd.xlane.f32.xlu0 %v728_v54 }
  0xc0   : > { %732 = vadd.xlane.f32.xlu1 %v731_v55 }
 0x13d   : > { %v712_v1 = vpop.xlane.xlu0 %711 }
 0x13e   : > { %v734_v2 = vmul.f32 0.015625, %v712_v1 }
 0x140   : > { %v742_v3 = vadd.f32 1e-05, %v734_v2 }
 0x141   : > { %v715_v4 = vpop.xlane.xlu1 %714  ;;  %v718_v5 = vpop.xlane.xlu0 %717 }
 0x142   : > { %6001 = vrsqrt.f32 %v742_v3  ;;  %v735_v6 = vmul.f32 0.015625, %v715_v4  ;;  %v736_v7 = vmul.f32 0.015625, %v718_v5 }
 0x144   : > { %v743_v8 = vadd.f32 1e-05, %v735_v6  ;;  %v744_v9 = vadd.f32 1e-05, %v736_v7 }
 0x145   : > { %v721_v10 = vpop.xlane.xlu1 %720  ;;  %v724_v11 = vpop.xlane.xlu0 %723 }
 0x146   : > { %6003 = vrsqrt.f32 %v743_v8  ;;  %v737_v12 = vmul.f32 0.015625, %v721_v10  ;;  %v738_v13 = vmul.f32 0.015625, %v724_v11 }
 0x147   : > { %6005 = vrsqrt.f32 %v744_v9 }
 0x148   : > { %v745_v14 = vadd.f32 1e-05, %v737_v12  ;;  %v746_v15 = vadd.f32 1e-05, %v738_v13 }
 0x149   : > { %v727_v16 = vpop.xlane.xlu1 %726  ;;  %v730_v17 = vpop.xlane.xlu0 %729 }
 0x14a   : > { %6007 = vrsqrt.f32 %v745_v14  ;;  %v739_v18 = vmul.f32 0.015625, %v727_v16  ;;  %v740_v19 = vmul.f32 0.015625, %v730_v17 }
 0x14b   : > { %6009 = vrsqrt.f32 %v746_v15 }
 0x14c   : > { %v6002_v22 = vpop.eup %6001  ;;  %v747_v23 = vadd.f32 1e-05, %v739_v18  ;;  %v748_v24 = vadd.f32 1e-05, %v740_v19 }
 0x14d   : > { %v733_v25 = vpop.xlane.xlu1 %732  ;;  %v758_v26 = vmul.f32 %v6002_v22, %v6494_v20 }
 0x14e   : > { %6011 = vrsqrt.f32 %v747_v23  ;;  %v741_v27 = vmul.f32 0.015625, %v733_v25 }
 0x14f   : > { %6013 = vrsqrt.f32 %v748_v24  ;;  %v772_v35 = vmul.f32 %v5186_v30, %v758_v26 }
 0x150   : > { %v6004_v31 = vpop.eup %6003  ;;  %v749_v32 = vadd.f32 1e-05, %v741_v27 }
 0x151   : > { %v6006_v33 = vpop.eup %6005  ;;  %v759_v34 = vmul.f32 %v6004_v31, %v6502_v28  ;;  %v786_v42 = vadd.f32 %v5187_v36, %v772_v35 }
 0x152   : > { %6015 = vrsqrt.f32 %v749_v32  ;;  %v760_v20 = vmul.f32 %v6006_v33, %v6496_v21 }
 0x153   : > { %v773_v37 = vmul.f32 %v5186_v30, %v759_v34 }
 0x154   : > { %v6008_v40 = vpop.eup %6007  ;;  %v774_v45 = vmul.f32 %v5186_v30, %v760_v20 }
 0x155   : > { %v6010_v41 = vpop.eup %6009  ;;  %v787_v43 = vadd.f32 %v5187_v36, %v773_v37  ;;  %v761_v44 = vmul.f32 %v6008_v40, %v6504_v29 }
 0x156   : > { %v762_v46 = vmul.f32 %v6010_v41, %v6512_v38  ;;  %v788_v21 = vadd.f32 %v5187_v36, %v774_v45  ;;  %v5974_v38 = vld [vmem:[%s8653_s6 + $0x8] sm:$0xff]  }
 0x157   : > { %v794_v47 = vpack.c.bf16 %v787_v43, %v786_v42  ;;  %v775_v28 = vmul.f32 %v5186_v30, %v761_v44 }
 0x158   : > { %v6012_v50 = vpop.eup %6011  ;;  %v776_v51 = vmul.f32 %v5186_v30, %v762_v46 }
 0x159   : > { %v6014_v52 = vpop.eup %6013  ;;  %5552 = vmatprep.mubr.msk.bf16.mxu0 %vm660_vm0, %v794_v47  ;;  %5568 = vmatprep.mubr.msk.bf16.mxu1 %vm660_vm0, %v794_v47  ;;  %v789_v53 = vadd.f32 %v5187_v36, %v775_v28  ;;  %v763_v54 = vmul.f32 %v6012_v50, %v6514_v39 }
 0x15a   : > { %v764_v55 = vmul.f32 %v6014_v52, %v6522_v48  ;;  %v790_v58 = vadd.f32 %v5187_v36, %v776_v51 }
 0x15b   : > { %v795_v56 = vpack.c.bf16 %v789_v53, %v788_v21  ;;  %v777_v29 = vmul.f32 %v5186_v30, %v763_v54 }
 0x15c   : > { %v6016_v57 = vpop.eup %6015  ;;  %v778_v61 = vmul.f32 %v5186_v30, %v764_v55 }
 0x15d   : > { %5553 = vmatmul.mubr.msk.bf16.vlgmr.msra.gmra.mrb[0].mxu0 %vm660_vm0, %v795_v56  ;;  %5569 = vmatmul.mubr.msk.bf16.vlgmr.msra.gmra.mrb[0].mxu1 %vm660_vm0, %v795_v56  ;;  %v791_v59 = vadd.f32 %v5187_v36, %v777_v29  ;;  %v765_v60 = vmul.f32 %v6016_v57, %v6524_v49  ;;  %v5976_v49 = vld [vmem:[%s8653_s6 + $0x18] sm:$0xff]  }
 0x15e   : > { %5577 = vmatpush3.bf16.msra.mxu0 %v6561_v0  ;;  %v792_v63 = vadd.f32 %v5187_v36, %v778_v61  ;;  %v1101_v0 = vlaneseq }
 0x15f   : > { %v796_v39 = vpack.c.bf16 %v791_v59, %v790_v58  ;;  %5578 = vmatprep.subr.bf16.mxu0 %v5974_v38  ;;  %v779_v48 = vmul.f32 %v5186_v30, %v765_v60 }
 0x160   : > { %v6600_v3 = vand.u32 127, %v1101_v0 }
 0x161   : > { %5556 = vmatprep.mubr.msk.bf16.mxu0 %vm660_vm0, %v796_v39  ;;  %5572 = vmatprep.mubr.msk.bf16.mxu1 %vm660_vm0, %v796_v39  ;;  %v793_v1 = vadd.f32 %v5187_v36, %v779_v48 }
 0x162   : > { %5579 = vmatpush3.bf16.msra.mxu0 %v5974_v38  ;;  %vm1333_vm1 = vcmp.ge.s32.totalorder %v6600_v3, 16  ;;  %vm1334_vm2 = vcmp.lt.s32.totalorder %v6600_v3, 32  ;;  %vm1717_vm3 = vcmp.ge.s32.totalorder %v6600_v3, 32  ;;  %vm1718_vm4 = vcmp.lt.s32.totalorder %v6600_v3, 48 }
 0x163   : > { %v797_v2 = vpack.c.bf16 %v793_v1, %v792_v63  ;;  %5580 = vmatprep.subr.bf16.mxu0 %v5975_v62  ;;  %vm2032_vm5 = vcmp.ge.s32.totalorder %v6600_v3, 48  ;;  %vm2033_vm6 = vcmp.lt.s32.totalorder %v6600_v3, 64  ;;  %vm6608_vm7 = vmand %vm1333_vm1, %vm1334_vm2  ;;  %vm1104_vm9 = vcmp.lt.s32.totalorder %v6600_v3, 16 }
 0x164   : > { %vm6612_vm8 = vmand %vm1717_vm3, %vm1718_vm4  ;;  %vm3154_vm1 = vcmask 1043456   ;;  %vm2853_vm2 = vcmask 64512   ;;  %vm4337_vm3 = vcmask 1045504   ;;  %vm4920_vm4 = vcmask 1040384  }
 0x165   : > { %5557 = vmatmul.mubr.msk.bf16.gmra.mrb[4].mxu0 %vm660_vm0, %v797_v2  ;;  %5573 = vmatmul.mubr.msk.bf16.gmra.mrb[4].mxu1 %vm660_vm0, %v797_v2  ;;  %vm6617_vm10 = vmand %vm2032_vm5, %vm2033_vm6 }
 0x166   : > { %5581 = vmatpush3.bf16.msra.mxu0 %v5975_v62  ;;  %5584 = vmatprep.mubr.msk.bf16.mxu0 %vm660_vm0, %v794_v47  ;;  %vm6857_vm11 = vmpackc.low %vm6608_vm7, %vm6608_vm7 }
 0x167   : > { %5582 = vmatprep.subr.bf16.mxu0 %v5976_v49  ;;  %vm6912_vm12 = vmpackc.low %vm1104_vm9, %vm1104_vm9 }
 0x168   : > { %vm7280_vm13 = vmpackc.low %vm6612_vm8, %vm6612_vm8 }
 0x169   : > { %vm7323_vm14 = vmpackc.low %vm6617_vm10, %vm6617_vm10 }
 0x16a   : > { %5583 = vmatpush3.bf16.msra.mxu0 %v5976_v49 }
 0x16d   : > { %5585 = vmatmul.mubr.msk.bf16.vlgmr.msra.gmra.mrb[8].mxu0 %vm660_vm0, %v795_v56 }
 0x16e   : > { %5588 = vmatprep.mubr.msk.bf16.mxu0 %vm660_vm0, %v796_v39 }
 0x175   : > { %5589 = vmatmul.mubr.msk.bf16.gmra.mrb[12].mxu0 %vm660_vm0, %v797_v2 }
 0x230   : > { %v5554_v7 = vpop.f32.mrb[0].mxu0  ;;  %v5570_v8 = vpop.f32.mrb[0].mxu1 }
 0x231   : > { %v6623_v9 = vsel %vm1104_vm9, %v5554_v7, 0.0  ;;  %v1340_v10 = vsel %vm6608_vm7, %v5554_v7, 0.0  ;;  %v1724_v11 = vsel %vm6612_vm8, %v5554_v7, 0.0  ;;  %v2039_v12 = vsel %vm6617_vm10, %v5554_v7, 0.0  ;;  %v876_v13 = vpop.f32.mrb[1].mxu0  ;;  %v973_v14 = vpop.f32.mrb[1].mxu1 }
 0x232   : > { %v1122_v15 = vsel %vm1104_vm9, %v5570_v8, 0.0  ;;  %v1352_v16 = vsel %vm6608_vm7, %v5570_v8, 0.0  ;;  %v1736_v17 = vsel %vm6612_vm8, %v5570_v8, 0.0  ;;  %v2051_v18 = vsel %vm6617_vm10, %v5570_v8, 0.0  ;;  %v5555_v19 = vpop.f32.mrb[2].mxu0  ;;  %v5571_v22 = vpop.f32.mrb[2].mxu1 }
 0x233   : > { %v1108_v23 = vsel %vm1104_vm9, %v876_v13, 0.0  ;;  %v1338_v24 = vsel %vm6608_vm7, %v876_v13, 0.0  ;;  %v1722_v25 = vsel %vm6612_vm8, %v876_v13, 0.0  ;;  %v2037_v26 = vsel %vm6617_vm10, %v876_v13, 0.0  ;;  %v879_v27 = vpop.f32.mrb[3].mxu0  ;;  %v976_v30 = vpop.f32.mrb[3].mxu1 }
 0x234   : > { %v1120_v31 = vsel %vm1104_vm9, %v973_v14, 0.0  ;;  %v1350_v32 = vsel %vm6608_vm7, %v973_v14, 0.0  ;;  %v1734_v33 = vsel %vm6612_vm8, %v973_v14, 0.0  ;;  %v2049_v34 = vsel %vm6617_vm10, %v973_v14, 0.0 }
 0x235   : > { %v6657_v35 = vsel %vm1104_vm9, %v5555_v19, 0.0  ;;  %v1341_v36 = vsel %vm6608_vm7, %v5555_v19, 0.0  ;;  %v1725_v20 = vsel %vm6612_vm8, %v5555_v19, 0.0  ;;  %v2040_v37 = vsel %vm6617_vm10, %v5555_v19, 0.0 }
 0x236   : > { %v1117_v40 = vpack.c.bf16 %v6657_v35, %v6623_v9  ;;  %v6667_v41 = vpack.c.bf16 %v1341_v36, %v1340_v10  ;;  %v6669_v42 = vpack.c.bf16 %v1725_v20, %v1724_v11  ;;  %v6671_v43 = vpack.c.bf16 %v2040_v37, %v2039_v12 }
 0x237   : > { %v1123_v44 = vsel %vm1104_vm9, %v5571_v22, 0.0  ;;  %v1353_v45 = vsel %vm6608_vm7, %v5571_v22, 0.0  ;;  %v1737_v46 = vsel %vm6612_vm8, %v5571_v22, 0.0  ;;  %v2052_v47 = vsel %vm6617_vm10, %v5571_v22, 0.0 }
 0x238   : > { %v6681_v28 = vpack.c.bf16 %v1123_v44, %v1122_v15  ;;  %v6683_v50 = vpack.c.bf16 %v1353_v45, %v1352_v16  ;;  %v6685_v51 = vpack.c.bf16 %v1737_v46, %v1736_v17  ;;  %v6687_v52 = vpack.c.bf16 %v2052_v47, %v2051_v18  ;;  %v5558_v21 = vpop.f32.mrb[4].mxu0  ;;  %v6689_v53 = vpop.f32.mrb[4].mxu1 }
 0x239   : > { %v1109_v54 = vsel %vm1104_vm9, %v879_v27, 0.0  ;;  %v1339_v55 = vsel %vm6608_vm7, %v879_v27, 0.0  ;;  %v1723_v56 = vsel %vm6612_vm8, %v879_v27, 0.0  ;;  %v2038_v29 = vsel %vm6617_vm10, %v879_v27, 0.0  ;;  %v6699_v38 = vpop.f32.mrb[5].mxu0  ;;  %v6701_v57 = vpop.f32.mrb[5].mxu1 }
 0x23a   : > { %v1116_v58 = vpack.c.bf16 %v1109_v54, %v1108_v23  ;;  %v1346_v59 = vpack.c.bf16 %v1339_v55, %v1338_v24  ;;  %v6703_v60 = vpack.c.bf16 %v1723_v56, %v1722_v25  ;;  %v6705_v61 = vpack.c.bf16 %v2038_v29, %v2037_v26  ;;  %v5559_v39 = vpop.f32.mrb[6].mxu0  ;;  %v5575_v48 = vpop.f32.mrb[6].mxu1 }
 0x23b   : > { %v1121_v62 = vsel %vm1104_vm9, %v976_v30, 0.0  ;;  %v1351_v63 = vsel %vm6608_vm7, %v976_v30, 0.0  ;;  %v1735_v1 = vsel %vm6612_vm8, %v976_v30, 0.0  ;;  %v2050_v2 = vsel %vm6617_vm10, %v976_v30, 0.0  ;;  %v895_v49 = vpop.f32.mrb[7].mxu0  ;;  %v6715_v0 = vpop.f32.mrb[7].mxu1 }
 0x23c   : > { %v1128_v7 = vpack.c.bf16 %v1121_v62, %v1120_v31  ;;  %v1358_v8 = vpack.c.bf16 %v1351_v63, %v1350_v32  ;;  %v6717_v10 = vpack.c.bf16 %v1735_v1, %v1734_v33  ;;  %v6719_v11 = vpack.c.bf16 %v2050_v2, %v2049_v34  ;;  %5600 = vmatprep.mubr.msk.bf16.mxu1 %vm660_vm0, %v1116_v58 }
 0x23d   : > { %5616 = vmatprep.mubr.msk.bf16.mxu0 %vm660_vm0, %v1346_v59  ;;  %v6725_v12 = vsel %vm1104_vm9, %v5558_v21, 0.0  ;;  %v1344_v13 = vsel %vm6608_vm7, %v5558_v21, 0.0  ;;  %v1728_v14 = vsel %vm6612_vm8, %v5558_v21, 0.0  ;;  %v2043_v15 = vsel %vm6617_vm10, %v5558_v21, 0.0 }
 0x23e   : > { %5930 = vmatprep.subr.msk.bf16.mxu1 %vm660_vm0, %v1128_v7  ;;  %5934 = vmatprep.subr.msk.bf16.mxu0 %vm660_vm0, %v1358_v8  ;;  %v1126_v16 = vsel %vm1104_vm9, %v6689_v53, 0.0  ;;  %v1356_v17 = vsel %vm6608_vm7, %v6689_v53, 0.0  ;;  %v1740_v18 = vsel %vm6612_vm8, %v6689_v53, 0.0  ;;  %v2055_v19 = vsel %vm6617_vm10, %v6689_v53, 0.0 }
 0x23f   : > { %v1157_v22 = vsel %vm660_vm0, %v1128_v7, 0  ;;  %v1387_v23 = vsel %vm660_vm0, %v1358_v8, 0  ;;  %v6752_v24 = vsel %vm1104_vm9, %v6699_v38, 0.0  ;;  %v1342_v25 = vsel %vm6608_vm7, %v6699_v38, 0.0 }
 0x240   : > { %5593 = vmatpush3.bf16.xpose.msra.mxu1 %v1157_v22  ;;  %5609 = vmatpush3.bf16.xpose.msra.mxu0 %v1387_v23  ;;  %v1726_v26 = vsel %vm6612_vm8, %v6699_v38, 0.0  ;;  %v2041_v27 = vsel %vm6617_vm10, %v6699_v38, 0.0  ;;  %v1124_v30 = vsel %vm1104_vm9, %v6701_v57, 0.0  ;;  %v1354_v31 = vsel %vm6608_vm7, %v6701_v57, 0.0  ;;  %v5586_v32 = vpop.f32.mrb[8].mxu0 }
 0x241   : > { %v1738_v33 = vsel %vm6612_vm8, %v6701_v57, 0.0  ;;  %v2053_v34 = vsel %vm6617_vm10, %v6701_v57, 0.0  ;;  %5931 = vmatprep.subr.msk.bf16.mxu1 %vm660_vm0, %v6681_v28  ;;  %5935 = vmatprep.subr.msk.bf16.mxu0 %vm660_vm0, %v6683_v50  ;;  %v6781_v36 = vsel %vm1104_vm9, %v5559_v39, 0.0  ;;  %v1345_v20 = vsel %vm6608_vm7, %v5559_v39, 0.0  ;;  %v1070_v37 = vpop.f32.mrb[9].mxu0 }
 0x242   : > { %v1119_v44 = vpack.c.bf16 %v6781_v36, %v6725_v12  ;;  %v6787_v45 = vpack.c.bf16 %v1345_v20, %v1344_v13  ;;  %v1729_v46 = vsel %vm6612_vm8, %v5559_v39, 0.0  ;;  %v2044_v47 = vsel %vm6617_vm10, %v5559_v39, 0.0  ;;  %v5587_v21 = vpop.f32.mrb[10].mxu0 }
 0x243   : > { %v6793_v53 = vpack.c.bf16 %v1729_v46, %v1728_v14  ;;  %v6795_v54 = vpack.c.bf16 %v2044_v47, %v2043_v15  ;;  %v1127_v55 = vsel %vm1104_vm9, %v5575_v48, 0.0  ;;  %v1357_v56 = vsel %vm6608_vm7, %v5575_v48, 0.0  ;;  %v1073_v29 = vpop.f32.mrb[11].mxu0 }
 0x244   : > { %v1131_v38 = vpack.c.bf16 %v1127_v55, %v1126_v16  ;;  %v1361_v57 = vpack.c.bf16 %v1357_v56, %v1356_v17  ;;  %v1741_v58 = vsel %vm6612_vm8, %v5575_v48, 0.0  ;;  %v2056_v59 = vsel %vm6617_vm10, %v5575_v48, 0.0 }
 0x245   : > { %v6805_v39 = vpack.c.bf16 %v1741_v58, %v1740_v18  ;;  %v6807_v62 = vpack.c.bf16 %v2056_v59, %v2055_v19  ;;  %v1113_v63 = vsel %vm1104_vm9, %v895_v49, 0.0  ;;  %v1343_v1 = vsel %vm6608_vm7, %v895_v49, 0.0 }
 0x246   : > { %v1118_v2 = vpack.c.bf16 %v1113_v63, %v6752_v24  ;;  %v1348_v7 = vpack.c.bf16 %v1343_v1, %v1342_v25  ;;  %v1727_v8 = vsel %vm6612_vm8, %v895_v49, 0.0  ;;  %v2042_v13 = vsel %vm6617_vm10, %v895_v49, 0.0 }
 0x247   : > { %v6818_v48 = vpack.c.bf16 %v1727_v8, %v1726_v26  ;;  %v6820_v14 = vpack.c.bf16 %v2042_v13, %v2041_v27  ;;  %v1125_v15 = vsel %vm1104_vm9, %v6715_v0, 0.0  ;;  %v1355_v16 = vsel %vm6608_vm7, %v6715_v0, 0.0 }
 0x248   : > { %v1130_v17 = vpack.c.bf16 %v1125_v15, %v1124_v30  ;;  %v1360_v18 = vpack.c.bf16 %v1355_v16, %v1354_v31  ;;  %v1739_v19 = vsel %vm6612_vm8, %v6715_v0, 0.0  ;;  %v2054_v49 = vsel %vm6617_vm10, %v6715_v0, 0.0  ;;  %v5590_v22 = vpop.f32.mrb[12].mxu0 }
 0x249   : > { %v1744_v23 = vpack.c.bf16 %v1739_v19, %v1738_v33  ;;  %v6834_v24 = vpack.c.bf16 %v2054_v49, %v2053_v34  ;;  %v1160_v25 = vsel %vm660_vm0, %v6681_v28, 0  ;;  %v1390_v26 = vsel %vm660_vm0, %v6683_v50, 0  ;;  %v1086_v27 = vpop.f32.mrb[13].mxu0 }
 0x24a   : > { %5595 = vmatpush3.bf16.xpose.msra.mxu1 %v1160_v25  ;;  %5611 = vmatpush3.bf16.xpose.msra.mxu0 %v1390_v26  ;;  %v6840_v30 = vpack.c.bf16 %v5587_v21, %v5586_v32  ;;  %v6842_v31 = vpack.c.bf16 %v1073_v29, %v1070_v37  ;;  %v5591_v20 = vpop.f32.mrb[14].mxu0  ;;  %v1163_v28 = vsel %vm660_vm0, %v1130_v17, 0  ;;  %v1393_v50 = vsel %vm660_vm0, %v1360_v18, 0 }
 0x24b   : > { %5932 = vmatprep.subr.msk.bf16.mxu1 %vm660_vm0, %v1130_v17  ;;  %5936 = vmatprep.subr.msk.bf16.mxu0 %vm660_vm0, %v1360_v18  ;;  %v6846_v0 = vpack.c.bf16 %v5591_v20, %v5590_v22  ;;  %v1089_v33 = vpop.f32.mrb[15].mxu0  ;;  %v1166_v37 = vsel %vm660_vm0, %v1131_v38, 0  ;;  %v1396_v46 = vsel %vm660_vm0, %v1361_v57, 0  ;;  %v1771_v47 = vsel %vm660_vm0, %v6717_v10, 0 }
 0x24c   : > { %v6848_v34 = vpack.c.bf16 %v1089_v33, %v1086_v27  ;;  %v1774_v9 = vsel %vm660_vm0, %v6685_v51, 0 }
 0x252   : > { %5597 = vmatpush3.bf16.xpose.msra.mxu1 %v1163_v28  ;;  %5613 = vmatpush3.bf16.xpose.msra.mxu0 %v1393_v50 }
 0x253   : > { %5933 = vmatprep.subr.msk.bf16.mxu1 %vm660_vm0, %v1131_v38  ;;  %5937 = vmatprep.subr.msk.bf16.mxu0 %vm660_vm0, %v1361_v57 }
 0x25a   : > { %5599 = vmatpush3.bf16.xpose.msra.mxu1 %v1166_v37  ;;  %5615 = vmatpush3.bf16.xpose.msra.mxu0 %v1396_v46 }
 0x25b   : > { %5624 = vmatprep.subr.msk.bf16.mxu1 %vm6857_vm11, %v6842_v31  ;;  %5938 = vmatprep.subr.msk.bf16.mxu0 %vm660_vm0, %v6717_v10  ;;  %v2095_v10 = vsel %vm660_vm0, %v6807_v62, 0 }
 0x261   : > { %5601 = vmatmul.mubr.msk.bf16.vlgmr.msra.gmra.mrb[8].mxu1 %vm660_vm0, %v1117_v40  ;;  %5617 = vmatmul.mubr.msk.bf16.vlgmr.msra.gmra.mrb[16].mxu0 %vm660_vm0, %v6667_v41  ;;  %v1777_v40 = vsel %vm660_vm0, %v1744_v23, 0  ;;  %v1780_v41 = vsel %vm660_vm0, %v6805_v39, 0 }
 0x262   : > { %5604 = vmatprep.mubr.msk.bf16.mxu1 %vm660_vm0, %v1118_v2  ;;  %5620 = vmatprep.mubr.msk.bf16.mxu0 %vm660_vm0, %v1348_v7 }
 0x263   : > { %5625 = vmatpush3.bf16.msk.msra.mxu1 %vm6857_vm11, %v6842_v31  ;;  %5657 = vmatpush3.bf16.xpose.msra.mxu0 %v1771_v47 }
 0x264   : > { %5626 = vmatprep.subr.msk.bf16.mxu1 %vm6857_vm11, %v6840_v30  ;;  %5939 = vmatprep.subr.msk.bf16.mxu0 %vm660_vm0, %v6685_v51  ;;  %v2086_v51 = vsel %vm660_vm0, %v6719_v11, 0 }
 0x267   : > { %5627 = vmatpush3.bf16.msk.msra.mxu1 %vm6857_vm11, %v6840_v30 }
 0x268   : > { %5628 = vmatprep.subr.msk.bf16.mxu1 %vm6857_vm11, %v6848_v34 }
 0x269   : > { %5605 = vmatmul.mubr.msk.bf16.gmra.mrb[12].mxu1 %vm660_vm0, %v1119_v44  ;;  %5621 = vmatmul.mubr.msk.bf16.gmra.mrb[20].mxu0 %vm660_vm0, %v6787_v45 }
 0x26a   : > { %5664 = vmatprep.mubr.msk.bf16.mxu0 %vm660_vm0, %v6703_v60  ;;  %v2089_v60 = vsel %vm660_vm0, %v6687_v52, 0 }
 0x26b   : > { %5629 = vmatpush3.bf16.msk.msra.mxu1 %vm6857_vm11, %v6848_v34  ;;  %5659 = vmatpush3.bf16.xpose.msra.mxu0 %v1774_v9 }
 0x26c   : > { %5630 = vmatprep.subr.msk.bf16.mxu1 %vm6857_vm11, %v6846_v0  ;;  %5940 = vmatprep.subr.msk.bf16.mxu0 %vm660_vm0, %v1744_v23 }
 0x26f   : > { %5631 = vmatpush3.bf16.msk.msra.mxu1 %vm6857_vm11, %v6846_v0 }
 0x270   : > { %5640 = vmatprep.subr.msk.bf16.mxu1 %vm6912_vm12, %v6842_v31 }
 0x273   : > { %5661 = vmatpush3.bf16.xpose.msra.mxu0 %v1777_v40 }
 0x274   : > { %5941 = vmatprep.subr.msk.bf16.mxu0 %vm660_vm0, %v6805_v39 }
 0x27b   : > { %5663 = vmatpush3.bf16.xpose.msra.mxu0 %v1780_v41 }
 0x27c   : > { %5942 = vmatprep.subr.msk.bf16.mxu0 %vm660_vm0, %v6719_v11 }
 0x282   : > { %5665 = vmatmul.mubr.msk.bf16.vlgmr.msra.gmra.mrb[24].mxu0 %vm660_vm0, %v6669_v42  ;;  %v2092_v42 = vsel %vm660_vm0, %v6834_v24, 0 }
 0x283   : > { %5668 = vmatprep.mubr.msk.bf16.mxu0 %vm660_vm0, %v6818_v48  ;;  %5689 = vmatpush3.bf16.xpose.msra.mxu0 %v2086_v51 }
 0x284   : > { %5943 = vmatprep.subr.msk.bf16.mxu0 %vm660_vm0, %v6687_v52 }
 0x28a   : > { %5669 = vmatmul.mubr.msk.bf16.gmra.mrb[28].mxu0 %vm660_vm0, %v6793_v53 }
 0x28b   : > { %5691 = vmatpush3.bf16.xpose.msra.mxu0 %v2089_v60  ;;  %5696 = vmatprep.mubr.msk.bf16.mxu0 %vm660_vm0, %v6705_v61 }
 0x28c   : > { %5944 = vmatprep.subr.msk.bf16.mxu0 %vm660_vm0, %v6834_v24 }
 0x293   : > { %5693 = vmatpush3.bf16.xpose.msra.mxu0 %v2092_v42 }
 0x294   : > { %5945 = vmatprep.subr.msk.bf16.mxu0 %vm660_vm0, %v6807_v62 }
 0x29b   : > { %5695 = vmatpush3.bf16.xpose.msra.mxu0 %v2095_v10 }
 0x2a2   : > { %5697 = vmatmul.mubr.msk.bf16.vlgmr.msra.gmra.mrb[32].mxu0 %vm660_vm0, %v6671_v43 }
 0x2a3   : > { %5700 = vmatprep.mubr.msk.bf16.mxu0 %vm660_vm0, %v6820_v14 }
 0x2aa   : > { %5701 = vmatmul.mubr.msk.bf16.gmra.mrb[36].mxu0 %vm660_vm0, %v6795_v54 }
 0x334   : > { %v5602_v52 = vpop.f32.mrb[8].mxu1  ;;  %v5618_v61 = vpop.f32.mrb[16].mxu0 }
 0x335   : > { %v1202_v11 = vpop.f32.mrb[9].mxu1  ;;  %v1432_v12 = vpop.f32.mrb[17].mxu0  ;;  %v6959_v55 = vmul.f32 0.25, %v5618_v61  ;;  %v6993_v22 = vmul.f32 0.25, %v5602_v52 }
 0x336   : > { %v6957_v36 = vmul.f32 0.25, %v1432_v12  ;;  %v5603_v44 = vpop.f32.mrb[10].mxu1  ;;  %v5619_v45 = vpop.f32.mrb[18].mxu0  ;;  %v6985_v17 = vmul.f32 0.25, %v1202_v11 }
 0x337   : > { %v1205_v21 = vpop.f32.mrb[11].mxu1  ;;  %v1435_v53 = vpop.f32.mrb[19].mxu0  ;;  %v6965_v29 = vmul.f32 0.25, %v5619_v45  ;;  %v1477_v58 = vsel %vm660_vm0, %v6959_v55, -inf  ;;  %v6997_v24 = vmul.f32 0.25, %v5603_v44  ;;  %v1247_v27 = vsel %vm660_vm0, %v6993_v22, -inf }
 0x338   : > { %v6961_v56 = vmul.f32 0.25, %v1435_v53  ;;  %v1471_v43 = vsel %vm660_vm0, %v6957_v36, -inf  ;;  %v6989_v19 = vmul.f32 0.25, %v1205_v21  ;;  %v1241_v23 = vsel %vm660_vm0, %v6985_v17, -inf }
 0x339   : > { %1472 = vmax.xlane.f32.xlu0 %v1471_v43  ;;  %v1480_v2 = vsel %vm660_vm0, %v6965_v29, -inf  ;;  %v1250_v33 = vsel %vm660_vm0, %v6997_v24, -inf }
 0x33a   : > { %v1474_v54 = vsel %vm660_vm0, %v6961_v56, -inf  ;;  %v1244_v25 = vsel %vm660_vm0, %v6989_v19, -inf }
 0x33b   : > { %1475 = vmax.xlane.f32.xlu1 %v1474_v54 }
 0x33c   : > { %v5606_v38 = vpop.f32.mrb[12].mxu1  ;;  %v5622_v57 = vpop.f32.mrb[20].mxu0 }
 0x33d   : > { %v1218_v59 = vpop.f32.mrb[13].mxu1  ;;  %1478 = vmax.xlane.f32.xlu0 %v1477_v58  ;;  %v1448_v39 = vpop.f32.mrb[21].mxu0  ;;  %v6975_v13 = vmul.f32 0.25, %v5622_v57  ;;  %v7009_v28 = vmul.f32 0.25, %v5606_v38 }
 0x33e   : > { %v6971_v62 = vmul.f32 0.25, %v1448_v39  ;;  %v5607_v63 = vpop.f32.mrb[14].mxu1  ;;  %v5623_v1 = vpop.f32.mrb[22].mxu0  ;;  %v7001_v26 = vmul.f32 0.25, %v1218_v59 }
 0x33f   : > { %v1221_v7 = vpop.f32.mrb[15].mxu1  ;;  %1481 = vmax.xlane.f32.xlu1 %v1480_v2  ;;  %v1451_v8 = vpop.f32.mrb[23].mxu0  ;;  %v6981_v15 = vmul.f32 0.25, %v5623_v1  ;;  %v1489_v18 = vsel %vm660_vm0, %v6975_v13, -inf  ;;  %v7013_v32 = vmul.f32 0.25, %v5607_v63  ;;  %v1259_v46 = vsel %vm660_vm0, %v7009_v28, -inf }
 0x340   : > { %v6977_v48 = vmul.f32 0.25, %v1451_v8  ;;  %v1483_v14 = vsel %vm660_vm0, %v6971_v62, -inf  ;;  %v7005_v20 = vmul.f32 0.25, %v1221_v7  ;;  %v1253_v50 = vsel %vm660_vm0, %v7001_v26, -inf }
 0x341   : > { %1484 = vmax.xlane.f32.xlu0 %v1483_v14  ;;  %v1492_v49 = vsel %vm660_vm0, %v6981_v15, -inf  ;;  %v1262_v40 = vsel %vm660_vm0, %v7013_v32, -inf }
 0x342   : > { %v1486_v16 = vsel %vm660_vm0, %v6977_v48, -inf  ;;  %v1256_v37 = vsel %vm660_vm0, %v7005_v20, -inf }
 0x343   : > { %1487 = vmax.xlane.f32.xlu1 %v1486_v16 }
 0x345   : > { %1490 = vmax.xlane.f32.xlu0 %v1489_v18 }
 0x347   : > { %1493 = vmax.xlane.f32.xlu1 %v1492_v49 }
 0x349   : > { %1242 = vmax.xlane.f32.xlu0 %v1241_v23 }
 0x34b   : > { %1245 = vmax.xlane.f32.xlu1 %v1244_v25 }
 0x34d   : > { %1248 = vmax.xlane.f32.xlu0 %v1247_v27 }
 0x34f   : > { %1251 = vmax.xlane.f32.xlu1 %v1250_v33 }
 0x351   : > { %1254 = vmax.xlane.f32.xlu0 %v1253_v50 }
 0x353   : > { %1257 = vmax.xlane.f32.xlu1 %v1256_v37 }
 0x355   : > { %v5666_v47 = vpop.f32.mrb[24].mxu0  ;;  %1260 = vmax.xlane.f32.xlu0 %v1259_v46 }
 0x356   : > { %v1816_v9 = vpop.f32.mrb[25].mxu0  ;;  %v7023_v42 = vmul.f32 0.25, %v5666_v47 }
 0x357   : > { %v7021_v41 = vmul.f32 0.25, %v1816_v9  ;;  %v5667_v51 = vpop.f32.mrb[26].mxu0  ;;  %1263 = vmax.xlane.f32.xlu1 %v1262_v40 }
 0x358   : > { %v1819_v60 = vpop.f32.mrb[27].mxu0  ;;  %v7029_v61 = vmul.f32 0.25, %v5667_v51  ;;  %v1861_v44 = vsel %vm660_vm0, %v7023_v42, -inf }
 0x359   : > { %v7025_v10 = vmul.f32 0.25, %v1819_v60  ;;  %v1855_v52 = vsel %vm660_vm0, %v7021_v41, -inf }
 0x35a   : > { %1856 = vmax.xlane.f32.xlu0 %v1855_v52  ;;  %v1864_v43 = vsel %vm660_vm0, %v7029_v61, -inf }
 0x35b   : > { %v1858_v11 = vsel %vm660_vm0, %v7025_v10, -inf }
 0x35c   : > { %1859 = vmax.xlane.f32.xlu1 %v1858_v11 }
 0x35d   : > { %v5670_v12 = vpop.f32.mrb[28].mxu0 }
 0x35e   : > { %1862 = vmax.xlane.f32.xlu0 %v1861_v44  ;;  %v1832_v45 = vpop.f32.mrb[29].mxu0  ;;  %v7039_v38 = vmul.f32 0.25, %v5670_v12 }
 0x35f   : > { %v7035_v21 = vmul.f32 0.25, %v1832_v45  ;;  %v5671_v53 = vpop.f32.mrb[30].mxu0 }
 0x360   : > { %v1835_v54 = vpop.f32.mrb[31].mxu0  ;;  %1865 = vmax.xlane.f32.xlu1 %v1864_v43  ;;  %v7045_v59 = vmul.f32 0.25, %v5671_v53  ;;  %v1873_v63 = vsel %vm660_vm0, %v7039_v38, -inf }
 0x361   : > { %v7041_v57 = vmul.f32 0.25, %v1835_v54  ;;  %v1867_v58 = vsel %vm660_vm0, %v7035_v21, -inf }
 0x362   : > { %1868 = vmax.xlane.f32.xlu0 %v1867_v58  ;;  %v1876_v1 = vsel %vm660_vm0, %v7045_v59, -inf }
 0x363   : > { %v1870_v39 = vsel %vm660_vm0, %v7041_v57, -inf }
 0x364   : > { %1871 = vmax.xlane.f32.xlu1 %v1870_v39 }
 0x366   : > { %1874 = vmax.xlane.f32.xlu0 %v1873_v63 }
 0x368   : > { %1877 = vmax.xlane.f32.xlu1 %v1876_v1 }
 0x375   : > { %v5698_v2 = vpop.f32.mrb[32].mxu0 }
 0x376   : > { %v2131_v7 = vpop.f32.mrb[33].mxu0  ;;  %v7055_v18 = vmul.f32 0.25, %v5698_v2 }
 0x377   : > { %v7053_v8 = vmul.f32 0.25, %v2131_v7  ;;  %v5699_v14 = vpop.f32.mrb[34].mxu0 }
 0x378   : > { %v2134_v16 = vpop.f32.mrb[35].mxu0  ;;  %v7061_v25 = vmul.f32 0.25, %v5699_v14  ;;  %v2176_v50 = vsel %vm660_vm0, %v7055_v18, -inf }
 0x379   : > { %v7057_v49 = vmul.f32 0.25, %v2134_v16  ;;  %v2170_v23 = vsel %vm660_vm0, %v7053_v8, -inf }
 0x37a   : > { %2171 = vmax.xlane.f32.xlu0 %v2170_v23  ;;  %v2179_v9 = vsel %vm660_vm0, %v7061_v25, -inf }
 0x37b   : > { %v2173_v27 = vsel %vm660_vm0, %v7057_v49, -inf }
 0x37c   : > { %2174 = vmax.xlane.f32.xlu1 %v2173_v27 }
 0x37d   : > { %v5702_v33 = vpop.f32.mrb[36].mxu0 }
 0x37e   : > { %2177 = vmax.xlane.f32.xlu0 %v2176_v50  ;;  %v2147_v37 = vpop.f32.mrb[37].mxu0  ;;  %v7071_v51 = vmul.f32 0.25, %v5702_v33 }
 0x37f   : > { %v7067_v46 = vmul.f32 0.25, %v2147_v37  ;;  %v5703_v47 = vpop.f32.mrb[38].mxu0 }
 0x380   : > { %v2150_v40 = vpop.f32.mrb[39].mxu0  ;;  %2180 = vmax.xlane.f32.xlu1 %v2179_v9  ;;  %v7077_v11 = vmul.f32 0.25, %v5703_v47  ;;  %v2188_v44 = vsel %vm660_vm0, %v7071_v51, -inf }
 0x381   : > { %v7073_v60 = vmul.f32 0.25, %v2150_v40  ;;  %v2182_v52 = vsel %vm660_vm0, %v7067_v46, -inf }
 0x382   : > { %2183 = vmax.xlane.f32.xlu0 %v2182_v52  ;;  %v2191_v45 = vsel %vm660_vm0, %v7077_v11, -inf }
 0x383   : > { %v2185_v12 = vsel %vm660_vm0, %v7073_v60, -inf }
 0x384   : > { %2186 = vmax.xlane.f32.xlu1 %v2185_v12 }
 0x386   : > { %2189 = vmax.xlane.f32.xlu0 %v2188_v44 }
 0x388   : > { %2192 = vmax.xlane.f32.xlu1 %v2191_v45 }
 0x3c6   : > { %v1473_v53 = vpop.xlane.xlu0 %1472 }
 0x3c7   : > { %v1495_v43 = vsub.f32 %v6957_v36, %v1473_v53 }
 0x3c8   : > { %v1476_v54 = vpop.xlane.xlu1 %1475 }
 0x3c9   : > { %v1503_v58 = vmul.f32 1.442695, %v1495_v43  ;;  %v1496_v39 = vsub.f32 %v6961_v56, %v1476_v54 }
 0x3ca   : > { %v1479_v63 = vpop.xlane.xlu0 %1478 }
 0x3cb   : > { %6017 = vpow2.f32 %v1503_v58  ;;  %v1505_v1 = vmul.f32 1.442695, %v1496_v39  ;;  %v1497_v2 = vsub.f32 %v6959_v55, %v1479_v63 }
 0x3cc   : > { %v1482_v7 = vpop.xlane.xlu1 %1481 }
 0x3cd   : > { %6019 = vpow2.f32 %v1505_v1  ;;  %v1507_v14 = vmul.f32 1.442695, %v1497_v2  ;;  %v1498_v16 = vsub.f32 %v6965_v29, %v1482_v7 }
 0x3ce   : > { %v1485_v23 = vpop.xlane.xlu0 %1484 }
 0x3cf   : > { %6021 = vpow2.f32 %v1507_v14  ;;  %v1509_v27 = vmul.f32 1.442695, %v1498_v16  ;;  %v1499_v33 = vsub.f32 %v6971_v62, %v1485_v23 }
 0x3d0   : > { %v1488_v36 = vpop.xlane.xlu1 %1487 }
 0x3d1   : > { %6023 = vpow2.f32 %v1509_v27  ;;  %v1511_v50 = vmul.f32 1.442695, %v1499_v33  ;;  %v1500_v56 = vsub.f32 %v6977_v48, %v1488_v36 }
 0x3d2   : > { %v1491_v37 = vpop.xlane.xlu0 %1490 }
 0x3d3   : > { %6025 = vpow2.f32 %v1511_v50  ;;  %v1513_v47 = vmul.f32 1.442695, %v1500_v56  ;;  %v1501_v55 = vsub.f32 %v6975_v13, %v1491_v37 }
 0x3d4   : > { %v1494_v9 = vpop.xlane.xlu1 %1493 }
 0x3d5   : > { %v7092_v40 = vpop.eup %6017  ;;  %6027 = vpow2.f32 %v1513_v47  ;;  %v1515_v29 = vmul.f32 1.442695, %v1501_v55  ;;  %v1502_v52 = vsub.f32 %v6981_v15, %v1494_v9 }
 0x3d6   : > { %v1243_v12 = vpop.xlane.xlu0 %1242  ;;  %v1519_v62 = vsel %vm660_vm0, %v7092_v40, 0.0 }
 0x3d7   : > { %v7097_v44 = vpop.eup %6019  ;;  %6029 = vpow2.f32 %v1515_v29  ;;  %v1517_v48 = vmul.f32 1.442695, %v1502_v52  ;;  %v1265_v45 = vsub.f32 %v6985_v17, %v1243_v12  ;;  %1520 = vadd.xlane.f32.xlu0 %v1519_v62 }
 0x3d8   : > { %v1246_v53 = vpop.xlane.xlu1 %1245  ;;  %v1522_v13 = vsel %vm660_vm0, %v7097_v44, 0.0 }
 0x3d9   : > { %v7102_v43 = vpop.eup %6021  ;;  %6031 = vpow2.f32 %v1517_v48  ;;  %v1273_v54 = vmul.f32 1.442695, %v1265_v45  ;;  %v1266_v15 = vsub.f32 %v6989_v19, %v1246_v53  ;;  %1523 = vadd.xlane.f32.xlu1 %v1522_v13 }
 0x3da   : > { %v1249_v58 = vpop.xlane.xlu0 %1248  ;;  %v1525_v39 = vsel %vm660_vm0, %v7102_v43, 0.0 }
 0x3db   : > { %v7107_v63 = vpop.eup %6023  ;;  %6033 = vpow2.f32 %v1273_v54  ;;  %v1275_v17 = vmul.f32 1.442695, %v1266_v15  ;;  %v1267_v1 = vsub.f32 %v6993_v22, %v1249_v58  ;;  %1526 = vadd.xlane.f32.xlu0 %v1525_v39 }
 0x3dc   : > { %v1252_v2 = vpop.xlane.xlu1 %1251  ;;  %v1528_v7 = vsel %vm660_vm0, %v7107_v63, 0.0 }
 0x3dd   : > { %v7112_v14 = vpop.eup %6025  ;;  %6035 = vpow2.f32 %v1275_v17  ;;  %v1277_v19 = vmul.f32 1.442695, %v1267_v1  ;;  %v1268_v16 = vsub.f32 %v6997_v24, %v1252_v2  ;;  %1529 = vadd.xlane.f32.xlu1 %v1528_v7 }
 0x3de   : > { %v1255_v23 = vpop.xlane.xlu0 %1254  ;;  %v1531_v27 = vsel %vm660_vm0, %v7112_v14, 0.0 }
 0x3df   : > { %v7117_v33 = vpop.eup %6027  ;;  %6037 = vpow2.f32 %v1277_v19  ;;  %v1279_v22 = vmul.f32 1.442695, %v1268_v16  ;;  %v1269_v36 = vsub.f32 %v7001_v26, %v1255_v23  ;;  %1532 = vadd.xlane.f32.xlu0 %v1531_v27 }
 0x3e0   : > { %v1258_v50 = vpop.xlane.xlu1 %1257  ;;  %v1534_v56 = vsel %vm660_vm0, %v7117_v33, 0.0 }
 0x3e1   : > { %v7122_v37 = vpop.eup %6029  ;;  %6039 = vpow2.f32 %v1279_v22  ;;  %v1281_v24 = vmul.f32 1.442695, %v1269_v36  ;;  %v1270_v47 = vsub.f32 %v7005_v20, %v1258_v50  ;;  %1535 = vadd.xlane.f32.xlu1 %v1534_v56 }
 0x3e2   : > { %v1261_v55 = vpop.xlane.xlu0 %1260  ;;  %v1537_v9 = vsel %vm660_vm0, %v7122_v37, 0.0 }
 0x3e3   : > { %v7127_v29 = vpop.eup %6031  ;;  %6041 = vpow2.f32 %v1281_v24  ;;  %v1283_v26 = vmul.f32 1.442695, %v1270_v47  ;;  %v1271_v52 = vsub.f32 %v7009_v28, %v1261_v55  ;;  %1538 = vadd.xlane.f32.xlu0 %v1537_v9 }
 0x3e4   : > { %v1264_v12 = vpop.xlane.xlu1 %1263  ;;  %v1540_v62 = vsel %vm660_vm0, %v7127_v29, 0.0 }
 0x3e5   : > { %v7132_v48 = vpop.eup %6033  ;;  %6043 = vpow2.f32 %v1283_v26  ;;  %v1285_v20 = vmul.f32 1.442695, %v1271_v52  ;;  %v1272_v45 = vsub.f32 %v7013_v32, %v1264_v12  ;;  %1541 = vadd.xlane.f32.xlu1 %v1540_v62 }
 0x3e6   : > { %v1289_v53 = vsel %vm660_vm0, %v7132_v48, 0.0 }
 0x3e7   : > { %v7137_v13 = vpop.eup %6035  ;;  %6045 = vpow2.f32 %v1285_v20  ;;  %v1287_v54 = vmul.f32 1.442695, %v1272_v45  ;;  %v1857_v28 = vpop.xlane.xlu0 %1856  ;;  %1290 = vadd.xlane.f32.xlu0 %v1289_v53 }
 0x3e8   : > { %v1879_v15 = vsub.f32 %v7021_v41, %v1857_v28  ;;  %v1292_v58 = vsel %vm660_vm0, %v7137_v13, 0.0 }
 0x3e9   : > { %v7142_v39 = vpop.eup %6037  ;;  %6047 = vpow2.f32 %v1287_v54  ;;  %v1860_v17 = vpop.xlane.xlu1 %1859  ;;  %1293 = vadd.xlane.f32.xlu1 %v1292_v58 }
 0x3ea   : > { %v1887_v32 = vmul.f32 1.442695, %v1879_v15  ;;  %v1880_v1 = vsub.f32 %v7025_v10, %v1860_v17  ;;  %v1295_v2 = vsel %vm660_vm0, %v7142_v39, 0.0 }
 0x3eb   : > { %v7147_v7 = vpop.eup %6039  ;;  %v1863_v19 = vpop.xlane.xlu0 %1862  ;;  %1296 = vadd.xlane.f32.xlu0 %v1295_v2 }
 0x3ec   : > { %6049 = vpow2.f32 %v1887_v32  ;;  %v1889_v41 = vmul.f32 1.442695, %v1880_v1  ;;  %v1881_v16 = vsub.f32 %v7023_v42, %v1863_v19  ;;  %v1298_v23 = vsel %vm660_vm0, %v7147_v7, 0.0 }
 0x3ed   : > { %v7152_v27 = vpop.eup %6041  ;;  %v1866_v22 = vpop.xlane.xlu1 %1865  ;;  %1299 = vadd.xlane.f32.xlu1 %v1298_v23 }
 0x3ee   : > { %6051 = vpow2.f32 %v1889_v41  ;;  %v1891_v10 = vmul.f32 1.442695, %v1881_v16  ;;  %v1882_v36 = vsub.f32 %v7029_v61, %v1866_v22  ;;  %v1301_v50 = vsel %vm660_vm0, %v7152_v27, 0.0 }
 0x3ef   : > { %v7157_v56 = vpop.eup %6043  ;;  %v1869_v24 = vpop.xlane.xlu0 %1868  ;;  %1302 = vadd.xlane.f32.xlu0 %v1301_v50 }
 0x3f0   : > { %6053 = vpow2.f32 %v1891_v10  ;;  %v1893_v42 = vmul.f32 1.442695, %v1882_v36  ;;  %v1883_v47 = vsub.f32 %v7035_v21, %v1869_v24  ;;  %v1304_v55 = vsel %vm660_vm0, %v7157_v56, 0.0 }
 0x3f1   : > { %v7162_v9 = vpop.eup %6045  ;;  %v1872_v26 = vpop.xlane.xlu1 %1871  ;;  %1305 = vadd.xlane.f32.xlu1 %v1304_v55 }
 0x3f2   : > { %6055 = vpow2.f32 %v1893_v42  ;;  %v1895_v61 = vmul.f32 1.442695, %v1883_v47  ;;  %v1884_v52 = vsub.f32 %v7041_v57, %v1872_v26  ;;  %v1307_v12 = vsel %vm660_vm0, %v7162_v9, 0.0 }
 0x3f3   : > { %v7167_v62 = vpop.eup %6047  ;;  %v1875_v20 = vpop.xlane.xlu0 %1874  ;;  %1308 = vadd.xlane.f32.xlu0 %v1307_v12 }
 0x3f4   : > { %6057 = vpow2.f32 %v1895_v61  ;;  %v1897_v21 = vmul.f32 1.442695, %v1884_v52  ;;  %v1885_v45 = vsub.f32 %v7039_v38, %v1875_v20  ;;  %v1310_v53 = vsel %vm660_vm0, %v7167_v62, 0.0 }
 0x3f5   : > { %v1878_v54 = vpop.xlane.xlu1 %1877  ;;  %1311 = vadd.xlane.f32.xlu1 %v1310_v53 }
 0x3f6   : > { %v7172_v28 = vpop.eup %6049  ;;  %6059 = vpow2.f32 %v1897_v21  ;;  %v1899_v57 = vmul.f32 1.442695, %v1885_v45  ;;  %v1886_v15 = vsub.f32 %v7045_v59, %v1878_v54 }
 0x3f7   : > { %v1903_v58 = vsel %vm660_vm0, %v7172_v28, 0.0 }
 0x3f8   : > { %v7177_v17 = vpop.eup %6051  ;;  %6061 = vpow2.f32 %v1899_v57  ;;  %v1901_v32 = vmul.f32 1.442695, %v1886_v15  ;;  %1904 = vadd.xlane.f32.xlu0 %v1903_v58 }
 0x3f9   : > { %v1906_v38 = vsel %vm660_vm0, %v7177_v17, 0.0 }
 0x3fa   : > { %v7181_v1 = vpop.eup %6053  ;;  %6063 = vpow2.f32 %v1901_v32  ;;  %1907 = vadd.xlane.f32.xlu1 %v1906_v38 }
 0x3fb   : > { %v1909_v2 = vsel %vm660_vm0, %v7181_v1, 0.0 }
 0x3fc   : > { %v7185_v19 = vpop.eup %6055  ;;  %1910 = vadd.xlane.f32.xlu0 %v1909_v2 }
 0x3fd   : > { %v1912_v59 = vsel %vm660_vm0, %v7185_v19, 0.0 }
 0x3fe   : > { %v7189_v41 = vpop.eup %6057  ;;  %1913 = vadd.xlane.f32.xlu1 %v1912_v59 }
 0x3ff   : > { %v1915_v16 = vsel %vm660_vm0, %v7189_v41, 0.0 }
 0x400   : > { %v7193_v23 = vpop.eup %6059  ;;  %1916 = vadd.xlane.f32.xlu0 %v1915_v16 }
 0x401   : > { %v1918_v22 = vsel %vm660_vm0, %v7193_v23, 0.0 }
 0x402   : > { %v7197_v10 = vpop.eup %6061  ;;  %1919 = vadd.xlane.f32.xlu1 %v1918_v22 }
 0x403   : > { %v1921_v36 = vsel %vm660_vm0, %v7197_v10, 0.0 }
 0x404   : > { %v7201_v50 = vpop.eup %6063  ;;  %1922 = vadd.xlane.f32.xlu0 %v1921_v36 }
 0x405   : > { %v1924_v24 = vsel %vm660_vm0, %v7201_v50, 0.0 }
 0x406   : > { %1925 = vadd.xlane.f32.xlu1 %v1924_v24 }
 0x407   : > { %v2172_v42 = vpop.xlane.xlu0 %2171 }
 0x408   : > { %v2194_v47 = vsub.f32 %v7053_v8, %v2172_v42 }
 0x409   : > { %v2175_v55 = vpop.xlane.xlu1 %2174 }
 0x40a   : > { %v2202_v26 = vmul.f32 1.442695, %v2194_v47  ;;  %v2195_v61 = vsub.f32 %v7057_v49, %v2175_v55 }
 0x40b   : > { %v2178_v52 = vpop.xlane.xlu0 %2177 }
 0x40c   : > { %6065 = vpow2.f32 %v2202_v26  ;;  %v2204_v12 = vmul.f32 1.442695, %v2195_v61  ;;  %v2196_v20 = vsub.f32 %v7055_v18, %v2178_v52 }
 0x40d   : > { %v2181_v21 = vpop.xlane.xlu1 %2180 }
 0x40e   : > { %6067 = vpow2.f32 %v2204_v12  ;;  %v2206_v45 = vmul.f32 1.442695, %v2196_v20  ;;  %v2197_v53 = vsub.f32 %v7061_v25, %v2181_v21 }
 0x40f   : > { %v2184_v54 = vpop.xlane.xlu0 %2183 }
 0x410   : > { %6069 = vpow2.f32 %v2206_v45  ;;  %v2208_v57 = vmul.f32 1.442695, %v2197_v53  ;;  %v2198_v15 = vsub.f32 %v7067_v46, %v2184_v54 }
 0x411   : > { %v2187_v8 = vpop.xlane.xlu1 %2186 }
 0x412   : > { %6071 = vpow2.f32 %v2208_v57  ;;  %v2210_v58 = vmul.f32 1.442695, %v2198_v15  ;;  %v2199_v49 = vsub.f32 %v7073_v60, %v2187_v8 }
 0x413   : > { %v2190_v32 = vpop.xlane.xlu0 %2189 }
 0x414   : > { %6073 = vpow2.f32 %v2210_v58  ;;  %v2212_v38 = vmul.f32 1.442695, %v2199_v49  ;;  %v2200_v18 = vsub.f32 %v7071_v51, %v2190_v32 }
 0x415   : > { %v2193_v2 = vpop.xlane.xlu1 %2192 }
 0x416   : > { %v7212_v59 = vpop.eup %6065  ;;  %6075 = vpow2.f32 %v2212_v38  ;;  %v2214_v25 = vmul.f32 1.442695, %v2200_v18  ;;  %v2201_v16 = vsub.f32 %v7077_v11, %v2193_v2 }
 0x417   : > { %v2218_v46 = vsel %vm660_vm0, %v7212_v59, 0.0 }
 0x418   : > { %v7217_v22 = vpop.eup %6067  ;;  %6077 = vpow2.f32 %v2214_v25  ;;  %v2216_v36 = vmul.f32 1.442695, %v2201_v16  ;;  %2219 = vadd.xlane.f32.xlu0 %v2218_v46 }
 0x419   : > { %v2221_v60 = vsel %vm660_vm0, %v7217_v22, 0.0 }
 0x41a   : > { %v7221_v24 = vpop.eup %6069  ;;  %6079 = vpow2.f32 %v2216_v36  ;;  %2222 = vadd.xlane.f32.xlu1 %v2221_v60 }
 0x41b   : > { %v2224_v51 = vsel %vm660_vm0, %v7221_v24, 0.0 }
 0x41c   : > { %v7225_v42 = vpop.eup %6071  ;;  %2225 = vadd.xlane.f32.xlu0 %v2224_v51 }
 0x41d   : > { %v2227_v11 = vsel %vm660_vm0, %v7225_v42, 0.0 }
 0x41e   : > { %v7229_v47 = vpop.eup %6073  ;;  %2228 = vadd.xlane.f32.xlu1 %v2227_v11 }
 0x41f   : > { %v2230_v55 = vsel %vm660_vm0, %v7229_v47, 0.0 }
 0x420   : > { %v7233_v26 = vpop.eup %6075  ;;  %2231 = vadd.xlane.f32.xlu0 %v2230_v55 }
 0x421   : > { %v2233_v61 = vsel %vm660_vm0, %v7233_v26, 0.0 }
 0x422   : > { %v7237_v52 = vpop.eup %6077  ;;  %2234 = vadd.xlane.f32.xlu1 %v2233_v61 }
 0x423   : > { %v2236_v12 = vsel %vm660_vm0, %v7237_v52, 0.0 }
 0x424   : > { %v7241_v20 = vpop.eup %6079  ;;  %2237 = vadd.xlane.f32.xlu0 %v2236_v12 }
 0x425   : > { %v2239_v21 = vsel %vm660_vm0, %v7241_v20, 0.0 }
 0x426   : > { %2240 = vadd.xlane.f32.xlu1 %v2239_v21 }
 0x464   : > { %v1521_v45 = vpop.xlane.xlu0 %1520 }
 0x465   : > { %6081 = vrcp.f32 %v1521_v45 }
 0x466   : > { %v1524_v53 = vpop.xlane.xlu1 %1523 }
 0x467   : > { %6083 = vrcp.f32 %v1524_v53 }
 0x468   : > { %v1527_v54 = vpop.xlane.xlu0 %1526 }
 0x469   : > { %6085 = vrcp.f32 %v1527_v54 }
 0x46a   : > { %v1530_v57 = vpop.xlane.xlu1 %1529 }
 0x46b   : > { %6087 = vrcp.f32 %v1530_v57 }
 0x46c   : > { %v1533_v15 = vpop.xlane.xlu0 %1532 }
 0x46d   : > { %6089 = vrcp.f32 %v1533_v15 }
 0x46e   : > { %v1536_v8 = vpop.xlane.xlu1 %1535 }
 0x46f   : > { %v6082_v58 = vpop.eup %6081  ;;  %6091 = vrcp.f32 %v1536_v8 }
 0x470   : > { %v1539_v49 = vpop.xlane.xlu0 %1538  ;;  %v1551_v18 = vmul.f32 %v6082_v58, %v7092_v40 }
 0x471   : > { %v6084_v32 = vpop.eup %6083  ;;  %6093 = vrcp.f32 %v1539_v49 }
 0x472   : > { %v1542_v38 = vpop.xlane.xlu1 %1541  ;;  %v1552_v2 = vmul.f32 %v6084_v32, %v7097_v44 }
 0x473   : > { %v6086_v25 = vpop.eup %6085  ;;  %6095 = vrcp.f32 %v1542_v38 }
 0x474   : > { %v1291_v16 = vpop.xlane.xlu0 %1290  ;;  %v1559_v46 = vpack.c.bf16 %v1552_v2, %v1551_v18  ;;  %v1553_v60 = vmul.f32 %v6086_v25, %v7102_v43 }
 0x475   : > { %v6088_v36 = vpop.eup %6087  ;;  %6097 = vrcp.f32 %v1291_v16 }
 0x476   : > { %v1554_v51 = vmul.f32 %v6088_v36, %v7107_v63  ;;  %5632 = vmatprep.mubr.msk.bf16.mxu1 %vm660_vm0, %v1559_v46  ;;  %v1294_v11 = vpop.xlane.xlu1 %1293 }
 0x477   : > { %v6090_v55 = vpop.eup %6089  ;;  %6099 = vrcp.f32 %v1294_v11 }
 0x478   : > { %v1560_v61 = vpack.c.bf16 %v1554_v51, %v1553_v60  ;;  %v1297_v12 = vpop.xlane.xlu0 %1296  ;;  %v1555_v21 = vmul.f32 %v6090_v55, %v7112_v14 }
 0x479   : > { %v6092_v40 = vpop.eup %6091  ;;  %6101 = vrcp.f32 %v1297_v12 }
 0x47a   : > { %5633 = vmatmul.mubr.msk.bf16.vlgmr.msra.gmra.mrb[16].mxu1 %vm660_vm0, %v1560_v61  ;;  %v1300_v44 = vpop.xlane.xlu1 %1299  ;;  %v1556_v45 = vmul.f32 %v6092_v40, %v7117_v33 }
 0x47b   : > { %v6094_v53 = vpop.eup %6093  ;;  %5641 = vmatpush3.bf16.msk.msra.mxu1 %vm6912_vm12, %v6842_v31  ;;  %6103 = vrcp.f32 %v1300_v44 }
 0x47c   : > { %5642 = vmatprep.subr.msk.bf16.mxu1 %vm6912_vm12, %v6840_v30  ;;  %v1303_v43 = vpop.xlane.xlu0 %1302  ;;  %v1561_v63 = vpack.c.bf16 %v1556_v45, %v1555_v21  ;;  %v1557_v14 = vmul.f32 %v6094_v53, %v7122_v37 }
 0x47d   : > { %v6096_v54 = vpop.eup %6095  ;;  %6105 = vrcp.f32 %v1303_v43 }
 0x47e   : > { %5636 = vmatprep.mubr.msk.bf16.mxu1 %vm660_vm0, %v1561_v63  ;;  %v1306_v57 = vpop.xlane.xlu1 %1305  ;;  %v1558_v33 = vmul.f32 %v6096_v54, %v7127_v29 }
 0x47f   : > { %v6098_v15 = vpop.eup %6097  ;;  %5643 = vmatpush3.bf16.msk.msra.mxu1 %vm6912_vm12, %v6840_v30  ;;  %6107 = vrcp.f32 %v1306_v57 }
 0x480   : > { %5644 = vmatprep.subr.msk.bf16.mxu1 %vm6912_vm12, %v6848_v34  ;;  %v1309_v8 = vpop.xlane.xlu0 %1308  ;;  %v1562_v58 = vpack.c.bf16 %v1558_v33, %v1557_v14  ;;  %v1321_v37 = vmul.f32 %v6098_v15, %v7132_v48  ;;  %v6341_v14 = vld [vmem:[%s6476_s3 + $0x20] sm:$0xff] }
 0x481   : > { %v6100_v49 = vpop.eup %6099  ;;  %6109 = vrcp.f32 %v1309_v8 }
 0x482   : > { %5637 = vmatmul.mubr.msk.bf16.gmra.mrb[20].mxu1 %vm660_vm0, %v1562_v58  ;;  %v1312_v32 = vpop.xlane.xlu1 %1311  ;;  %v1322_v29 = vmul.f32 %v6100_v49, %v7137_v13 }
 0x483   : > { %v6102_v38 = vpop.eup %6101  ;;  %5645 = vmatpush3.bf16.msk.msra.mxu1 %vm6912_vm12, %v6848_v34  ;;  %6111 = vrcp.f32 %v1312_v32 }
 0x484   : > { %5646 = vmatprep.subr.msk.bf16.mxu1 %vm6912_vm12, %v6846_v0  ;;  %v1329_v18 = vpack.c.bf16 %v1322_v29, %v1321_v37  ;;  %v1323_v13 = vmul.f32 %v6102_v38, %v7142_v39 }
 0x485   : > { %v6104_v2 = vpop.eup %6103  ;;  %v1905_v25 = vpop.xlane.xlu0 %1904 }
 0x486   : > { %v1324_v16 = vmul.f32 %v6104_v2, %v7147_v7  ;;  %6113 = vrcp.f32 %v1905_v25  ;;  %5648 = vmatprep.mubr.msk.bf16.mxu1 %vm660_vm0, %v1329_v18 }
 0x487   : > { %v6106_v46 = vpop.eup %6105  ;;  %5647 = vmatpush3.bf16.msk.msra.mxu1 %vm6912_vm12, %v6846_v0  ;;  %v1908_v36 = vpop.xlane.xlu1 %1907 }
 0x488   : > { %v1330_v60 = vpack.c.bf16 %v1324_v16, %v1323_v13  ;;  %6115 = vrcp.f32 %v1908_v36  ;;  %5672 = vmatprep.subr.msk.bf16.mxu1 %vm7280_vm13, %v6842_v31  ;;  %v1325_v39 = vmul.f32 %v6106_v46, %v7152_v27 }
 0x489   : > { %v6108_v51 = vpop.eup %6107  ;;  %v1911_v11 = vpop.xlane.xlu0 %1910 }
 0x48a   : > { %6117 = vrcp.f32 %v1911_v11  ;;  %5649 = vmatmul.mubr.msk.bf16.vlgmr.msra.gmra.mrb[16].mxu1 %vm660_vm0, %v1330_v60  ;;  %v1326_v7 = vmul.f32 %v6108_v51, %v7157_v56 }
 0x48b   : > { %v6110_v55 = vpop.eup %6109  ;;  %5673 = vmatpush3.bf16.msk.msra.mxu1 %vm7280_vm13, %v6842_v31  ;;  %v1914_v35 = vpop.xlane.xlu1 %1913 }
 0x48c   : > { %6119 = vrcp.f32 %v1914_v35  ;;  %5674 = vmatprep.subr.msk.bf16.mxu1 %vm7280_vm13, %v6840_v30  ;;  %v1331_v61 = vpack.c.bf16 %v1326_v7, %v1325_v39  ;;  %v1327_v27 = vmul.f32 %v6110_v55, %v7162_v9 }
 0x48d   : > { %v6112_v12 = vpop.eup %6111  ;;  %v1917_v40 = vpop.xlane.xlu0 %1916 }
 0x48e   : > { %6121 = vrcp.f32 %v1917_v40  ;;  %5652 = vmatprep.mubr.msk.bf16.mxu1 %vm660_vm0, %v1331_v61  ;;  %v1328_v56 = vmul.f32 %v6112_v12, %v7167_v62 }
 0x48f   : > { %5675 = vmatpush3.bf16.msk.msra.mxu1 %vm7280_vm13, %v6840_v30  ;;  %v1920_v44 = vpop.xlane.xlu1 %1919 }
 0x490   : > { %v6114_v21 = vpop.eup %6113  ;;  %6123 = vrcp.f32 %v1920_v44  ;;  %5676 = vmatprep.subr.msk.bf16.mxu1 %vm7280_vm13, %v6848_v34  ;;  %v1332_v45 = vpack.c.bf16 %v1328_v56, %v1327_v27 }
 0x491   : > { %v1923_v53 = vpop.xlane.xlu0 %1922  ;;  %v1935_v62 = vmul.f32 %v6114_v21, %v7172_v28  ;;  %v6338_v21 = vld [vmem:[%s6476_s3 + $0x10] sm:$0xff] }
 0x492   : > { %v6116_v43 = vpop.eup %6115  ;;  %6125 = vrcp.f32 %v1923_v53  ;;  %5653 = vmatmul.mubr.msk.bf16.gmra.mrb[20].mxu1 %vm660_vm0, %v1332_v45  ;;  %v6339_v53 = vld [vmem:[%s6476_s3 + $0x8] sm:$0xff] }
 0x493   : > { %5677 = vmatpush3.bf16.msk.msra.mxu1 %vm7280_vm13, %v6848_v34  ;;  %v1926_v9 = vpop.xlane.xlu1 %1925  ;;  %v1936_v63 = vmul.f32 %v6116_v43, %v7177_v17 }
 0x494   : > { %v6118_v54 = vpop.eup %6117  ;;  %6127 = vrcp.f32 %v1926_v9  ;;  %5678 = vmatprep.subr.msk.bf16.mxu1 %vm7280_vm13, %v6846_v0 }
 0x495   : > { %v1943_v57 = vpack.c.bf16 %v1936_v63, %v1935_v62  ;;  %v1937_v15 = vmul.f32 %v6118_v54, %v7181_v1 }
 0x496   : > { %v6120_v33 = vpop.eup %6119 }
 0x497   : > { %v1938_v28 = vmul.f32 %v6120_v33, %v7185_v19  ;;  %5679 = vmatpush3.bf16.msk.msra.mxu1 %vm7280_vm13, %v6846_v0  ;;  %5680 = vmatprep.mubr.msk.bf16.mxu1 %vm660_vm0, %v1943_v57 }
 0x498   : > { %v6122_v17 = vpop.eup %6121  ;;  %5704 = vmatprep.subr.msk.bf16.mxu1 %vm7323_vm14, %v6842_v31 }
 0x499   : > { %v1944_v8 = vpack.c.bf16 %v1938_v28, %v1937_v15  ;;  %v1939_v49 = vmul.f32 %v6122_v17, %v7189_v41 }
 0x49a   : > { %v6124_v58 = vpop.eup %6123 }
 0x49b   : > { %5681 = vmatmul.mubr.msk.bf16.vlgmr.msra.gmra.mrb[16].mxu1 %vm660_vm0, %v1944_v8  ;;  %v1940_v1 = vmul.f32 %v6124_v58, %v7193_v23  ;;  %v6342_v8 = vld [vmem:[%s6476_s3 + $0x30] sm:$0xff] }
 0x49c   : > { %v6126_v19 = vpop.eup %6125  ;;  %5705 = vmatpush3.bf16.msk.msra.mxu1 %vm7323_vm14, %v6842_v31 }
 0x49d   : > { %5706 = vmatprep.subr.msk.bf16.mxu1 %vm7323_vm14, %v6840_v30  ;;  %v1945_v32 = vpack.c.bf16 %v1940_v1, %v1939_v49  ;;  %v1941_v29 = vmul.f32 %v6126_v19, %v7197_v10  ;;  %v6343_v49 = vld [vmem:[%s6476_s3 + $0x28] sm:$0xff] }
 0x49e   : > { %v6128_v37 = vpop.eup %6127 }
 0x49f   : > { %5684 = vmatprep.mubr.msk.bf16.mxu1 %vm660_vm0, %v1945_v32  ;;  %v1942_v38 = vmul.f32 %v6128_v37, %v7201_v50  ;;  %v6344_v32 = vld [vmem:[%s6476_s3 + $0x38] sm:$0xff] }
 0x4a0   : > { %5707 = vmatpush3.bf16.msk.msra.mxu1 %vm7323_vm14, %v6840_v30 }
 0x4a1   : > { %5708 = vmatprep.subr.msk.bf16.mxu1 %vm7323_vm14, %v6848_v34  ;;  %v1946_v31 = vpack.c.bf16 %v1942_v38, %v1941_v29 }
 0x4a3   : > { %5685 = vmatmul.mubr.msk.bf16.gmra.mrb[20].mxu1 %vm660_vm0, %v1946_v31 }
 0x4a4   : > { %5709 = vmatpush3.bf16.msk.msra.mxu1 %vm7323_vm14, %v6848_v34 }
 0x4a5   : > { %5710 = vmatprep.subr.msk.bf16.mxu1 %vm7323_vm14, %v6846_v0  ;;  %v2220_v41 = vpop.xlane.xlu0 %2219 }
 0x4a6   : > { %6129 = vrcp.f32 %v2220_v41 }
 0x4a7   : > { %v2223_v23 = vpop.xlane.xlu1 %2222 }
 0x4a8   : > { %5711 = vmatpush3.bf16.msk.msra.mxu1 %vm7323_vm14, %v6846_v0  ;;  %6131 = vrcp.f32 %v2223_v23 }
 0x4a9   : > { %v2226_v30 = vpop.xlane.xlu0 %2225 }
 0x4aa   : > { %6133 = vrcp.f32 %v2226_v30 }
 0x4ab   : > { %v2229_v10 = vpop.xlane.xlu1 %2228 }
 0x4ac   : > { %6135 = vrcp.f32 %v2229_v10 }
 0x4ad   : > { %v2232_v50 = vpop.xlane.xlu0 %2231 }
 0x4ae   : > { %6137 = vrcp.f32 %v2232_v50 }
 0x4af   : > { %v2235_v18 = vpop.xlane.xlu1 %2234 }
 0x4b0   : > { %v6130_v34 = vpop.eup %6129  ;;  %6139 = vrcp.f32 %v2235_v18 }
 0x4b1   : > { %v2238_v2 = vpop.xlane.xlu0 %2237  ;;  %v2250_v13 = vmul.f32 %v6130_v34, %v7212_v59 }
 0x4b2   : > { %v6132_v25 = vpop.eup %6131  ;;  %6141 = vrcp.f32 %v2238_v2 }
 0x4b3   : > { %v2241_v48 = vpop.xlane.xlu1 %2240  ;;  %v2251_v16 = vmul.f32 %v6132_v25, %v7217_v22 }
 0x4b4   : > { %v6134_v46 = vpop.eup %6133  ;;  %6143 = vrcp.f32 %v2241_v48 }
 0x4b5   : > { %v2258_v0 = vpack.c.bf16 %v2251_v16, %v2250_v13  ;;  %v2252_v60 = vmul.f32 %v6134_v46, %v7221_v24 }
 0x4b6   : > { %v6136_v36 = vpop.eup %6135 }
 0x4b7   : > { %v2253_v51 = vmul.f32 %v6136_v36, %v7225_v42  ;;  %5712 = vmatprep.mubr.msk.bf16.mxu1 %vm660_vm0, %v2258_v0 }
 0x4b8   : > { %v6138_v11 = vpop.eup %6137 }
 0x4b9   : > { %v2259_v39 = vpack.c.bf16 %v2253_v51, %v2252_v60  ;;  %v2254_v59 = vmul.f32 %v6138_v11, %v7229_v47  ;;  %v6337_v47 = vld [vmem:[%s6476_s3] sm:$0xff] }
 0x4ba   : > { %v6140_v7 = vpop.eup %6139 }
 0x4bb   : > { %5713 = vmatmul.mubr.msk.bf16.vlgmr.msra.gmra.mrb[16].mxu1 %vm660_vm0, %v2259_v39  ;;  %v2255_v22 = vmul.f32 %v6140_v7, %v7233_v26 }
 0x4bc   : > { %v6142_v55 = vpop.eup %6141 }
 0x4bd   : > { %v2260_v35 = vpack.c.bf16 %v2255_v22, %v2254_v59  ;;  %v2256_v24 = vmul.f32 %v6142_v55, %v7237_v52 }
 0x4be   : > { %v6144_v61 = vpop.eup %6143 }
 0x4bf   : > { %5716 = vmatprep.mubr.msk.bf16.mxu1 %vm660_vm0, %v2260_v35  ;;  %v2257_v42 = vmul.f32 %v6144_v61, %v7241_v20  ;;  %v6340_v20 = vld [vmem:[%s6476_s3 + $0x18] sm:$0xff] }
 0x4c1   : > { %v2261_v12 = vpack.c.bf16 %v2257_v42, %v2256_v24 }
 0x4c3   : > { %5717 = vmatmul.mubr.msk.bf16.gmra.mrb[20].mxu1 %vm660_vm0, %v2261_v12 }
 0x58e   : > { %v5714_v40 = vpop.f32.mrb[16].mxu1 }
 0x58f   : > { %v2308_v27 = vpop.f32.mrb[17].mxu1  ;;  %v7380_v45 = vadd.f32 %v6338_v21, %v5714_v40 }
 0x590   : > { %v7377_v56 = vadd.f32 %v6337_v47, %v2308_v27  ;;  %v5715_v26 = vpop.f32.mrb[18].mxu1 }
 0x591   : > { %v2311_v44 = vpop.f32.mrb[19].mxu1  ;;  %v7388_v9 = vadd.f32 %v6340_v20, %v5715_v26  ;;  %v2363_v54 = vsel %vm660_vm0, %v7380_v45, 0.0 }
 0x592   : > { %v7383_v43 = vadd.f32 %v6339_v53, %v2311_v44  ;;  %v2357_v52 = vsel %vm660_vm0, %v7377_v56, 0.0 }
 0x593   : > { %2358 = vadd.xlane.f32.xlu0 %v2357_v52  ;;  %v2366_v28 = vsel %vm660_vm0, %v7388_v9, 0.0 }
 0x594   : > { %v2360_v62 = vsel %vm660_vm0, %v7383_v43, 0.0 }
 0x595   : > { %2361 = vadd.xlane.f32.xlu1 %v2360_v62 }
 0x596   : > { %v5718_v63 = vpop.f32.mrb[20].mxu1 }
 0x597   : > { %2364 = vadd.xlane.f32.xlu0 %v2363_v54  ;;  %v2324_v57 = vpop.f32.mrb[21].mxu1  ;;  %v7400_v58 = vadd.f32 %v6342_v8, %v5718_v63  ;;  %v5981_v8 = vld [vmem:[%s8656_s9 + $0x8] sm:$0xff]  }
 0x598   : > { %v7395_v33 = vadd.f32 %v6341_v14, %v2324_v57  ;;  %v5719_v15 = vpop.f32.mrb[22].mxu1  ;;  %v5977_v57 = vld [vmem:[%s8657_s10] sm:$0xff]   ;;  %v6353_v14 = vmov 0.0  }
 0x599   : > { %2367 = vadd.xlane.f32.xlu1 %v2366_v28  ;;  %v2327_v17 = vpop.f32.mrb[23].mxu1  ;;  %v7408_v37 = vadd.f32 %v6344_v32, %v5719_v15  ;;  %v2375_v38 = vsel %vm660_vm0, %v7400_v58, 0.0  ;;  %5736 = vmatprep.subr.bf16.mxu0 %v6353_v14  ;;  %v5978_v15 = vld [vmem:[%s8657_s10 + $0x8] sm:$0xff]   ;;  %v5979_v28 = vld [vmem:[%s8656_s9] sm:$0xff]  }
 0x59a   : > { %v7403_v1 = vadd.f32 %v6343_v49, %v2327_v17  ;;  %v2369_v19 = vsel %vm660_vm0, %v7395_v33, 0.0  ;;  %5737 = vmatpush3.bf16.msra.mxu0 %v5977_v57  ;;  %5720 = vmatprep.subr.bf16.mxu1 %v5979_v28  ;;  %v5980_v17 = vld [vmem:[%s8657_s10 + $0x10] sm:$0xff]   ;;  %v5982_v49 = vld [vmem:[%s8657_s10 + $0x18] sm:$0xff]   ;;  %v656_v32 = vld [vmem:[%s641_s21] sm:$0xff] }
 0x59b   : > { %2370 = vadd.xlane.f32.xlu0 %v2369_v19  ;;  %v2378_v31 = vsel %vm660_vm0, %v7408_v37, 0.0  ;;  %5738 = vmatprep.subr.bf16.mxu0 %v6353_v14  ;;  %v5983_v19 = vld [vmem:[%s8656_s9 + $0x10] sm:$0xff]  }
 0x59c   : > { %v2372_v29 = vsel %vm660_vm0, %v7403_v1, 0.0  ;;  %5721 = vmatpush3.bf16.msra.mxu1 %v5979_v28  ;;  %5744 = vmatprep.mubr.msk.bf16.mxu0 %vm6354_vm15, %v6353_v14 }
 0x59d   : > { %2373 = vadd.xlane.f32.xlu1 %v2372_v29  ;;  %5722 = vmatprep.subr.bf16.mxu1 %v5981_v8  ;;  %v5984_v29 = vld [vmem:[%s8656_s9 + $0x18] sm:$0xff]  }
 0x59e   : > { %5739 = vmatpush3.bf16.msra.mxu0 %v5978_v15 }
 0x59f   : > { %2376 = vadd.xlane.f32.xlu0 %v2375_v38  ;;  %5740 = vmatprep.subr.bf16.mxu0 %v6353_v14  ;;  %v7498_v38 = vpack.c.bf16 %v656_v32, %v656_v32 }
 0x5a0   : > { %5723 = vmatpush3.bf16.msra.mxu1 %v5981_v8 }
 0x5a1   : > { %2379 = vadd.xlane.f32.xlu1 %v2378_v31  ;;  %5724 = vmatprep.subr.bf16.mxu1 %v5983_v19 }
 0x5a2   : > { %5741 = vmatpush3.bf16.msra.mxu0 %v5980_v17 }
 0x5a3   : > { %5742 = vmatprep.subr.bf16.mxu0 %v6353_v14 }
 0x5a4   : > { %5725 = vmatpush3.bf16.msra.mxu1 %v5983_v19 }
 0x5a5   : > { %5726 = vmatprep.subr.bf16.mxu1 %v5984_v29 }
 0x5a6   : > { %5743 = vmatpush3.bf16.msra.mxu0 %v5982_v49 }
 0x5a8   : > { %5727 = vmatpush3.bf16.msra.mxu1 %v5984_v29 }
 0x5a9   : > { %5745 = vmatmul.mubr.msk.bf16.vlgmr.msra.gmra.mrb[40].mxu0 %vm660_vm0, %v7498_v38  ;;  %5748 = vmatprep.subr.bf16.mxu1 %v6353_v14 }
 0x620   : > { %v2359_v41 = vpop.xlane.xlu0 %2358 }
 0x621   : > { %v2381_v23 = vmul.f32 0.015625, %v2359_v41 }
 0x622   : > { %v2362_v30 = vpop.xlane.xlu1 %2361 }
 0x623   : > { %v7417_v10 = vsub.f32 %v7377_v56, %v2381_v23  ;;  %v2382_v50 = vmul.f32 0.015625, %v2362_v30 }
 0x624   : > { %v2365_v18 = vpop.xlane.xlu0 %2364 }
 0x625   : > { %v7420_v34 = vsub.f32 %v7383_v43, %v2382_v50  ;;  %v2383_v2 = vmul.f32 0.015625, %v2365_v18  ;;  %v2397_v25 = vmul.f32 %v7417_v10, %v7417_v10 }
 0x626   : > { %v2368_v48 = vpop.xlane.xlu1 %2367 }
 0x627   : > { %v7425_v13 = vsub.f32 %v7380_v45, %v2383_v2  ;;  %v2384_v16 = vmul.f32 0.015625, %v2368_v48  ;;  %v2405_v46 = vsel %vm660_vm0, %v2397_v25, 0.0  ;;  %v2398_v0 = vmul.f32 %v7420_v34, %v7420_v34 }
 0x628   : > { %2406 = vadd.xlane.f32.xlu0 %v2405_v46  ;;  %v2371_v36 = vpop.xlane.xlu0 %2370 }
 0x629   : > { %v7431_v60 = vsub.f32 %v7388_v9, %v2384_v16  ;;  %v2385_v51 = vmul.f32 0.015625, %v2371_v36  ;;  %v2408_v11 = vsel %vm660_vm0, %v2398_v0, 0.0  ;;  %v2399_v39 = vmul.f32 %v7425_v13, %v7425_v13 }
 0x62a   : > { %2409 = vadd.xlane.f32.xlu1 %v2408_v11  ;;  %v2374_v7 = vpop.xlane.xlu1 %2373 }
 0x62b   : > { %v7437_v59 = vsub.f32 %v7395_v33, %v2385_v51  ;;  %v2386_v22 = vmul.f32 0.015625, %v2374_v7  ;;  %v2411_v55 = vsel %vm660_vm0, %v2399_v39, 0.0  ;;  %v2400_v35 = vmul.f32 %v7431_v60, %v7431_v60 }
 0x62c   : > { %2412 = vadd.xlane.f32.xlu0 %v2411_v55  ;;  %v2377_v61 = vpop.xlane.xlu0 %2376 }
 0x62d   : > { %v7443_v24 = vsub.f32 %v7403_v1, %v2386_v22  ;;  %v2387_v42 = vmul.f32 0.015625, %v2377_v61  ;;  %v2414_v12 = vsel %vm660_vm0, %v2400_v35, 0.0  ;;  %v2401_v40 = vmul.f32 %v7437_v59, %v7437_v59 }
 0x62e   : > { %2415 = vadd.xlane.f32.xlu1 %v2414_v12  ;;  %v2380_v27 = vpop.xlane.xlu1 %2379  ;;  %v5292_v12 = vld [vmem:[%s8654_s7] ss:$0 sm:$0xff] }
 0x62f   : > { %v7449_v47 = vsub.f32 %v7400_v58, %v2387_v42  ;;  %v2388_v26 = vmul.f32 0.015625, %v2380_v27  ;;  %v2417_v44 = vsel %vm660_vm0, %v2401_v40, 0.0  ;;  %v2402_v21 = vmul.f32 %v7443_v24, %v7443_v24 }
 0x630   : > { %2418 = vadd.xlane.f32.xlu0 %v2417_v44 }
 0x631   : > { %v7455_v53 = vsub.f32 %v7408_v37, %v2388_v26  ;;  %v2420_v52 = vsel %vm660_vm0, %v2402_v21, 0.0  ;;  %v2403_v20 = vmul.f32 %v7449_v47, %v7449_v47 }
 0x632   : > { %2421 = vadd.xlane.f32.xlu1 %v2420_v52 }
 0x633   : > { %v2423_v62 = vsel %vm660_vm0, %v2403_v20, 0.0  ;;  %v2404_v63 = vmul.f32 %v7455_v53, %v7455_v53 }
 0x634   : > { %2424 = vadd.xlane.f32.xlu0 %v2423_v62 }
 0x635   : > { %v2426_v54 = vsel %vm660_vm0, %v2404_v63, 0.0  ;;  %v5293_v63 = vld [vmem:[%s8655_s8] ss:$0 sm:$0xff] }
 0x636   : > { %2427 = vadd.xlane.f32.xlu1 %v2426_v54 }
 0x6b5   : > { %v2407_v31 = vpop.xlane.xlu0 %2406 }
 0x6b6   : > { %v2429_v41 = vmul.f32 0.015625, %v2407_v31 }
 0x6b7   : > { %v2410_v23 = vpop.xlane.xlu1 %2409 }
 0x6b8   : > { %v2437_v30 = vadd.f32 1e-05, %v2429_v41  ;;  %v2430_v50 = vmul.f32 0.015625, %v2410_v23 }
 0x6b9   : > { %v2413_v18 = vpop.xlane.xlu0 %2412 }
 0x6ba   : > { %6145 = vrsqrt.f32 %v2437_v30  ;;  %v2438_v2 = vadd.f32 1e-05, %v2430_v50  ;;  %v2431_v25 = vmul.f32 0.015625, %v2413_v18 }
 0x6bb   : > { %v2416_v48 = vpop.xlane.xlu1 %2415 }
 0x6bc   : > { %6147 = vrsqrt.f32 %v2438_v2  ;;  %v2439_v16 = vadd.f32 1e-05, %v2431_v25  ;;  %v2432_v46 = vmul.f32 0.015625, %v2416_v48 }
 0x6bd   : > { %v2419_v0 = vpop.xlane.xlu0 %2418 }
 0x6be   : > { %6149 = vrsqrt.f32 %v2439_v16  ;;  %v2440_v36 = vadd.f32 1e-05, %v2432_v46  ;;  %v2433_v51 = vmul.f32 0.015625, %v2419_v0  ;;  %v5986_v46 = vld [vmem:[%s8658_s11 + $0x8] sm:$0xff]  }
 0x6bf   : > { %v2422_v11 = vpop.xlane.xlu1 %2421 }
 0x6c0   : > { %6151 = vrsqrt.f32 %v2440_v36  ;;  %v2441_v39 = vadd.f32 1e-05, %v2433_v51  ;;  %v2434_v7 = vmul.f32 0.015625, %v2422_v11 }
 0x6c1   : > { %v2425_v22 = vpop.xlane.xlu0 %2424 }
 0x6c2   : > { %6153 = vrsqrt.f32 %v2441_v39  ;;  %v2442_v55 = vadd.f32 1e-05, %v2434_v7  ;;  %v2435_v35 = vmul.f32 0.015625, %v2425_v22  ;;  %v5988_v39 = vld [vmem:[%s8658_s11 + $0x18] sm:$0xff]   ;;  %v2671_v7 = vpop.f32.mrb[40].mxu0 }
 0x6c3   : > { %v2428_v61 = vpop.xlane.xlu1 %2427  ;;  %v2761_v22 = vsel %vm1104_vm9, %v2671_v7, 0.0 }
 0x6c4   : > { %v6146_v42 = vpop.eup %6145  ;;  %6155 = vrsqrt.f32 %v2442_v55  ;;  %v2443_v40 = vadd.f32 1e-05, %v2435_v35  ;;  %v2436_v27 = vmul.f32 0.015625, %v2428_v61  ;;  %v2958_v55 = vsel %vm6608_vm7, %v2671_v7, 0.0  ;;  %v5746_v61 = vpop.f32.mrb[41].mxu0 }
 0x6c5   : > { %v2453_v26 = vmul.f32 %v6146_v42, %v7417_v10  ;;  %v3315_v35 = vsel %vm6612_vm8, %v2671_v7, 0.0  ;;  %v2762_v42 = vpack.c.bf16 %v2761_v22, %v2761_v22 }
 0x6c6   : > { %v6148_v44 = vpop.eup %6147  ;;  %6157 = vrsqrt.f32 %v2443_v40  ;;  %v2444_v21 = vadd.f32 1e-05, %v2436_v27  ;;  %v7546_v40 = vpack.c.bf16 %v3315_v35, %v3315_v35 }
 0x6c7   : > { %v2454_v52 = vmul.f32 %v6148_v44, %v7420_v34  ;;  %v2467_v20 = vmul.f32 %v5292_v12, %v2453_v26  ;;  %5946 = vmatprep.subr.msk.bf16.mxu0 %vm660_vm0, %v2762_v42 }
 0x6c8   : > { %v6150_v62 = vpop.eup %6149  ;;  %6159 = vrsqrt.f32 %v2444_v21 }
 0x6c9   : > { %v2455_v54 = vmul.f32 %v6150_v62, %v7425_v13  ;;  %v2468_v57 = vmul.f32 %v5292_v12, %v2454_v52  ;;  %v2481_v10 = vadd.f32 %v5293_v63, %v2467_v20 }
 0x6ca   : > { %v6152_v15 = vpop.eup %6151 }
 0x6cb   : > { %v2469_v28 = vmul.f32 %v5292_v12, %v2455_v54  ;;  %v2456_v17 = vmul.f32 %v6152_v15, %v7431_v60  ;;  %v2482_v8 = vadd.f32 %v5293_v63, %v2468_v57  ;;  %v5985_v60 = vld [vmem:[%s8658_s11] sm:$0xff]  }
 0x6cc   : > { %v6154_v49 = vpop.eup %6153 }
 0x6cd   : > { %v2470_v19 = vmul.f32 %v5292_v12, %v2456_v17  ;;  %v2457_v34 = vmul.f32 %v6154_v49, %v7437_v59  ;;  %v2489_v32 = vpack.c.bf16 %v2482_v8, %v2481_v10  ;;  %v2483_v31 = vadd.f32 %v5293_v63, %v2469_v28 }
 0x6ce   : > { %v6156_v29 = vpop.eup %6155 }
 0x6cf   : > { %v2484_v41 = vadd.f32 %v5293_v63, %v2470_v19  ;;  %v2458_v23 = vmul.f32 %v6156_v29, %v7443_v24  ;;  %5728 = vmatprep.mubr.msk.bf16.mxu1 %vm660_vm0, %v2489_v32  ;;  %v2471_v13 = vmul.f32 %v5292_v12, %v2457_v34 }
 0x6d0   : > { %v6158_v30 = vpop.eup %6157 }
 0x6d1   : > { %v2459_v50 = vmul.f32 %v6158_v30, %v7449_v47  ;;  %v2490_v18 = vpack.c.bf16 %v2484_v41, %v2483_v31  ;;  %v2472_v2 = vmul.f32 %v5292_v12, %v2458_v23  ;;  %v2485_v48 = vadd.f32 %v5293_v63, %v2471_v13 }
 0x6d2   : > { %v6160_v25 = vpop.eup %6159 }
 0x6d3   : > { %v2460_v59 = vmul.f32 %v6160_v25, %v7455_v53  ;;  %5729 = vmatmul.mubr.msk.bf16.vlgmr.msra.gmra.mrb[24].mxu1 %vm660_vm0, %v2490_v18  ;;  %v2486_v16 = vadd.f32 %v5293_v63, %v2472_v2  ;;  %v2473_v24 = vmul.f32 %v5292_v12, %v2459_v50  ;;  %v5987_v53 = vld [vmem:[%s8658_s11 + $0x10] sm:$0xff]  }
 0x6d4   : > { %5749 = vmatpush3.bf16.msra.mxu1 %v5985_v60 }
 0x6d5   : > { %v2491_v0 = vpack.c.bf16 %v2486_v16, %v2485_v48  ;;  %v2474_v36 = vmul.f32 %v5292_v12, %v2460_v59  ;;  %5750 = vmatprep.subr.bf16.mxu1 %v6353_v14  ;;  %v2487_v47 = vadd.f32 %v5293_v63, %v2473_v24  ;;  %v2959_v12 = vpack.c.bf16 %v2958_v55, %v2958_v55 }
 0x6d6   : > { %v3599_v59 = vsel %vm6617_vm10, %v2671_v7, 0.0 }
 0x6d7   : > { %5732 = vmatprep.mubr.msk.bf16.mxu1 %vm660_vm0, %v2491_v0  ;;  %v2488_v51 = vadd.f32 %v5293_v63, %v2474_v36  ;;  %v2975_v26 = vsel %vm660_vm0, %v2959_v12, 0 }
 0x6d8   : > { %5751 = vmatpush3.bf16.msra.mxu1 %v5986_v46 }
 0x6d9   : > { %v2492_v11 = vpack.c.bf16 %v2488_v51, %v2487_v47  ;;  %5752 = vmatprep.subr.bf16.mxu1 %v6353_v14 }
 0x6db   : > { %5733 = vmatmul.mubr.msk.bf16.gmra.mrb[28].mxu1 %vm660_vm0, %v2492_v11 }
 0x6dc   : > { %5753 = vmatpush3.bf16.msra.mxu1 %v5987_v53  ;;  %5756 = vmatprep.mubr.msk.bf16.mxu1 %vm6354_vm15, %v6353_v14 }
 0x6dd   : > { %5754 = vmatprep.subr.bf16.mxu1 %v6353_v14  ;;  %v2674_v14 = vpop.f32.mrb[42].mxu0 }
 0x6de   : > { %v5747_v27 = vpop.f32.mrb[43].mxu0 }
 0x6e0   : > { %5755 = vmatpush3.bf16.msra.mxu1 %v5988_v39 }
 0x6e1   : > { %5948 = vmatprep.subr.msk.bf16.mxu1 %vm660_vm0, %v2959_v12 }
 0x6e3   : > { %5757 = vmatmul.mubr.msk.bf16.vlgmr.msra.gmra.mrb[32].mxu1 %vm660_vm0, %v7498_v38  ;;  %v2778_v38 = vsel %vm660_vm0, %v2762_v42, 0 }
 0x6e4   : > { %5761 = vmatpush3.bf16.xpose.msra.mxu0 %v2778_v38 }
 0x6e5   : > { %5947 = vmatprep.subr.msk.bf16.mxu0 %vm660_vm0, %v2959_v12 }
 0x6e9   : > { %5881 = vmatpush3.bf16.xpose.msra.mxu1 %v2975_v26 }
 0x6ea   : > { %5951 = vmatprep.subr.msk.bf16.mxu1 %vm660_vm0, %v7546_v40 }
 0x7a6   : > { %v5730_v44 = vpop.f32.mrb[24].mxu1 }
 0x7a7   : > { %v2751_v21 = vsel %vm1104_vm9, %v5730_v44, 0.0  ;;  %v2948_v52 = vsel %vm6608_vm7, %v5730_v44, 0.0  ;;  %v3305_v20 = vsel %vm6612_vm8, %v5730_v44, 0.0  ;;  %v3589_v62 = vsel %vm6617_vm10, %v5730_v44, 0.0  ;;  %v2571_v63 = vpop.f32.mrb[25].mxu1 }
 0x7a8   : > { %v2749_v54 = vsel %vm1104_vm9, %v2571_v63, 0.0  ;;  %v2946_v57 = vsel %vm6608_vm7, %v2571_v63, 0.0  ;;  %v3303_v15 = vsel %vm6612_vm8, %v2571_v63, 0.0  ;;  %v3587_v28 = vsel %vm6617_vm10, %v2571_v63, 0.0  ;;  %v5731_v17 = vpop.f32.mrb[26].mxu1 }
 0x7a9   : > { %v2752_v10 = vsel %vm1104_vm9, %v5731_v17, 0.0  ;;  %v2949_v8 = vsel %vm6608_vm7, %v5731_v17, 0.0  ;;  %v3306_v49 = vsel %vm6612_vm8, %v5731_v17, 0.0  ;;  %v3590_v19 = vsel %vm6617_vm10, %v5731_v17, 0.0  ;;  %v2574_v34 = vpop.f32.mrb[27].mxu1 }
 0x7aa   : > { %v2758_v32 = vpack.c.bf16 %v2752_v10, %v2751_v21  ;;  %v2955_v29 = vpack.c.bf16 %v2949_v8, %v2948_v52  ;;  %v3312_v31 = vpack.c.bf16 %v3306_v49, %v3305_v20  ;;  %v3596_v41 = vpack.c.bf16 %v3590_v19, %v3589_v62 }
 0x7ab   : > { %v2750_v23 = vsel %vm1104_vm9, %v2574_v34, 0.0  ;;  %v2947_v13 = vsel %vm6608_vm7, %v2574_v34, 0.0  ;;  %v3304_v30 = vsel %vm6612_vm8, %v2574_v34, 0.0  ;;  %v3588_v60 = vsel %vm6617_vm10, %v2574_v34, 0.0 }
 0x7ac   : > { %v2757_v50 = vpack.c.bf16 %v2750_v23, %v2749_v54  ;;  %v2954_v18 = vpack.c.bf16 %v2947_v13, %v2946_v57  ;;  %v3311_v2 = vpack.c.bf16 %v3304_v30, %v3303_v15  ;;  %v3595_v25 = vpack.c.bf16 %v3588_v60, %v3587_v28 }
 0x7ad   : > { %v3600_v54 = vpack.c.bf16 %v3599_v59, %v3599_v59  ;;  %v3332_v57 = vsel %vm660_vm0, %v7546_v40, 0 }
 0x7ae   : > { %5762 = vmatprep.mubr.msk.bf16.mxu0 %vm660_vm0, %v2757_v50  ;;  %v5734_v48 = vpop.f32.mrb[28].mxu1 }
 0x7af   : > { %v2755_v16 = vsel %vm1104_vm9, %v5734_v48, 0.0  ;;  %v2952_v24 = vsel %vm6608_vm7, %v5734_v48, 0.0  ;;  %v3309_v46 = vsel %vm6612_vm8, %v5734_v48, 0.0  ;;  %v3593_v0 = vsel %vm6617_vm10, %v5734_v48, 0.0  ;;  %5763 = vmatmul.mubr.msk.bf16.vlgmr.msra.gmra.mrb[44].mxu0 %vm660_vm0, %v2758_v32  ;;  %v2587_v36 = vpop.f32.mrb[29].mxu1 }
 0x7b0   : > { %5771 = vmatpush3.bf16.xpose.msra.mxu0 %v2975_v26  ;;  %v2753_v47 = vsel %vm1104_vm9, %v2587_v36, 0.0  ;;  %v2950_v51 = vsel %vm6608_vm7, %v2587_v36, 0.0  ;;  %v3307_v53 = vsel %vm6612_vm8, %v2587_v36, 0.0  ;;  %v3591_v11 = vsel %vm6617_vm10, %v2587_v36, 0.0  ;;  %v5735_v39 = vpop.f32.mrb[30].mxu1 }
 0x7b1   : > { %v2756_v7 = vsel %vm1104_vm9, %v5735_v39, 0.0  ;;  %v2953_v22 = vsel %vm6608_vm7, %v5735_v39, 0.0  ;;  %v3310_v55 = vsel %vm6612_vm8, %v5735_v39, 0.0  ;;  %v3594_v35 = vsel %vm6617_vm10, %v5735_v39, 0.0  ;;  %v2590_v61 = vpop.f32.mrb[31].mxu1 }
 0x7b2   : > { %v2760_v42 = vpack.c.bf16 %v2756_v7, %v2755_v16  ;;  %v2957_v12 = vpack.c.bf16 %v2953_v22, %v2952_v24  ;;  %v3314_v14 = vpack.c.bf16 %v3310_v55, %v3309_v46  ;;  %v3598_v27 = vpack.c.bf16 %v3594_v35, %v3593_v0 }
 0x7b3   : > { %v2754_v38 = vsel %vm1104_vm9, %v2590_v61, 0.0  ;;  %v2951_v26 = vsel %vm6608_vm7, %v2590_v61, 0.0  ;;  %v3308_v44 = vsel %vm6612_vm8, %v2590_v61, 0.0  ;;  %v3592_v21 = vsel %vm6617_vm10, %v2590_v61, 0.0 }
 0x7b4   : > { %v2759_v52 = vpack.c.bf16 %v2754_v38, %v2753_v47  ;;  %v2956_v20 = vpack.c.bf16 %v2951_v26, %v2950_v51  ;;  %v3313_v62 = vpack.c.bf16 %v3308_v44, %v3307_v53  ;;  %v3597_v63 = vpack.c.bf16 %v3592_v21, %v3591_v11 }
 0x7b5   : > { %v3616_v15 = vsel %vm660_vm0, %v3600_v54, 0 }
 0x7b6   : > { %5766 = vmatprep.mubr.msk.bf16.mxu0 %vm660_vm0, %v2759_v52  ;;  %5776 = vmatprep.mubr.msk.bf16.mxu1 %vm660_vm0, %v2956_v20  ;;  %v7641_v40 = vpop.f32.mrb[32].mxu1 }
 0x7b7   : > { %5767 = vmatmul.mubr.msk.bf16.gmra.mrb[48].mxu0 %vm660_vm0, %v2760_v42  ;;  %5777 = vmatmul.mubr.msk.bf16.vlgmr.msra.gmra.mrb[36].mxu1 %vm660_vm0, %v2957_v12  ;;  %v5758_v28 = vpop.f32.mrb[33].mxu1  ;;  %v2960_v8 = vsel %vm6608_vm7, %v7641_v40, 0.0  ;;  %v2763_v49 = vsel %vm1104_vm9, %v7641_v40, 0.0 }
 0x7b8   : > { %5801 = vmatpush3.bf16.xpose.msra.mxu1 %v3332_v57  ;;  %5772 = vmatprep.mubr.msk.bf16.mxu0 %vm660_vm0, %v2954_v18  ;;  %v2746_v17 = vpop.f32.mrb[34].mxu1  ;;  %v2961_v19 = vpack.c.bf16 %v2960_v8, %v2960_v8  ;;  %v7649_v34 = vpack.c.bf16 %v2763_v49, %v2763_v49 }
 0x7b9   : > { %5802 = vmatprep.mubr.msk.bf16.mxu1 %vm660_vm0, %v3311_v2  ;;  %5953 = vmatprep.subr.msk.bf16.mxu1 %vm660_vm0, %v3600_v54  ;;  %v5759_v10 = vpop.f32.mrb[35].mxu1 }
 0x7ba   : > { %5949 = vmatprep.subr.msk.bf16.mxu0 %vm3154_vm1, %v2961_v19  ;;  %v3156_v32 = vsel %vm3154_vm1, %v2961_v19, 0 }
 0x7bf   : > { %5773 = vmatmul.mubr.msk.bf16.vlgmr.msra.gmra.mrb[52].mxu0 %vm660_vm0, %v2955_v29  ;;  %5803 = vmatmul.mubr.msk.bf16.vlgmr.msra.gmra.mrb[40].mxu1 %vm660_vm0, %v3312_v31 }
 0x7c0   : > { %5821 = vmatpush3.bf16.xpose.msra.mxu1 %v3616_v15  ;;  %5806 = vmatprep.mubr.msk.bf16.mxu1 %vm660_vm0, %v3313_v62 }
 0x7c1   : > { %5781 = vmatpush3.bf16.msra.mxu0 %v3156_v32 }
 0x7c2   : > { %5950 = vmatprep.subr.msk.bf16.mxu0 %vm3154_vm1, %v7649_v34 }
 0x7c7   : > { %5807 = vmatmul.mubr.msk.bf16.gmra.mrb[44].mxu1 %vm660_vm0, %v3314_v14 }
 0x7c8   : > { %5822 = vmatprep.mubr.msk.bf16.mxu1 %vm660_vm0, %v3595_v25 }
 0x7cf   : > { %5823 = vmatmul.mubr.msk.bf16.vlgmr.msra.gmra.mrb[48].mxu1 %vm660_vm0, %v3596_v41 }
 0x7d0   : > { %5826 = vmatprep.mubr.msk.bf16.mxu1 %vm660_vm0, %v3597_v63 }
 0x7d7   : > { %5827 = vmatmul.mubr.msk.bf16.gmra.mrb[52].mxu1 %vm660_vm0, %v3598_v27 }
 0x882   : > { %v5764_v29 = vpop.f32.mrb[44].mxu0 }
 0x883   : > { %v2814_v31 = vpop.f32.mrb[45].mxu0  ;;  %v7701_v17 = vmul.f32 0.25, %v5764_v29 }
 0x884   : > { %v5765_v4 = vpop.f32.mrb[46].mxu0  ;;  %v7693_v52 = vmul.f32 0.25, %v2814_v31 }
 0x885   : > { %v2817_v41 = vpop.f32.mrb[47].mxu0  ;;  %v7705_v8 = vmul.f32 0.25, %v5765_v4  ;;  %v2860_v31 = vsel %vm2853_vm2, %v7701_v17, -inf }
 0x886   : > { %v7697_v54 = vmul.f32 0.25, %v2817_v41  ;;  %v2854_v10 = vsel %vm2853_vm2, %v7693_v52, -inf }
 0x888   : > { %v2857_v49 = vsel %vm2853_vm2, %v7697_v54, -inf }
 0x88a   : > { %v7655_v23 = vpop.f32.mrb[48].mxu0  ;;  %v5778_v3 = vpop.f32.mrb[36].mxu1 }
 0x88b   : > { %v2830_v13 = vpop.f32.mrb[49].mxu0  ;;  %v3027_v30 = vpop.f32.mrb[37].mxu1  ;;  %v7685_v38 = vmul.f32 0.25, %v5778_v3 }
 0x88c   : > { %v7657_v60 = vpop.f32.mrb[50].mxu0  ;;  %v5779_v50 = vpop.f32.mrb[38].mxu1  ;;  %v7675_v22 = vmul.f32 0.25, %v3027_v30  ;;  %v7709_v19 = vmul.f32 0.25, %v2830_v13  ;;  %v2863_v30 = vsel %vm2853_vm2, %v7705_v8, -inf }
 0x88d   : > { %v2833_v18 = vpop.f32.mrb[51].mxu0  ;;  %v3030_v2 = vpop.f32.mrb[39].mxu1  ;;  %v7689_v44 = vmul.f32 0.25, %v5779_v50  ;;  %v3068_v62 = vsel %vm2853_vm2, %v7685_v38, -inf  ;;  %v7718_v50 = vmul.f32 0.25, %v7655_v23 }
 0x88e   : > { %v7681_v42 = vmul.f32 0.25, %v3030_v2  ;;  %v3062_v26 = vsel %vm2853_vm2, %v7675_v22, -inf  ;;  %v7713_v29 = vmul.f32 0.25, %v2833_v18  ;;  %v2866_v13 = vsel %vm2853_vm2, %v7709_v19, -inf }
 0x88f   : > { %v3071_v15 = vsel %vm2853_vm2, %v7689_v44, -inf  ;;  %v7723_v2 = vmul.f32 0.25, %v7657_v60 }
 0x890   : > { %v3065_v21 = vsel %vm2853_vm2, %v7681_v42, -inf  ;;  %v2869_v18 = vsel %vm2853_vm2, %v7713_v29, -inf }
 0x891   : > { %v2875_v23 = vsel %vm2853_vm2, %v7723_v2, -inf }
 0x892   : > { %v5774_v25 = vpop.f32.mrb[52].mxu0  ;;  %v7659_v59 = vpop.f32.mrb[40].mxu1 }
 0x893   : > { %v3011_v48 = vpop.f32.mrb[53].mxu0  ;;  %v3368_v16 = vpop.f32.mrb[41].mxu1  ;;  %v7665_v51 = vmul.f32 0.25, %v5774_v25 }
 0x894   : > { %v7661_v24 = vmul.f32 0.25, %v3011_v48  ;;  %v5775_v46 = vpop.f32.mrb[54].mxu0  ;;  %v7663_v0 = vpop.f32.mrb[42].mxu1  ;;  %v7727_v25 = vmul.f32 0.25, %v3368_v16  ;;  %v2872_v48 = vsel %vm2853_vm2, %v7718_v50, -inf }
 0x895   : > { %v3014_v36 = vpop.f32.mrb[55].mxu0  ;;  %v3371_v47 = vpop.f32.mrb[43].mxu1  ;;  %v7671_v39 = vmul.f32 0.25, %v5775_v46  ;;  %v3056_v35 = vsel %vm2853_vm2, %v7665_v51, -inf  ;;  %v7741_v16 = vmul.f32 0.25, %v7663_v0 }
 0x896   : > { %v7667_v53 = vmul.f32 0.25, %v3014_v36  ;;  %v3050_v11 = vsel %vm2853_vm2, %v7661_v24, -inf  ;;  %v7731_v46 = vmul.f32 0.25, %v3371_v47  ;;  %v7736_v36 = vmul.f32 0.25, %v7659_v59 }
 0x897   : > { %3051 = vmax.xlane.f32.xlu0 %v3050_v11  ;;  %v3059_v14 = vsel %vm2853_vm2, %v7671_v39, -inf  ;;  %v3407_v60 = vsel %vm2853_vm2, %v7727_v25, -inf  ;;  %v3416_v59 = vsel %vm2853_vm2, %v7741_v16, -inf }
 0x898   : > { %v3053_v7 = vsel %vm2853_vm2, %v7667_v53, -inf  ;;  %v3410_v11 = vsel %vm2853_vm2, %v7731_v46, -inf }
 0x899   : > { %3054 = vmax.xlane.f32.xlu1 %v3053_v7  ;;  %v3413_v7 = vsel %vm2853_vm2, %v7736_v36, -inf }
 0x89a   : > { %v7677_v55 = vpop.f32.mrb[44].mxu1 }
 0x89b   : > { %3057 = vmax.xlane.f32.xlu0 %v3056_v35  ;;  %v3384_v61 = vpop.f32.mrb[45].mxu1 }
 0x89c   : > { %v5809_v12 = vpop.f32.mrb[46].mxu1  ;;  %v7745_v47 = vmul.f32 0.25, %v3384_v61 }
 0x89d   : > { %3060 = vmax.xlane.f32.xlu1 %v3059_v14  ;;  %v3387_v27 = vpop.f32.mrb[47].mxu1  ;;  %v7754_v14 = vmul.f32 0.25, %v7677_v55 }
 0x89e   : > { %v7749_v35 = vmul.f32 0.25, %v3387_v27  ;;  %v3419_v0 = vsel %vm2853_vm2, %v7745_v47, -inf }
 0x89f   : > { %3063 = vmax.xlane.f32.xlu0 %v3062_v26  ;;  %v7758_v26 = vmul.f32 0.25, %v5809_v12  ;;  %v3425_v27 = vsel %vm2853_vm2, %v7754_v14, -inf }
 0x8a0   : > { %v3422_v61 = vsel %vm2853_vm2, %v7749_v35, -inf }
 0x8a1   : > { %3066 = vmax.xlane.f32.xlu1 %v3065_v21  ;;  %v3428_v55 = vsel %vm2853_vm2, %v7758_v26, -inf }
 0x8a2   : > { %v5824_v20 = vpop.f32.mrb[48].mxu1 }
 0x8a3   : > { %3069 = vmax.xlane.f32.xlu0 %v3068_v62  ;;  %v3652_v63 = vpop.f32.mrb[49].mxu1 }
 0x8a4   : > { %v5825_v57 = vpop.f32.mrb[50].mxu1  ;;  %v7762_v21 = vmul.f32 0.25, %v3652_v63 }
 0x8a5   : > { %v3655_v28 = vpop.f32.mrb[51].mxu1  ;;  %3072 = vmax.xlane.f32.xlu1 %v3071_v15  ;;  %v7770_v15 = vmul.f32 0.25, %v5824_v20 }
 0x8a6   : > { %v7766_v62 = vmul.f32 0.25, %v3655_v28  ;;  %v3691_v12 = vsel %vm2853_vm2, %v7762_v21, -inf }
 0x8a7   : > { %2855 = vmax.xlane.f32.xlu0 %v2854_v10  ;;  %v7774_v10 = vmul.f32 0.25, %v5825_v57  ;;  %v3697_v28 = vsel %vm2853_vm2, %v7770_v15, -inf }
 0x8a8   : > { %v3694_v63 = vsel %vm2853_vm2, %v7766_v62, -inf }
 0x8a9   : > { %2858 = vmax.xlane.f32.xlu1 %v2857_v49  ;;  %v3700_v20 = vsel %vm2853_vm2, %v7774_v10, -inf }
 0x8aa   : > { %v5828_v32 = vpop.f32.mrb[52].mxu1 }
 0x8ab   : > { %2861 = vmax.xlane.f32.xlu0 %v2860_v31  ;;  %v3668_v41 = vpop.f32.mrb[53].mxu1 }
 0x8ac   : > { %v5829_v3 = vpop.f32.mrb[54].mxu1  ;;  %v7778_v49 = vmul.f32 0.25, %v3668_v41 }
 0x8ad   : > { %v3671_v4 = vpop.f32.mrb[55].mxu1  ;;  %2864 = vmax.xlane.f32.xlu1 %v2863_v30  ;;  %v7786_v30 = vmul.f32 0.25, %v5828_v32 }
 0x8ae   : > { %v7782_v31 = vmul.f32 0.25, %v3671_v4  ;;  %v3703_v57 = vsel %vm2853_vm2, %v7778_v49, -inf }
 0x8af   : > { %2867 = vmax.xlane.f32.xlu0 %v2866_v13  ;;  %v7790_v13 = vmul.f32 0.25, %v5829_v3  ;;  %v3709_v4 = vsel %vm2853_vm2, %v7786_v30, -inf }
 0x8b0   : > { %v3706_v41 = vsel %vm2853_vm2, %v7782_v31, -inf }
 0x8b1   : > { %2870 = vmax.xlane.f32.xlu1 %v2869_v18  ;;  %v3712_v18 = vsel %vm2853_vm2, %v7790_v13, -inf }
 0x8b3   : > { %2873 = vmax.xlane.f32.xlu0 %v2872_v48 }
 0x8b5   : > { %2876 = vmax.xlane.f32.xlu1 %v2875_v23 }
 0x8b7   : > { %3408 = vmax.xlane.f32.xlu0 %v3407_v60 }
 0x8b9   : > { %3411 = vmax.xlane.f32.xlu1 %v3410_v11 }
 0x8bb   : > { %3414 = vmax.xlane.f32.xlu0 %v3413_v7 }
 0x8bd   : > { %3417 = vmax.xlane.f32.xlu1 %v3416_v59 }
 0x8bf   : > { %3420 = vmax.xlane.f32.xlu0 %v3419_v0 }
 0x8c1   : > { %3423 = vmax.xlane.f32.xlu1 %v3422_v61 }
 0x8c3   : > { %3426 = vmax.xlane.f32.xlu0 %v3425_v27 }
 0x8c5   : > { %3429 = vmax.xlane.f32.xlu1 %v3428_v55 }
 0x8c7   : > { %3692 = vmax.xlane.f32.xlu0 %v3691_v12 }
 0x8c9   : > { %3695 = vmax.xlane.f32.xlu1 %v3694_v63 }
 0x8cb   : > { %3698 = vmax.xlane.f32.xlu0 %v3697_v28 }
 0x8cd   : > { %3701 = vmax.xlane.f32.xlu1 %v3700_v20 }
 0x8cf   : > { %3704 = vmax.xlane.f32.xlu0 %v3703_v57 }
 0x8d1   : > { %3707 = vmax.xlane.f32.xlu1 %v3706_v41 }
 0x8d3   : > { %3710 = vmax.xlane.f32.xlu0 %v3709_v4 }
 0x8d5   : > { %3713 = vmax.xlane.f32.xlu1 %v3712_v18 }
 0x924   : > { %v3052_v32 = vpop.xlane.xlu0 %3051 }
 0x925   : > { %v3074_v48 = vsub.f32 %v7661_v24, %v3052_v32 }
 0x926   : > { %v3055_v23 = vpop.xlane.xlu1 %3054 }
 0x927   : > { %v3082_v60 = vmul.f32 1.442695, %v3074_v48  ;;  %v3075_v3 = vsub.f32 %v7667_v53, %v3055_v23 }
 0x928   : > { %v3058_v11 = vpop.xlane.xlu0 %3057 }
 0x929   : > { %6161 = vpow2.f32 %v3082_v60  ;;  %v3084_v7 = vmul.f32 1.442695, %v3075_v3  ;;  %v3076_v59 = vsub.f32 %v7665_v51, %v3058_v11 }
 0x92a   : > { %v3061_v0 = vpop.xlane.xlu1 %3060 }
 0x92b   : > { %6163 = vpow2.f32 %v3084_v7  ;;  %v3086_v61 = vmul.f32 1.442695, %v3076_v59  ;;  %v3077_v27 = vsub.f32 %v7671_v39, %v3061_v0 }
 0x92c   : > { %v3064_v55 = vpop.xlane.xlu0 %3063 }
 0x92d   : > { %6165 = vpow2.f32 %v3086_v61  ;;  %v3088_v12 = vmul.f32 1.442695, %v3077_v27  ;;  %v3078_v63 = vsub.f32 %v7675_v22, %v3064_v55 }
 0x92e   : > { %v3067_v24 = vpop.xlane.xlu1 %3066 }
 0x92f   : > { %6167 = vpow2.f32 %v3088_v12  ;;  %v3090_v28 = vmul.f32 1.442695, %v3078_v63  ;;  %v3079_v53 = vsub.f32 %v7681_v42, %v3067_v24 }
 0x930   : > { %v3070_v20 = vpop.xlane.xlu0 %3069 }
 0x931   : > { %6169 = vpow2.f32 %v3090_v28  ;;  %v3092_v57 = vmul.f32 1.442695, %v3079_v53  ;;  %v3080_v51 = vsub.f32 %v7685_v38, %v3070_v20 }
 0x932   : > { %v3073_v41 = vpop.xlane.xlu1 %3072 }
 0x933   : > { %v7805_v4 = vpop.eup %6161  ;;  %6171 = vpow2.f32 %v3092_v57  ;;  %v3094_v39 = vmul.f32 1.442695, %v3080_v51  ;;  %v3081_v18 = vsub.f32 %v7689_v44, %v3073_v41 }
 0x934   : > { %v2856_v32 = vpop.xlane.xlu0 %2855  ;;  %v3098_v22 = vsel %vm2853_vm2, %v7805_v4, 0.0 }
 0x935   : > { %v7810_v48 = vpop.eup %6163  ;;  %6173 = vpow2.f32 %v3094_v39  ;;  %v3096_v42 = vmul.f32 1.442695, %v3081_v18  ;;  %v2878_v23 = vsub.f32 %v7693_v52, %v2856_v32  ;;  %3099 = vadd.xlane.f32.xlu0 %v3098_v22 }
 0x936   : > { %v2859_v60 = vpop.xlane.xlu1 %2858  ;;  %v3101_v38 = vsel %vm2853_vm2, %v7810_v48, 0.0 }
 0x937   : > { %v7815_v3 = vpop.eup %6165  ;;  %6175 = vpow2.f32 %v3096_v42  ;;  %v2886_v11 = vmul.f32 1.442695, %v2878_v23  ;;  %v2879_v44 = vsub.f32 %v7697_v54, %v2859_v60  ;;  %3102 = vadd.xlane.f32.xlu1 %v3101_v38 }
 0x938   : > { %v2862_v7 = vpop.xlane.xlu0 %2861  ;;  %v3104_v59 = vsel %vm2853_vm2, %v7815_v3, 0.0 }
 0x939   : > { %v7820_v0 = vpop.eup %6167  ;;  %6177 = vpow2.f32 %v2886_v11  ;;  %v2888_v52 = vmul.f32 1.442695, %v2879_v44  ;;  %v2880_v61 = vsub.f32 %v7701_v17, %v2862_v7  ;;  %3105 = vadd.xlane.f32.xlu0 %v3104_v59 }
 0x93a   : > { %v2865_v27 = vpop.xlane.xlu1 %2864  ;;  %v3107_v55 = vsel %vm2853_vm2, %v7820_v0, 0.0 }
 0x93b   : > { %v7825_v12 = vpop.eup %6169  ;;  %6179 = vpow2.f32 %v2888_v52  ;;  %v2890_v54 = vmul.f32 1.442695, %v2880_v61  ;;  %v2881_v63 = vsub.f32 %v7705_v8, %v2865_v27  ;;  %3108 = vadd.xlane.f32.xlu1 %v3107_v55 }
 0x93c   : > { %v2868_v24 = vpop.xlane.xlu0 %2867  ;;  %v3110_v28 = vsel %vm2853_vm2, %v7825_v12, 0.0 }
 0x93d   : > { %v7830_v53 = vpop.eup %6171  ;;  %6181 = vpow2.f32 %v2890_v54  ;;  %v2892_v17 = vmul.f32 1.442695, %v2881_v63  ;;  %v2882_v20 = vsub.f32 %v7709_v19, %v2868_v24  ;;  %3111 = vadd.xlane.f32.xlu0 %v3110_v28 }
 0x93e   : > { %v2871_v57 = vpop.xlane.xlu1 %2870  ;;  %v3113_v51 = vsel %vm2853_vm2, %v7830_v53, 0.0 }
 0x93f   : > { %v7835_v41 = vpop.eup %6173  ;;  %6183 = vpow2.f32 %v2892_v17  ;;  %v2894_v8 = vmul.f32 1.442695, %v2882_v20  ;;  %v2883_v39 = vsub.f32 %v7713_v29, %v2871_v57  ;;  %3114 = vadd.xlane.f32.xlu1 %v3113_v51 }
 0x940   : > { %v2874_v18 = vpop.xlane.xlu0 %2873  ;;  %v3116_v32 = vsel %vm2853_vm2, %v7835_v41, 0.0 }
 0x941   : > { %v7840_v22 = vpop.eup %6175  ;;  %6185 = vpow2.f32 %v2894_v8  ;;  %v2896_v19 = vmul.f32 1.442695, %v2883_v39  ;;  %v2884_v42 = vsub.f32 %v7718_v50, %v2874_v18  ;;  %3117 = vadd.xlane.f32.xlu0 %v3116_v32 }
 0x942   : > { %v2877_v23 = vpop.xlane.xlu1 %2876  ;;  %v3119_v60 = vsel %vm2853_vm2, %v7840_v22, 0.0 }
 0x943   : > { %v7845_v38 = vpop.eup %6177  ;;  %6187 = vpow2.f32 %v2896_v19  ;;  %v2898_v29 = vmul.f32 1.442695, %v2884_v42  ;;  %v2885_v11 = vsub.f32 %v7723_v2, %v2877_v23  ;;  %3120 = vadd.xlane.f32.xlu1 %v3119_v60 }
 0x944   : > { %v3409_v44 = vpop.xlane.xlu0 %3408  ;;  %v2902_v7 = vsel %vm2853_vm2, %v7845_v38, 0.0 }
 0x945   : > { %v7850_v59 = vpop.eup %6179  ;;  %6189 = vpow2.f32 %v2898_v29  ;;  %v2900_v50 = vmul.f32 1.442695, %v2885_v11  ;;  %v3431_v52 = vsub.f32 %v7727_v25, %v3409_v44  ;;  %2903 = vadd.xlane.f32.xlu0 %v2902_v7 }
 0x946   : > { %v3412_v61 = vpop.xlane.xlu1 %3411  ;;  %v2905_v27 = vsel %vm2853_vm2, %v7850_v59, 0.0 }
 0x947   : > { %v7855_v55 = vpop.eup %6181  ;;  %6191 = vpow2.f32 %v2900_v50  ;;  %v3439_v2 = vmul.f32 1.442695, %v3431_v52  ;;  %v3432_v54 = vsub.f32 %v7731_v46, %v3412_v61  ;;  %2906 = vadd.xlane.f32.xlu1 %v2905_v27 }
 0x948   : > { %v3415_v63 = vpop.xlane.xlu0 %3414  ;;  %v2908_v24 = vsel %vm2853_vm2, %v7855_v55, 0.0 }
 0x949   : > { %v7860_v28 = vpop.eup %6183  ;;  %6193 = vpow2.f32 %v3439_v2  ;;  %v3441_v25 = vmul.f32 1.442695, %v3432_v54  ;;  %v3433_v17 = vsub.f32 %v7736_v36, %v3415_v63  ;;  %2909 = vadd.xlane.f32.xlu0 %v2908_v24 }
 0x94a   : > { %v3418_v20 = vpop.xlane.xlu1 %3417  ;;  %v2911_v57 = vsel %vm2853_vm2, %v7860_v28, 0.0 }
 0x94b   : > { %v7865_v51 = vpop.eup %6185  ;;  %6195 = vpow2.f32 %v3441_v25  ;;  %v3443_v46 = vmul.f32 1.442695, %v3433_v17  ;;  %v3434_v8 = vsub.f32 %v7741_v16, %v3418_v20  ;;  %2912 = vadd.xlane.f32.xlu1 %v2911_v57 }
 0x94c   : > { %v3421_v39 = vpop.xlane.xlu0 %3420  ;;  %v2914_v18 = vsel %vm2853_vm2, %v7865_v51, 0.0 }
 0x94d   : > { %v7870_v32 = vpop.eup %6187  ;;  %6197 = vpow2.f32 %v3443_v46  ;;  %v3445_v36 = vmul.f32 1.442695, %v3434_v8  ;;  %v3435_v19 = vsub.f32 %v7745_v47, %v3421_v39  ;;  %2915 = vadd.xlane.f32.xlu0 %v2914_v18 }
 0x94e   : > { %v3424_v42 = vpop.xlane.xlu1 %3423  ;;  %v2917_v23 = vsel %vm2853_vm2, %v7870_v32, 0.0 }
 0x94f   : > { %v7875_v60 = vpop.eup %6189  ;;  %6199 = vpow2.f32 %v3445_v36  ;;  %v3447_v16 = vmul.f32 1.442695, %v3435_v19  ;;  %v3436_v29 = vsub.f32 %v7749_v35, %v3424_v42  ;;  %2918 = vadd.xlane.f32.xlu1 %v2917_v23 }
 0x950   : > { %v3427_v11 = vpop.xlane.xlu0 %3426  ;;  %v2920_v44 = vsel %vm2853_vm2, %v7875_v60, 0.0 }
 0x951   : > { %v7880_v7 = vpop.eup %6191  ;;  %6201 = vpow2.f32 %v3447_v16  ;;  %v3449_v47 = vmul.f32 1.442695, %v3436_v29  ;;  %v3437_v50 = vsub.f32 %v7754_v14, %v3427_v11  ;;  %2921 = vadd.xlane.f32.xlu0 %v2920_v44 }
 0x952   : > { %v3430_v52 = vpop.xlane.xlu1 %3429  ;;  %v2923_v61 = vsel %vm2853_vm2, %v7880_v7, 0.0 }
 0x953   : > { %v7885_v27 = vpop.eup %6193  ;;  %6203 = vpow2.f32 %v3449_v47  ;;  %v3451_v35 = vmul.f32 1.442695, %v3437_v50  ;;  %v3438_v2 = vsub.f32 %v7758_v26, %v3430_v52  ;;  %2924 = vadd.xlane.f32.xlu1 %v2923_v61 }
 0x954   : > { %v3693_v54 = vpop.xlane.xlu0 %3692  ;;  %v3455_v63 = vsel %vm2853_vm2, %v7885_v27, 0.0 }
 0x955   : > { %v7890_v24 = vpop.eup %6195  ;;  %6205 = vpow2.f32 %v3451_v35  ;;  %v3453_v14 = vmul.f32 1.442695, %v3438_v2  ;;  %v3715_v25 = vsub.f32 %v7762_v21, %v3693_v54  ;;  %3456 = vadd.xlane.f32.xlu0 %v3455_v63 }
 0x956   : > { %v3696_v17 = vpop.xlane.xlu1 %3695  ;;  %v3458_v20 = vsel %vm2853_vm2, %v7890_v24, 0.0 }
 0x957   : > { %v7895_v57 = vpop.eup %6197  ;;  %6207 = vpow2.f32 %v3453_v14  ;;  %v3723_v26 = vmul.f32 1.442695, %v3715_v25  ;;  %v3716_v46 = vsub.f32 %v7766_v62, %v3696_v17  ;;  %3459 = vadd.xlane.f32.xlu1 %v3458_v20 }
 0x958   : > { %v3699_v8 = vpop.xlane.xlu0 %3698  ;;  %v3461_v39 = vsel %vm2853_vm2, %v7895_v57, 0.0 }
 0x959   : > { %v7900_v18 = vpop.eup %6199  ;;  %6209 = vpow2.f32 %v3723_v26  ;;  %v3725_v21 = vmul.f32 1.442695, %v3716_v46  ;;  %v3717_v36 = vsub.f32 %v7770_v15, %v3699_v8  ;;  %3462 = vadd.xlane.f32.xlu0 %v3461_v39 }
 0x95a   : > { %v3702_v19 = vpop.xlane.xlu1 %3701  ;;  %v3464_v42 = vsel %vm2853_vm2, %v7900_v18, 0.0 }
 0x95b   : > { %v7905_v23 = vpop.eup %6201  ;;  %6211 = vpow2.f32 %v3725_v21  ;;  %v3727_v62 = vmul.f32 1.442695, %v3717_v36  ;;  %v3718_v16 = vsub.f32 %v7774_v10, %v3702_v19  ;;  %3465 = vadd.xlane.f32.xlu1 %v3464_v42 }
 0x95c   : > { %v3705_v29 = vpop.xlane.xlu0 %3704  ;;  %v3467_v11 = vsel %vm2853_vm2, %v7905_v23, 0.0 }
 0x95d   : > { %v7910_v44 = vpop.eup %6203  ;;  %6213 = vpow2.f32 %v3727_v62  ;;  %v3729_v15 = vmul.f32 1.442695, %v3718_v16  ;;  %v3719_v47 = vsub.f32 %v7778_v49, %v3705_v29  ;;  %3468 = vadd.xlane.f32.xlu0 %v3467_v11 }
 0x95e   : > { %v3708_v50 = vpop.xlane.xlu1 %3707  ;;  %v3470_v52 = vsel %vm2853_vm2, %v7910_v44, 0.0 }
 0x95f   : > { %v7915_v61 = vpop.eup %6205  ;;  %6215 = vpow2.f32 %v3729_v15  ;;  %v3731_v10 = vmul.f32 1.442695, %v3719_v47  ;;  %v3720_v35 = vsub.f32 %v7782_v31, %v3708_v50  ;;  %3471 = vadd.xlane.f32.xlu1 %v3470_v52 }
 0x960   : > { %v3711_v2 = vpop.xlane.xlu0 %3710  ;;  %v3473_v54 = vsel %vm2853_vm2, %v7915_v61, 0.0 }
 0x961   : > { %v7920_v63 = vpop.eup %6207  ;;  %6217 = vpow2.f32 %v3731_v10  ;;  %v3733_v49 = vmul.f32 1.442695, %v3720_v35  ;;  %v3721_v14 = vsub.f32 %v7786_v30, %v3711_v2  ;;  %3474 = vadd.xlane.f32.xlu0 %v3473_v54 }
 0x962   : > { %v3714_v25 = vpop.xlane.xlu1 %3713  ;;  %v3476_v17 = vsel %vm2853_vm2, %v7920_v63, 0.0 }
 0x963   : > { %v7925_v20 = vpop.eup %6209  ;;  %6219 = vpow2.f32 %v3733_v49  ;;  %v3735_v31 = vmul.f32 1.442695, %v3721_v14  ;;  %v3722_v26 = vsub.f32 %v7790_v13, %v3714_v25  ;;  %3477 = vadd.xlane.f32.xlu1 %v3476_v17 }
 0x964   : > { %v3739_v46 = vsel %vm2853_vm2, %v7925_v20, 0.0 }
 0x965   : > { %v7930_v8 = vpop.eup %6211  ;;  %6221 = vpow2.f32 %v3735_v31  ;;  %v3737_v39 = vmul.f32 1.442695, %v3722_v26  ;;  %3740 = vadd.xlane.f32.xlu0 %v3739_v46 }
 0x966   : > { %v3742_v30 = vsel %vm2853_vm2, %v7930_v8, 0.0 }
 0x967   : > { %v7934_v21 = vpop.eup %6213  ;;  %6223 = vpow2.f32 %v3737_v39  ;;  %3743 = vadd.xlane.f32.xlu1 %v3742_v30 }
 0x968   : > { %v3745_v36 = vsel %vm2853_vm2, %v7934_v21, 0.0 }
 0x969   : > { %v7938_v13 = vpop.eup %6215  ;;  %3746 = vadd.xlane.f32.xlu0 %v3745_v36 }
 0x96a   : > { %v3748_v19 = vsel %vm2853_vm2, %v7938_v13, 0.0 }
 0x96b   : > { %v7942_v42 = vpop.eup %6217  ;;  %3749 = vadd.xlane.f32.xlu1 %v3748_v19 }
 0x96c   : > { %v3751_v62 = vsel %vm2853_vm2, %v7942_v42, 0.0 }
 0x96d   : > { %v7946_v16 = vpop.eup %6219  ;;  %3752 = vadd.xlane.f32.xlu0 %v3751_v62 }
 0x96e   : > { %v3754_v29 = vsel %vm2853_vm2, %v7946_v16, 0.0 }
 0x96f   : > { %v7950_v11 = vpop.eup %6221  ;;  %3755 = vadd.xlane.f32.xlu1 %v3754_v29 }
 0x970   : > { %v3757_v15 = vsel %vm2853_vm2, %v7950_v11, 0.0 }
 0x971   : > { %v7954_v47 = vpop.eup %6223  ;;  %3758 = vadd.xlane.f32.xlu0 %v3757_v15 }
 0x972   : > { %v3760_v50 = vsel %vm2853_vm2, %v7954_v47, 0.0 }
 0x973   : > { %3761 = vadd.xlane.f32.xlu1 %v3760_v50 }
 0x9c2   : > { %v3100_v52 = vpop.xlane.xlu0 %3099 }
 0x9c3   : > { %6225 = vrcp.f32 %v3100_v52 }
 0x9c4   : > { %v3103_v10 = vpop.xlane.xlu1 %3102 }
 0x9c5   : > { %6227 = vrcp.f32 %v3103_v10 }
 0x9c6   : > { %v3106_v35 = vpop.xlane.xlu0 %3105 }
 0x9c7   : > { %6229 = vrcp.f32 %v3106_v35 }
 0x9c8   : > { %v3109_v2 = vpop.xlane.xlu1 %3108 }
 0x9c9   : > { %6231 = vrcp.f32 %v3109_v2 }
 0x9ca   : > { %v3112_v54 = vpop.xlane.xlu0 %3111 }
 0x9cb   : > { %6233 = vrcp.f32 %v3112_v54 }
 0x9cc   : > { %v3115_v49 = vpop.xlane.xlu1 %3114 }
 0x9cd   : > { %v6226_v14 = vpop.eup %6225  ;;  %6235 = vrcp.f32 %v3115_v49 }
 0x9ce   : > { %v3118_v25 = vpop.xlane.xlu0 %3117  ;;  %v3130_v26 = vmul.f32 %v6226_v14, %v7805_v4  ;;  %v3317_v4 = vsel %vm6612_vm8, %v7641_v40, 0.0 }
 0x9cf   : > { %v6228_v17 = vpop.eup %6227  ;;  %6237 = vrcp.f32 %v3118_v25  ;;  %v3318_v35 = vpack.c.bf16 %v3317_v4, %v3317_v4 }
 0x9d0   : > { %v3121_v31 = vpop.xlane.xlu1 %3120  ;;  %v3131_v46 = vmul.f32 %v6228_v17, %v7810_v48 }
 0x9d1   : > { %v6230_v39 = vpop.eup %6229  ;;  %6239 = vrcp.f32 %v3121_v31 }
 0x9d2   : > { %v2904_v30 = vpop.xlane.xlu0 %2903  ;;  %v3138_v36 = vpack.c.bf16 %v3131_v46, %v3130_v26  ;;  %v3132_v62 = vmul.f32 %v6230_v39, %v7815_v3  ;;  %v3236_v3 = vsel %vm3154_vm1, %v7649_v34, 0 }
 0x9d3   : > { %v6232_v19 = vpop.eup %6231  ;;  %6241 = vrcp.f32 %v2904_v30 }
 0x9d4   : > { %v3133_v29 = vmul.f32 %v6232_v19, %v7820_v0  ;;  %5782 = vmatprep.mubr.msk.bf16.mxu0 %vm2853_vm2, %v3138_v36  ;;  %v2907_v15 = vpop.xlane.xlu1 %2906 }
 0x9d5   : > { %v6234_v50 = vpop.eup %6233  ;;  %6243 = vrcp.f32 %v2907_v15 }
 0x9d6   : > { %v2910_v48 = vpop.xlane.xlu0 %2909  ;;  %v3139_v52 = vpack.c.bf16 %v3133_v29, %v3132_v62  ;;  %v3134_v2 = vmul.f32 %v6234_v50, %v7825_v12 }
 0x9d7   : > { %v6236_v10 = vpop.eup %6235  ;;  %6245 = vrcp.f32 %v2910_v48 }
 0x9d8   : > { %5783 = vmatmul.mubr.msk.bf16.vlgmr.msra.gmra.mrb[56].mxu0 %vm2853_vm2, %v3139_v52  ;;  %v2913_v0 = vpop.xlane.xlu1 %2912  ;;  %v3135_v54 = vmul.f32 %v6236_v10, %v7830_v53 }
 0x9d9   : > { %v6238_v49 = vpop.eup %6237  ;;  %5791 = vmatpush3.bf16.msra.mxu0 %v3236_v3  ;;  %6247 = vrcp.f32 %v2913_v0 }
 0x9da   : > { %5952 = vmatprep.subr.msk.bf16.mxu0 %vm3154_vm1, %v3318_v35  ;;  %v2916_v5 = vpop.xlane.xlu0 %2915  ;;  %v3140_v14 = vpack.c.bf16 %v3135_v54, %v3134_v2  ;;  %v3136_v31 = vmul.f32 %v6238_v49, %v7835_v41 }
 0x9db   : > { %v6240_v25 = vpop.eup %6239  ;;  %6249 = vrcp.f32 %v2916_v5 }
 0x9dc   : > { %5786 = vmatprep.mubr.msk.bf16.mxu0 %vm2853_vm2, %v3140_v14  ;;  %v2919_v17 = vpop.xlane.xlu1 %2918  ;;  %v3137_v34 = vmul.f32 %v6240_v25, %v7840_v22 }
 0x9dd   : > { %v6242_v26 = vpop.eup %6241  ;;  %6251 = vrcp.f32 %v2919_v17 }
 0x9de   : > { %v2922_v12 = vpop.xlane.xlu0 %2921  ;;  %v3141_v53 = vpack.c.bf16 %v3137_v34, %v3136_v31  ;;  %v2934_v30 = vmul.f32 %v6242_v26, %v7845_v38  ;;  %v3601_v38 = vsel %vm6617_vm10, %v7641_v40, 0.0 }
 0x9df   : > { %v6244_v46 = vpop.eup %6243  ;;  %6253 = vrcp.f32 %v2922_v12  ;;  %v3602_v10 = vpack.c.bf16 %v3601_v38, %v3601_v38 }
 0x9e0   : > { %5787 = vmatmul.mubr.msk.bf16.gmra.mrb[60].mxu0 %vm2853_vm2, %v3141_v53  ;;  %v2925_v39 = vpop.xlane.xlu1 %2924  ;;  %v2935_v36 = vmul.f32 %v6244_v46, %v7850_v59 }
 0x9e1   : > { %v6246_v19 = vpop.eup %6245  ;;  %6255 = vrcp.f32 %v2925_v39 }
 0x9e2   : > { %v3457_v62 = vpop.xlane.xlu0 %3456  ;;  %v2942_v29 = vpack.c.bf16 %v2935_v36, %v2934_v30  ;;  %v2936_v22 = vmul.f32 %v6246_v19, %v7855_v55  ;;  %v3512_v55 = vsel %vm3154_vm1, %v3318_v35, 0 }
 0x9e3   : > { %v6248_v41 = vpop.eup %6247  ;;  %6257 = vrcp.f32 %v3457_v62 }
 0x9e4   : > { %v2937_v15 = vmul.f32 %v6248_v41, %v7860_v28  ;;  %5792 = vmatprep.mubr.msk.bf16.mxu0 %vm2853_vm2, %v2942_v29  ;;  %v3460_v50 = vpop.xlane.xlu1 %3459 }
 0x9e5   : > { %v6250_v4 = vpop.eup %6249  ;;  %6259 = vrcp.f32 %v3460_v50 }
 0x9e6   : > { %v2943_v59 = vpack.c.bf16 %v2937_v15, %v2936_v22  ;;  %v3463_v48 = vpop.xlane.xlu0 %3462  ;;  %v2938_v28 = vmul.f32 %v6250_v4, %v7865_v51 }
 0x9e7   : > { %v6252_v52 = vpop.eup %6251  ;;  %6261 = vrcp.f32 %v3463_v48 }
 0x9e8   : > { %5793 = vmatmul.mubr.msk.bf16.vlgmr.msra.gmra.mrb[56].mxu0 %vm2853_vm2, %v2943_v59  ;;  %v3466_v3 = vpop.xlane.xlu1 %3465  ;;  %v2939_v0 = vmul.f32 %v6252_v52, %v7870_v32 }
 0x9e9   : > { %v6254_v2 = vpop.eup %6253  ;;  %5811 = vmatpush3.bf16.msra.mxu0 %v3512_v55  ;;  %6263 = vrcp.f32 %v3466_v3 }
 0x9ea   : > { %5954 = vmatprep.subr.msk.bf16.mxu0 %vm3154_vm1, %v3602_v10  ;;  %v3469_v6 = vpop.xlane.xlu0 %3468  ;;  %v2944_v40 = vpack.c.bf16 %v2939_v0, %v2938_v28  ;;  %v2940_v5 = vmul.f32 %v6254_v2, %v7875_v60 }
 0x9eb   : > { %v6256_v54 = vpop.eup %6255  ;;  %6265 = vrcp.f32 %v3469_v6 }
 0x9ec   : > { %5796 = vmatprep.mubr.msk.bf16.mxu0 %vm2853_vm2, %v2944_v40  ;;  %v3472_v49 = vpop.xlane.xlu1 %3471  ;;  %v2941_v35 = vmul.f32 %v6256_v54, %v7880_v7 }
 0x9ed   : > { %v6258_v14 = vpop.eup %6257  ;;  %6267 = vrcp.f32 %v3472_v49 }
 0x9ee   : > { %v3475_v51 = vpop.xlane.xlu0 %3474  ;;  %v2945_v32 = vpack.c.bf16 %v2941_v35, %v2940_v5  ;;  %v3487_v31 = vmul.f32 %v6258_v14, %v7885_v27 }
 0x9ef   : > { %v6260_v25 = vpop.eup %6259  ;;  %6269 = vrcp.f32 %v3475_v51 }
 0x9f0   : > { %5797 = vmatmul.mubr.msk.bf16.gmra.mrb[60].mxu0 %vm2853_vm2, %v2945_v32  ;;  %v3478_v17 = vpop.xlane.xlu1 %3477  ;;  %v3488_v34 = vmul.f32 %v6260_v25, %v7890_v24  ;;  %v3796_v24 = vsel %vm3154_vm1, %v3602_v10, 0 }
 0x9f1   : > { %v6262_v26 = vpop.eup %6261  ;;  %6271 = vrcp.f32 %v3478_v17 }
 0x9f2   : > { %v3741_v12 = vpop.xlane.xlu0 %3740  ;;  %v3495_v53 = vpack.c.bf16 %v3488_v34, %v3487_v31  ;;  %v3489_v7 = vmul.f32 %v6262_v26, %v7895_v57 }
 0x9f3   : > { %v6264_v60 = vpop.eup %6263  ;;  %6273 = vrcp.f32 %v3741_v12 }
 0x9f4   : > { %v3490_v46 = vmul.f32 %v6264_v60, %v7900_v18  ;;  %5812 = vmatprep.mubr.msk.bf16.mxu0 %vm2853_vm2, %v3495_v53  ;;  %v3744_v39 = vpop.xlane.xlu1 %3743 }
 0x9f5   : > { %v6266_v30 = vpop.eup %6265  ;;  %6275 = vrcp.f32 %v3744_v39 }
 0x9f6   : > { %v3496_v36 = vpack.c.bf16 %v3490_v46, %v3489_v7  ;;  %v3747_v19 = vpop.xlane.xlu0 %3746  ;;  %v3491_v29 = vmul.f32 %v6266_v30, %v7905_v23 }
 0x9f7   : > { %v6268_v27 = vpop.eup %6267  ;;  %6277 = vrcp.f32 %v3747_v19 }
 0x9f8   : > { %5813 = vmatmul.mubr.msk.bf16.vlgmr.msra.gmra.mrb[56].mxu0 %vm2853_vm2, %v3496_v36  ;;  %v3750_v62 = vpop.xlane.xlu1 %3749  ;;  %v3492_v57 = vmul.f32 %v6268_v27, %v7910_v44 }
 0x9f9   : > { %v6270_v41 = vpop.eup %6269  ;;  %5831 = vmatpush3.bf16.msra.mxu0 %v3796_v24  ;;  %6279 = vrcp.f32 %v3750_v62 }
 0x9fa   : > { %v3753_v18 = vpop.xlane.xlu0 %3752  ;;  %v3497_v22 = vpack.c.bf16 %v3492_v57, %v3491_v29  ;;  %v3493_v4 = vmul.f32 %v6270_v41, %v7915_v61 }
 0x9fb   : > { %v6272_v15 = vpop.eup %6271  ;;  %6281 = vrcp.f32 %v3753_v18 }
 0x9fc   : > { %5816 = vmatprep.mubr.msk.bf16.mxu0 %vm2853_vm2, %v3497_v22  ;;  %v3756_v50 = vpop.xlane.xlu1 %3755  ;;  %v3494_v38 = vmul.f32 %v6272_v15, %v7920_v63 }
 0x9fd   : > { %v6274_v59 = vpop.eup %6273  ;;  %6283 = vrcp.f32 %v3756_v50 }
 0x9fe   : > { %v3759_v48 = vpop.xlane.xlu0 %3758  ;;  %v3498_v23 = vpack.c.bf16 %v3494_v38, %v3493_v4  ;;  %v3771_v10 = vmul.f32 %v6274_v59, %v7925_v20 }
 0x9ff   : > { %v6276_v52 = vpop.eup %6275  ;;  %6285 = vrcp.f32 %v3759_v48 }
 0xa00   : > { %5817 = vmatmul.mubr.msk.bf16.gmra.mrb[60].mxu0 %vm2853_vm2, %v3498_v23  ;;  %v3762_v44 = vpop.xlane.xlu1 %3761  ;;  %v3772_v55 = vmul.f32 %v6276_v52, %v7930_v8 }
 0xa01   : > { %v6278_v3 = vpop.eup %6277  ;;  %6287 = vrcp.f32 %v3762_v44 }
 0xa02   : > { %v3779_v28 = vpack.c.bf16 %v3772_v55, %v3771_v10  ;;  %v3773_v61 = vmul.f32 %v6278_v3, %v7934_v21 }
 0xa03   : > { %v6280_v0 = vpop.eup %6279 }
 0xa04   : > { %v3774_v63 = vmul.f32 %v6280_v0, %v7938_v13  ;;  %5832 = vmatprep.mubr.msk.bf16.mxu0 %vm2853_vm2, %v3779_v28 }
 0xa05   : > { %v6282_v2 = vpop.eup %6281 }
 0xa06   : > { %v3780_v6 = vpack.c.bf16 %v3774_v63, %v3773_v61  ;;  %v3775_v54 = vmul.f32 %v6282_v2, %v7942_v42 }
 0xa07   : > { %v6284_v40 = vpop.eup %6283 }
 0xa08   : > { %5833 = vmatmul.mubr.msk.bf16.vlgmr.msra.gmra.mrb[56].mxu0 %vm2853_vm2, %v3780_v6  ;;  %v3776_v20 = vmul.f32 %v6284_v40, %v7946_v16 }
 0xa09   : > { %v6286_v8 = vpop.eup %6285 }
 0xa0a   : > { %v3781_v49 = vpack.c.bf16 %v3776_v20, %v3775_v54  ;;  %v3777_v21 = vmul.f32 %v6286_v8, %v7950_v11 }
 0xa0b   : > { %v6288_v5 = vpop.eup %6287 }
 0xa0c   : > { %5836 = vmatprep.mubr.msk.bf16.mxu0 %vm2853_vm2, %v3781_v49  ;;  %v3778_v13 = vmul.f32 %v6288_v5, %v7954_v47 }
 0xa0e   : > { %v3782_v35 = vpack.c.bf16 %v3778_v13, %v3777_v21 }
 0xa10   : > { %5837 = vmatmul.mubr.msk.bf16.gmra.mrb[60].mxu0 %vm2853_vm2, %v3782_v35 }
 0xadb   : > { %v5834_v14 = vpop.f32.mrb[56].mxu0 }
 0xadc   : > { %v3832_v51 = vpop.f32.mrb[57].mxu0  ;;  %v8022_v16 = vadd.f32 %v5834_v14, %v7380_v45  ;;  %v5989_v14 = vld [vmem:[%s8661_s14] sm:$0xff]  }
 0xadd   : > { %v8019_v32 = vadd.f32 %v3832_v51, %v7377_v56  ;;  %v5835_v42 = vpop.f32.mrb[58].mxu0  ;;  %5840 = vmatprep.subr.bf16.mxu1 %v5989_v14  ;;  %v5990_v51 = vld [vmem:[%s8661_s14 + $0x8] sm:$0xff]  }
 0xade   : > { %v3835_v25 = vpop.f32.mrb[59].mxu0  ;;  %v8030_v47 = vadd.f32 %v5835_v42, %v7388_v9  ;;  %v3887_v34 = vsel %vm660_vm0, %v8022_v16, 0.0  ;;  %5841 = vmatpush3.bf16.msra.mxu1 %v5989_v14  ;;  %v5991_v42 = vld [vmem:[%s8661_s14 + $0x10] sm:$0xff]  }
 0xadf   : > { %v8025_v17 = vadd.f32 %v3835_v25, %v7383_v43  ;;  %v3881_v11 = vsel %vm660_vm0, %v8019_v32, 0.0  ;;  %5842 = vmatprep.subr.bf16.mxu1 %v5990_v51  ;;  %v5992_v25 = vld [vmem:[%s8661_s14 + $0x18] sm:$0xff]  }
 0xae0   : > { %3882 = vadd.xlane.f32.xlu0 %v3881_v11  ;;  %v3890_v12 = vsel %vm660_vm0, %v8030_v47, 0.0 }
 0xae1   : > { %8698 = vst [vmem:[#allocation3_spill] sm:$0xff] %v8025_v17  ;;  %v3884_v31 = vsel %vm660_vm0, %v8025_v17, 0.0 }
 0xae2   : > { %3885 = vadd.xlane.f32.xlu1 %v3884_v31  ;;  %5843 = vmatpush3.bf16.msra.mxu1 %v5990_v51 }
 0xae3   : > { %v5838_v56 = vpop.f32.mrb[60].mxu0  ;;  %5844 = vmatprep.subr.bf16.mxu1 %v5991_v42 }
 0xae4   : > { %3888 = vadd.xlane.f32.xlu0 %v3887_v34  ;;  %v3848_v45 = vpop.f32.mrb[61].mxu0  ;;  %v8042_v53 = vadd.f32 %v5838_v56, %v7400_v58 }
 0xae5   : > { %v8037_v43 = vadd.f32 %v3848_v45, %v7395_v33  ;;  %v5839_v26 = vpop.f32.mrb[62].mxu0 }
 0xae6   : > { %3891 = vadd.xlane.f32.xlu1 %v3890_v12  ;;  %v3851_v9 = vpop.f32.mrb[63].mxu0  ;;  %8700 = vst [vmem:[#allocation5_spill] sm:$0xff] %v8042_v53  ;;  %v8050_v46 = vadd.f32 %v5839_v26, %v7408_v37  ;;  %v3899_v39 = vsel %vm660_vm0, %v8042_v53, 0.0  ;;  %5845 = vmatpush3.bf16.msra.mxu1 %v5991_v42 }
 0xae7   : > { %8699 = vst [vmem:[#allocation4_spill] sm:$0xff] %v8037_v43  ;;  %v8045_v60 = vadd.f32 %v3851_v9, %v7403_v1  ;;  %v3893_v7 = vsel %vm660_vm0, %v8037_v43, 0.0  ;;  %5846 = vmatprep.subr.bf16.mxu1 %v5992_v25 }
 0xae8   : > { %3894 = vadd.xlane.f32.xlu0 %v3893_v7  ;;  %8702 = vst [vmem:[#allocation7_spill] sm:$0xff] %v8050_v46  ;;  %v3902_v58 = vsel %vm660_vm0, %v8050_v46, 0.0 }
 0xae9   : > { %8701 = vst [vmem:[#allocation6_spill] sm:$0xff] %v8045_v60  ;;  %v3896_v33 = vsel %vm660_vm0, %v8045_v60, 0.0 }
 0xaea   : > { %3897 = vadd.xlane.f32.xlu1 %v3896_v33  ;;  %5847 = vmatpush3.bf16.msra.mxu1 %v5992_v25 }
 0xaec   : > { %3900 = vadd.xlane.f32.xlu0 %v3899_v39 }
 0xaee   : > { %3903 = vadd.xlane.f32.xlu1 %v3902_v58 }
 0xb6d   : > { %v3883_v1 = vpop.xlane.xlu0 %3882 }
 0xb6e   : > { %v3905_v30 = vmul.f32 0.015625, %v3883_v1 }
 0xb6f   : > { %v3886_v36 = vpop.xlane.xlu1 %3885 }
 0xb70   : > { %v8059_v19 = vsub.f32 %v8019_v32, %v3905_v30  ;;  %v3906_v37 = vmul.f32 0.015625, %v3886_v36 }
 0xb71   : > { %v3889_v27 = vpop.xlane.xlu0 %3888 }
 0xb72   : > { %v8062_v24 = vsub.f32 %v8025_v17, %v3906_v37  ;;  %v3907_v62 = vmul.f32 0.015625, %v3889_v27  ;;  %v3921_v29 = vmul.f32 %v8059_v19, %v8059_v19 }
 0xb73   : > { %v3892_v57 = vpop.xlane.xlu1 %3891 }
 0xb74   : > { %v8067_v41 = vsub.f32 %v8022_v16, %v3907_v62  ;;  %v3908_v18 = vmul.f32 0.015625, %v3892_v57  ;;  %v3929_v22 = vsel %vm660_vm0, %v3921_v29, 0.0  ;;  %v3922_v15 = vmul.f32 %v8062_v24, %v8062_v24 }
 0xb75   : > { %3930 = vadd.xlane.f32.xlu0 %v3929_v22  ;;  %v3895_v50 = vpop.xlane.xlu0 %3894 }
 0xb76   : > { %v8073_v4 = vsub.f32 %v8030_v47, %v3908_v18  ;;  %v3909_v38 = vmul.f32 0.015625, %v3895_v50  ;;  %v3932_v59 = vsel %vm660_vm0, %v3922_v15, 0.0  ;;  %v3923_v48 = vmul.f32 %v8067_v41, %v8067_v41  ;;  %v5344_v15 = vld [vmem:[%s8659_s12] ss:$0 sm:$0xff] }
 0xb77   : > { %3933 = vadd.xlane.f32.xlu1 %v3932_v59  ;;  %v3898_v23 = vpop.xlane.xlu1 %3897 }
 0xb78   : > { %v8079_v52 = vsub.f32 %v8037_v43, %v3909_v38  ;;  %v3910_v44 = vmul.f32 0.015625, %v3898_v23  ;;  %v3935_v10 = vsel %vm660_vm0, %v3923_v48, 0.0  ;;  %v3924_v55 = vmul.f32 %v8073_v4, %v8073_v4 }
 0xb79   : > { %3936 = vadd.xlane.f32.xlu0 %v3935_v10  ;;  %v3901_v3 = vpop.xlane.xlu0 %3900 }
 0xb7a   : > { %v8085_v28 = vsub.f32 %v8045_v60, %v3910_v44  ;;  %v3911_v0 = vmul.f32 0.015625, %v3901_v3  ;;  %v3938_v61 = vsel %vm660_vm0, %v3924_v55, 0.0  ;;  %v3925_v63 = vmul.f32 %v8079_v52, %v8079_v52  ;;  %v5345_v3 = vld [vmem:[%s8660_s13] ss:$0 sm:$0xff] }
 0xb7b   : > { %3939 = vadd.xlane.f32.xlu1 %v3938_v61  ;;  %v3904_v2 = vpop.xlane.xlu1 %3903 }
 0xb7c   : > { %v8091_v6 = vsub.f32 %v8042_v53, %v3911_v0  ;;  %v3912_v40 = vmul.f32 0.015625, %v3904_v2  ;;  %v3941_v54 = vsel %vm660_vm0, %v3925_v63, 0.0  ;;  %v3926_v20 = vmul.f32 %v8085_v28, %v8085_v28 }
 0xb7d   : > { %3942 = vadd.xlane.f32.xlu0 %v3941_v54 }
 0xb7e   : > { %v8097_v8 = vsub.f32 %v8050_v46, %v3912_v40  ;;  %v3944_v49 = vsel %vm660_vm0, %v3926_v20, 0.0  ;;  %v3927_v5 = vmul.f32 %v8091_v6, %v8091_v6 }
 0xb7f   : > { %3945 = vadd.xlane.f32.xlu1 %v3944_v49 }
 0xb80   : > { %v3947_v21 = vsel %vm660_vm0, %v3927_v5, 0.0  ;;  %v3928_v13 = vmul.f32 %v8097_v8, %v8097_v8 }
 0xb81   : > { %3948 = vadd.xlane.f32.xlu0 %v3947_v21 }
 0xb82   : > { %v3950_v35 = vsel %vm660_vm0, %v3928_v13, 0.0 }
 0xb83   : > { %3951 = vadd.xlane.f32.xlu1 %v3950_v35 }
 0xc02   : > { %v3931_v11 = vpop.xlane.xlu0 %3930 }
 0xc03   : > { %v3953_v31 = vmul.f32 0.015625, %v3931_v11 }
 0xc04   : > { %v3934_v56 = vpop.xlane.xlu1 %3933 }
 0xc05   : > { %v3961_v34 = vadd.f32 1e-05, %v3953_v31  ;;  %v3954_v45 = vmul.f32 0.015625, %v3934_v56 }
 0xc06   : > { %v3937_v26 = vpop.xlane.xlu0 %3936 }
 0xc07   : > { %6289 = vrsqrt.f32 %v3961_v34  ;;  %v3962_v12 = vadd.f32 1e-05, %v3954_v45  ;;  %v3955_v9 = vmul.f32 0.015625, %v3937_v26 }
 0xc08   : > { %v3940_v7 = vpop.xlane.xlu1 %3939 }
 0xc09   : > { %6291 = vrsqrt.f32 %v3962_v12  ;;  %v3963_v33 = vadd.f32 1e-05, %v3955_v9  ;;  %v3956_v39 = vmul.f32 0.015625, %v3940_v7  ;;  %v5995_v7 = vld [vmem:[%s8665_s18 + $0x10] sm:$0xff]  }
 0xc0a   : > { %v3943_v58 = vpop.xlane.xlu0 %3942 }
 0xc0b   : > { %6293 = vrsqrt.f32 %v3963_v33  ;;  %v3964_v1 = vadd.f32 1e-05, %v3956_v39  ;;  %v3957_v30 = vmul.f32 0.015625, %v3943_v58  ;;  %v5996_v33 = vld [vmem:[%s8665_s18 + $0x18] sm:$0xff]   ;;  %v5997_v39 = vld [vmem:[%s8665_s18 + $0x20] sm:$0xff]   ;;  %v5998_v58 = vld [vmem:[%s8665_s18 + $0x28] sm:$0xff]  }
 0xc0c   : > { %v3946_v36 = vpop.xlane.xlu1 %3945 }
 0xc0d   : > { %6295 = vrsqrt.f32 %v3964_v1  ;;  %v3965_v37 = vadd.f32 1e-05, %v3957_v30  ;;  %v3958_v27 = vmul.f32 0.015625, %v3946_v36  ;;  %v5999_v1 = vld [vmem:[%s8665_s18 + $0x30] sm:$0xff]   ;;  %v6000_v30 = vld [vmem:[%s8665_s18 + $0x38] sm:$0xff]  }
 0xc0e   : > { %v3949_v62 = vpop.xlane.xlu0 %3948  ;;  %v8163_v36 = vld [vmem:[%s8663_s16] ss:$0 sm:$0xff] }
 0xc0f   : > { %6297 = vrsqrt.f32 %v3965_v37  ;;  %v3966_v29 = vadd.f32 1e-05, %v3958_v27  ;;  %v3959_v57 = vmul.f32 0.015625, %v3949_v62  ;;  %v8168_v37 = vld [vmem:[%s8663_s16 + $0x1] ss:$0 sm:$0xff]  ;;  %v4215_v27 = vmul.f32 0.0, %v8163_v36 }
 0xc10   : > { %v3952_v18 = vpop.xlane.xlu1 %3951  ;;  %v4252_v62 = vmul.f32 0.0, %v8168_v37 }
 0xc11   : > { %v6290_v22 = vpop.eup %6289  ;;  %6299 = vrsqrt.f32 %v3966_v29  ;;  %v3967_v50 = vadd.f32 1e-05, %v3959_v57  ;;  %v3960_v38 = vmul.f32 0.015625, %v3952_v18  ;;  %v8175_v29 = vld [vmem:[%s8664_s17] ss:$0 sm:$0xff] }
 0xc12   : > { %v3977_v59 = vmul.f32 %v6290_v22, %v8059_v19  ;;  %v8180_v57 = vld [vmem:[%s8663_s16 + $0x2] ss:$0 sm:$0xff]  ;;  %v8183_v18 = vadd.f32 %v8175_v29, %v4215_v27  ;;  %v4268_v22 = vrot.slane %v4252_v62, 1 }
 0xc13   : > { %v6292_v48 = vpop.eup %6291  ;;  %6301 = vrsqrt.f32 %v3967_v50  ;;  %v3968_v23 = vadd.f32 1e-05, %v3960_v38 }
 0xc14   : > { %v3978_v44 = vmul.f32 %v6292_v48, %v8062_v24  ;;  %v3991_v10 = vmul.f32 %v5344_v15, %v3977_v59  ;;  %v4284_v50 = vadd.f32 %v4268_v22, %v8183_v18  ;;  %v8192_v59 = vld [vmem:[%s8663_s16 + $0x3] ss:$0 sm:$0xff]  ;;  %v8197_v48 = vld [vmem:[%s8663_s16 + $0x5] ss:$0 sm:$0xff] }
 0xc15   : > { %v6294_v55 = vpop.eup %6293  ;;  %6303 = vrsqrt.f32 %v3968_v23  ;;  %v8202_v23 = vld [vmem:[%s8663_s16 + $0x8] ss:$0 sm:$0xff] }
 0xc16   : > { %v3979_v0 = vmul.f32 %v6294_v55, %v8067_v41  ;;  %v3992_v61 = vmul.f32 %v5344_v15, %v3978_v44  ;;  %v4005_v19 = vadd.f32 %v5345_v3, %v3991_v10  ;;  %v8207_v44 = vld [vmem:[%s8662_s15] ss:$0 sm:$0xff]  ;;  %v8211_v55 = vmul.f32 0.0, %v8192_v59 }
 0xc17   : > { %v6296_v63 = vpop.eup %6295 }
 0xc18   : > { %v3993_v2 = vmul.f32 %v5344_v15, %v3979_v0  ;;  %v3980_v40 = vmul.f32 %v6296_v63, %v8073_v4  ;;  %v4006_v54 = vadd.f32 %v5345_v3, %v3992_v61  ;;  %v8217_v0 = vld [vmem:[%s8663_s16 + $0x7] ss:$0 sm:$0xff]  ;;  %v4673_v61 = vmul.f32 0.0, %v8202_v23 }
 0xc19   : > { %v6298_v20 = vpop.eup %6297  ;;  %v8221_v63 = vmul.f32 0.0, %v8217_v0 }
 0xc1a   : > { %v3994_v49 = vmul.f32 %v5344_v15, %v3980_v40  ;;  %v3981_v24 = vmul.f32 %v6298_v20, %v8079_v52  ;;  %v4013_v5 = vpack.c.bf16 %v4006_v54, %v4005_v19  ;;  %v4007_v13 = vadd.f32 %v5345_v3, %v3993_v2  ;;  %v8229_v54 = vld [vmem:[%s8663_s16 + $0x4] ss:$0 sm:$0xff] }
 0xc1b   : > { %v6300_v21 = vpop.eup %6299 }
 0xc1c   : > { %v4008_v35 = vadd.f32 %v5345_v3, %v3994_v49  ;;  %v3982_v14 = vmul.f32 %v6300_v21, %v8085_v28  ;;  %5848 = vmatprep.mubr.msk.bf16.mxu1 %vm660_vm0, %v4013_v5  ;;  %v3995_v41 = vmul.f32 %v5344_v15, %v3981_v24  ;;  %v8238_v21 = vld [vmem:[%s8663_s16 + $0x6] ss:$0 sm:$0xff] }
 0xc1d   : > { %v6302_v51 = vpop.eup %6301 }
 0xc1e   : > { %v3983_v42 = vmul.f32 %v6302_v51, %v8091_v6  ;;  %v4014_v25 = vpack.c.bf16 %v4008_v35, %v4007_v13  ;;  %v3996_v4 = vmul.f32 %v5344_v15, %v3982_v14  ;;  %v4009_v52 = vadd.f32 %v5345_v3, %v3995_v41  ;;  %v5993_v6 = vld [vmem:[%s8665_s18] sm:$0xff]  }
 0xc1f   : > { %v6304_v11 = vpop.eup %6303  ;;  %5856 = vmatprep.subr.bf16.mxu1 %v5993_v6  ;;  %v8240_v13 = vrot.slane %v4673_v61, 2  ;;  %v8246_v41 = vmul.f32 0.0, %v8238_v21 }
 0xc20   : > { %v3984_v31 = vmul.f32 %v6304_v11, %v8097_v8  ;;  %5849 = vmatmul.mubr.msk.bf16.vlgmr.msra.gmra.mrb[56].mxu1 %vm660_vm0, %v4014_v25  ;;  %v4010_v56 = vadd.f32 %v5345_v3, %v3996_v4  ;;  %v3997_v34 = vmul.f32 %v5344_v15, %v3983_v42  ;;  %v5994_v8 = vld [vmem:[%s8665_s18 + $0x8] sm:$0xff]  }
 0xc21   : > { %5857 = vmatpush3.bf16.msra.mxu1 %v5993_v6 }
 0xc22   : > { %v4015_v45 = vpack.c.bf16 %v4010_v56, %v4009_v52  ;;  %v3998_v26 = vmul.f32 %v5344_v15, %v3984_v31  ;;  %v4011_v28 = vadd.f32 %v5345_v3, %v3997_v34  ;;  %5858 = vmatprep.subr.bf16.mxu1 %v5994_v8  ;;  %v4305_v15 = vmul.f32 0.0, %v8180_v57 }
 0xc24   : > { %5852 = vmatprep.mubr.msk.bf16.mxu1 %vm660_vm0, %v4015_v45  ;;  %v4012_v12 = vadd.f32 %v5345_v3, %v3998_v26  ;;  %v8187_v38 = vrot.slane %v4305_v15, 2  ;;  %v4490_v3 = vmul.f32 0.0, %v8197_v48 }
 0xc25   : > { %5859 = vmatpush3.bf16.msra.mxu1 %v5994_v8 }
 0xc26   : > { %v4016_v9 = vpack.c.bf16 %v4012_v12, %v4011_v28  ;;  %5860 = vmatprep.subr.bf16.mxu1 %v5995_v7  ;;  %v4378_v10 = vadd.f32 %v8187_v38, %v4284_v50  ;;  %v8233_v24 = vrot.slane %v4490_v3, 2 }
 0xc28   : > { %5853 = vmatmul.mubr.msk.bf16.gmra.mrb[60].mxu1 %vm660_vm0, %v4016_v9  ;;  %v4415_v49 = vadd.f32 %v8211_v55, %v4378_v10 }
 0xc29   : > { %5861 = vmatpush3.bf16.msra.mxu1 %v5995_v7 }
 0xc2a   : > { %5862 = vmatprep.subr.bf16.mxu1 %v5996_v33 }
 0xc2d   : > { %5863 = vmatpush3.bf16.msra.mxu1 %v5996_v33 }
 0xc2e   : > { %5864 = vmatprep.subr.bf16.mxu1 %v5997_v39 }
 0xc31   : > { %5865 = vmatpush3.bf16.msra.mxu1 %v5997_v39 }
 0xc32   : > { %5866 = vmatprep.subr.bf16.mxu1 %v5998_v58 }
 0xc35   : > { %5867 = vmatpush3.bf16.msra.mxu1 %v5998_v58 }
 0xc36   : > { %5868 = vmatprep.subr.bf16.mxu1 %v5999_v1 }
 0xc39   : > { %5869 = vmatpush3.bf16.msra.mxu1 %v5999_v1 }
 0xc3a   : > { %5870 = vmatprep.subr.bf16.mxu1 %v6000_v30 }
 0xc3d   : > { %5871 = vmatpush3.bf16.msra.mxu1 %v6000_v30 }
 0xcf3   : > { %v5850_v2 = vpop.f32.mrb[56].mxu1 }
 0xcf4   : > { %v8224_v40 = vadd.f32 %v5850_v2, %v8207_v44  ;;  %v4102_v19 = vpop.f32.mrb[57].mxu1 }
 0xcf5   : > { %v4103_v20 = vadd.f32 %v8207_v44, %v4102_v19  ;;  %v5851_v5 = vpop.f32.mrb[58].mxu1 }
 0xcf6   : > { %v8243_v35 = vadd.f32 %v5851_v5, %v8207_v44  ;;  %v4105_v14 = vpop.f32.mrb[59].mxu1  ;;  %v8250_v51 = vmul.f32 %v8217_v0, %v8224_v40  ;;  %v8264_v45 = vmul.f32 %v8238_v21, %v8224_v40  ;;  %v8273_v33 = vmul.f32 %v8202_v23, %v8224_v40 }
 0xcf7   : > { %v4218_v25 = vmul.f32 %v8163_v36, %v4103_v20  ;;  %v4253_v4 = vmul.f32 %v8168_v37, %v4103_v20  ;;  %v4307_v11 = vmul.f32 %v8180_v57, %v4103_v20  ;;  %v4400_v31 = vmul.f32 %v8192_v59, %v4103_v20 }
 0xcf8   : > { %v4436_v52 = vmul.f32 %v8229_v54, %v4103_v20  ;;  %v4489_v56 = vmul.f32 %v8197_v48, %v4103_v20  ;;  %v8260_v34 = vadd.f32 %v8207_v44, %v4105_v14 }
 0xcf9   : > { %v4234_v26 = vadd.f32 %v8175_v29, %v4218_v25  ;;  %v4269_v28 = vrot.slane %v4253_v4, 1  ;;  %v4341_v12 = vrot.slane %v4307_v11, 2  ;;  %v4416_v9 = vadd.f32 %v4400_v31, %v4378_v10 }
 0xcfa   : > { %v4452_v6 = vrot.slane %v4436_v52, 1  ;;  %v4521_v8 = vrot.slane %v4489_v56, 2  ;;  %v8269_v7 = vmul.f32 %v8168_v37, %v8260_v34  ;;  %v8283_v50 = vmul.f32 %v8163_v36, %v8260_v34 }
 0xcfb   : > { %v4286_v39 = vadd.f32 %v4269_v28, %v8183_v18  ;;  %v4287_v58 = vadd.f32 %v4269_v28, %v4234_v26  ;;  %v4343_v1 = vsel %vm4337_vm3, %v4341_v12, %v8187_v38  ;;  %v5854_v30 = vpop.f32.mrb[60].mxu1  ;;  %v4402_v20 = vmul.f32 %v8192_v59, %v8260_v34 }
 0xcfc   : > { %v4468_v62 = vadd.f32 %v4452_v6, %v4415_v49  ;;  %v4469_v22 = vadd.f32 %v4452_v6, %v4416_v9  ;;  %v4523_v15 = vsel %vm4337_vm3, %v4521_v8, %v8233_v24  ;;  %v4118_v10 = vpop.f32.mrb[61].mxu1  ;;  %v8287_v2 = vadd.f32 %v5854_v30, %v8207_v44 }
 0xcfd   : > { %v4380_v3 = vadd.f32 %v4341_v12, %v4286_v39  ;;  %v5855_v19 = vpop.f32.mrb[62].mxu1  ;;  %v4381_v49 = vadd.f32 %v4343_v1, %v4287_v58  ;;  %v8292_v14 = vadd.f32 %v8207_v44, %v4118_v10  ;;  %v4437_v9 = vmul.f32 %v8229_v54, %v8260_v34 }
 0xcfe   : > { %v4561_v5 = vadd.f32 %v4521_v8, %v4468_v62  ;;  %v4130_v25 = vadd.f32 %v5855_v19, %v8207_v44  ;;  %v4121_v4 = vpop.f32.mrb[63].mxu1  ;;  %v4562_v11 = vadd.f32 %v4523_v15, %v4469_v22  ;;  %v4230_v31 = vmul.f32 %v8163_v36, %v8287_v2 }
 0xcff   : > { %v4259_v52 = vmul.f32 %v8168_v37, %v8287_v2  ;;  %v4319_v56 = vmul.f32 %v8180_v57, %v8287_v2  ;;  %v4417_v26 = vadd.f32 %v8211_v55, %v4380_v3  ;;  %v4491_v61 = vmul.f32 %v8197_v48, %v8260_v34 }
 0xd00   : > { %v4443_v28 = vmul.f32 %v8229_v54, %v4130_v25  ;;  %v4503_v12 = vmul.f32 %v8197_v48, %v4130_v25  ;;  %v4246_v6 = vadd.f32 %v8175_v29, %v4230_v31  ;;  %v4414_v58 = vmul.f32 %v8192_v59, %v4130_v25 }
 0xd01   : > { %v4275_v8 = vrot.slane %v4259_v52, 1  ;;  %v4359_v39 = vrot.slane %v4319_v56, 2  ;;  %v8309_v62 = vmul.f32 %v8238_v21, %v4130_v25  ;;  %v8312_v22 = vmul.f32 %v8217_v0, %v4130_v25 }
 0xd02   : > { %v4459_v1 = vrot.slane %v4443_v28, 1  ;;  %v4542_v30 = vrot.slane %v4503_v12, 2  ;;  %v8318_v19 = vmul.f32 %v8202_v23, %v4130_v25  ;;  %v8323_v52 = vadd.f32 %v8207_v44, %v4121_v4 }
 0xd03   : > { %v4298_v15 = vadd.f32 %v4275_v8, %v8183_v18  ;;  %v4299_v10 = vadd.f32 %v4275_v8, %v4246_v6  ;;  %v4361_v3 = vsel %vm4337_vm3, %v4359_v39, %v8187_v38  ;;  %v4418_v56 = vadd.f32 %v4402_v20, %v4381_v49 }
 0xd04   : > { %v4544_v31 = vsel %vm4337_vm3, %v4542_v30, %v8233_v24  ;;  %v4453_v28 = vrot.slane %v4437_v9, 1  ;;  %v4583_v6 = vmul.f32 %v8238_v21, %v8260_v34  ;;  %v4598_v25 = vadd.f32 %v8246_v41, %v4561_v5 }
 0xd05   : > { %v4392_v12 = vadd.f32 %v4359_v39, %v4298_v15  ;;  %v4393_v42 = vadd.f32 %v4361_v3, %v4299_v10  ;;  %v4619_v60 = vmul.f32 %v8217_v0, %v8260_v34  ;;  %v4524_v20 = vrot.slane %v4491_v61, 2 }
 0xd06   : > { %v4470_v8 = vadd.f32 %v4453_v28, %v4417_v26  ;;  %v4471_v27 = vadd.f32 %v4453_v28, %v4418_v56  ;;  %v4599_v49 = vadd.f32 %v4583_v6, %v4562_v11  ;;  %v4672_v39 = vmul.f32 %v8202_v23, %v8260_v34 }
 0xd07   : > { %v4429_v44 = vadd.f32 %v8211_v55, %v4392_v12  ;;  %v4430_v4 = vadd.f32 %v4414_v58, %v4393_v42  ;;  %v4635_v9 = vrot.slane %v4619_v60, 1  ;;  %v4707_v15 = vrot.slane %v8273_v33, 2 }
 0xd08   : > { %v4222_v26 = vmul.f32 %v8163_v36, %v8224_v40  ;;  %v4526_v5 = vsel %vm4337_vm3, %v4524_v20, %v8233_v24  ;;  %v4563_v56 = vadd.f32 %v4524_v20, %v4470_v8  ;;  %v4704_v61 = vrot.slane %v4672_v39, 2 }
 0xd09   : > { %v4482_v10 = vadd.f32 %v4459_v1, %v4429_v44  ;;  %v4483_v3 = vadd.f32 %v4459_v1, %v4430_v4  ;;  %v4564_v28 = vadd.f32 %v4526_v5, %v4471_v27  ;;  %v4651_v12 = vadd.f32 %v4635_v9, %v4598_v25 }
 0xd0a   : > { %v4652_v42 = vadd.f32 %v4635_v9, %v4599_v49  ;;  %v4600_v58 = vadd.f32 %v8246_v41, %v4563_v56  ;;  %v4709_v33 = vsel %vm4337_vm3, %v4707_v15, %v8240_v13  ;;  %v4706_v1 = vsel %vm4337_vm3, %v4704_v61, %v8240_v13 }
 0xd0b   : > { %v8340_v11 = vadd.f32 %v4542_v30, %v4482_v10  ;;  %v8342_v60 = vadd.f32 %v4544_v31, %v4483_v3  ;;  %v4601_v6 = vadd.f32 %v8264_v45, %v4564_v28  ;;  %v8350_v44 = vadd.f32 %v4704_v61, %v4651_v12 }
 0xd0c   : > { %v4236_v27 = vadd.f32 %v8175_v29, %v8283_v50  ;;  %v8703_v30 = vrot.slane %v8250_v51, 1  ;;  %v8356_v31 = vadd.f32 %v4706_v1, %v4652_v42  ;;  %v4238_v25 = vadd.f32 %v8175_v29, %v4222_v26 }
 0xd0d   : > { %v4255_v4 = vmul.f32 %v8168_v37, %v8224_v40  ;;  %v4760_v49 = vmul.f32 %v8350_v44, %v8350_v44  ;;  %v8705_v9 = vrot.slane %v8269_v7, 1  ;;  %v4309_v51 = vmul.f32 %v8180_v57, %v8260_v34 }
 0xd0e   : > { %v4653_v8 = vadd.f32 %v8703_v30, %v4600_v58  ;;  %v8704_v45 = vmov %v8703_v30  ;;  %v4761_v26 = vmul.f32 %v8356_v31, %v8356_v31  ;;  %v4311_v12 = vmul.f32 %v8180_v57, %v8224_v40 }
 0xd0f   : > { %v4654_v20 = vadd.f32 %v8704_v45, %v4601_v6  ;;  %v4288_v50 = vadd.f32 %v8705_v9, %v8183_v18  ;;  %v8706_v39 = vmov %v8705_v9  ;;  %v4271_v5 = vrot.slane %v4255_v4, 1 }
 0xd10   : > { %v4289_v10 = vadd.f32 %v8706_v39, %v4236_v27  ;;  %v8370_v3 = vadd.f32 %v4707_v15, %v4653_v8  ;;  %v4776_v28 = vmul.f32 %v4760_v49, %v8350_v44  ;;  %v4404_v7 = vmul.f32 %v8192_v59, %v8224_v40 }
 0xd11   : > { %v8376_v56 = vadd.f32 %v4709_v33, %v4654_v20  ;;  %v4777_v42 = vmul.f32 %v4761_v26, %v8356_v31  ;;  %v4290_v61 = vadd.f32 %v4271_v5, %v8183_v18  ;;  %v4291_v58 = vadd.f32 %v4271_v5, %v4238_v25 }
 0xd12   : > { %v4762_v15 = vmul.f32 %v8370_v3, %v8370_v3  ;;  %v4792_v33 = vmul.f32 0.044715, %v4776_v28  ;;  %v4344_v6 = vrot.slane %v4309_v51, 2  ;;  %v4347_v1 = vrot.slane %v4311_v12, 2 }
 0xd13   : > { %v4763_v34 = vmul.f32 %v8376_v56, %v8376_v56  ;;  %v4793_v30 = vmul.f32 0.044715, %v4777_v42  ;;  %v4406_v8 = vmul.f32 %v8192_v59, %v8243_v35  ;;  %v4438_v4 = vmul.f32 %v8229_v54, %v8224_v40 }
 0xd14   : > { %v4778_v27 = vmul.f32 %v4762_v15, %v8370_v3  ;;  %v4808_v20 = vadd.f32 %v4792_v33, %v8350_v44  ;;  %v4346_v25 = vsel %vm4337_vm3, %v4344_v6, %v8187_v38  ;;  %v4349_v49 = vsel %vm4337_vm3, %v4347_v1, %v8187_v38 }
 0xd15   : > { %v4779_v45 = vmul.f32 %v4763_v34, %v8376_v56  ;;  %v4809_v39 = vadd.f32 %v4793_v30, %v8356_v31  ;;  %v4382_v26 = vadd.f32 %v4344_v6, %v4288_v50  ;;  %v4383_v5 = vadd.f32 %v4346_v25, %v4289_v10 }
 0xd16   : > { %v4794_v9 = vmul.f32 0.044715, %v4778_v27  ;;  %v4824_v28 = vmul.f32 0.7978846, %v4808_v20  ;;  %v4384_v12 = vadd.f32 %v4347_v1, %v4290_v61  ;;  %v4385_v15 = vadd.f32 %v4349_v49, %v4291_v58 }
 0xd17   : > { %v4795_v51 = vmul.f32 0.044715, %v4779_v45  ;;  %v4825_v34 = vmul.f32 0.7978846, %v4809_v39  ;;  %v4419_v33 = vadd.f32 %v8211_v55, %v4382_v26  ;;  %v4420_v46 = vadd.f32 %v4404_v7, %v4383_v5 }
 0xd18   : > { %v4810_v42 = vadd.f32 %v4794_v9, %v8370_v3  ;;  %6305 = vtanh.f32 %v4824_v28  ;;  %v4421_v53 = vadd.f32 %v8211_v55, %v4384_v12  ;;  %v4422_v27 = vadd.f32 %v4406_v8, %v4385_v15 }
 0xd19   : > { %v4811_v43 = vadd.f32 %v4795_v51, %v8376_v56  ;;  %6307 = vtanh.f32 %v4825_v34  ;;  %v4439_v50 = vmul.f32 %v8229_v54, %v8243_v35  ;;  %v4454_v10 = vrot.slane %v4438_v4, 1 }
 0xd1a   : > { %v4826_v17 = vmul.f32 0.7978846, %v4810_v42  ;;  %v4493_v58 = vmul.f32 %v8197_v48, %v8224_v40  ;;  %v4495_v6 = vmul.f32 %v8197_v48, %v8243_v35  ;;  %v4587_v7 = vmul.f32 %v8238_v21, %v8243_v35 }
 0xd1b   : > { %v4827_v61 = vmul.f32 0.7978846, %v4811_v43  ;;  %v4455_v1 = vrot.slane %v4439_v50, 1  ;;  %v4472_v30 = vadd.f32 %v4454_v10, %v4419_v33  ;;  %v4473_v8 = vadd.f32 %v4454_v10, %v4420_v46 }
 0xd1c   : > { %6309 = vtanh.f32 %v4826_v17  ;;  %v4527_v45 = vrot.slane %v4493_v58, 2  ;;  %v4530_v20 = vrot.slane %v4495_v6, 2  ;;  %v4589_v4 = vmul.f32 %v8238_v21, %v8292_v14 }
 0xd1d   : > { %6311 = vtanh.f32 %v4827_v61  ;;  %v4474_v43 = vadd.f32 %v4455_v1, %v4421_v53  ;;  %v4475_v25 = vadd.f32 %v4455_v1, %v4422_v27  ;;  %v4621_v40 = vmul.f32 %v8217_v0, %v8243_v35 }
 0xd1e   : > { %v4622_v49 = vmul.f32 %v8217_v0, %v8292_v14  ;;  %v4529_v17 = vsel %vm4337_vm3, %v4527_v45, %v8233_v24  ;;  %v4532_v46 = vsel %vm4337_vm3, %v4530_v20, %v8233_v24  ;;  %v4565_v9 = vadd.f32 %v4527_v45, %v4472_v30 }
 0xd1f   : > { %v4676_v39 = vmul.f32 %v8202_v23, %v8243_v35  ;;  %v4566_v26 = vadd.f32 %v4529_v17, %v4473_v8  ;;  %v4567_v5 = vadd.f32 %v4530_v20, %v4474_v43  ;;  %v4568_v53 = vadd.f32 %v4532_v46, %v4475_v25 }
 0xd20   : > { %v4637_v51 = vrot.slane %v4621_v40, 1  ;;  %v4602_v28 = vadd.f32 %v8246_v41, %v4565_v9  ;;  %v4638_v12 = vrot.slane %v4622_v49, 1  ;;  %v4678_v15 = vmul.f32 %v8202_v23, %v8292_v14 }
 0xd21   : > { %v4710_v42 = vrot.slane %v4676_v39, 2  ;;  %v4603_v34 = vadd.f32 %v4587_v7, %v4566_v26  ;;  %v4604_v33 = vadd.f32 %v8246_v41, %v4567_v5  ;;  %v4605_v27 = vadd.f32 %v4589_v4, %v4568_v53 }
 0xd22   : > { %v4224_v50 = vmul.f32 %v8163_v36, %v8243_v35  ;;  %v6306_v10 = vpop.eup %6305  ;;  %v4655_v61 = vadd.f32 %v4637_v51, %v4602_v28  ;;  %v4713_v6 = vrot.slane %v4678_v15, 2  ;;  %v4226_v1 = vmul.f32 %v8163_v36, %v8292_v14 }
 0xd23   : > { %v4712_v58 = vsel %vm4337_vm3, %v4710_v42, %v8240_v13  ;;  %v6308_v30 = vpop.eup %6307  ;;  %v4856_v8 = vadd.f32 1.0, %v6306_v10  ;;  %v4656_v45 = vadd.f32 %v4637_v51, %v4603_v34  ;;  %v4657_v20 = vadd.f32 %v4638_v12, %v4604_v33 }
 0xd24   : > { %v4658_v7 = vadd.f32 %v4638_v12, %v4605_v27  ;;  %v4857_v43 = vadd.f32 1.0, %v6308_v30  ;;  %v4715_v4 = vsel %vm4337_vm3, %v4713_v6, %v8240_v13  ;;  %v8437_v25 = vadd.f32 %v4710_v42, %v4655_v61 }
 0xd25   : > { %v4240_v40 = vadd.f32 %v8175_v29, %v4224_v50  ;;  %v4872_v17 = vmul.f32 0.5, %v4856_v8  ;;  %v8440_v46 = vadd.f32 %v4712_v58, %v4656_v45  ;;  %v8442_v9 = vadd.f32 %v4713_v6, %v4657_v20 }
 0xd26   : > { %v6310_v49 = vpop.eup %6309  ;;  %v8444_v39 = vadd.f32 %v4715_v4, %v4658_v7  ;;  %v4873_v53 = vmul.f32 0.5, %v4857_v43  ;;  %v4764_v51 = vmul.f32 %v8437_v25, %v8437_v25  ;;  %v4242_v28 = vadd.f32 %v8175_v29, %v4226_v1 }
 0xd27   : > { %v6312_v26 = vpop.eup %6311  ;;  %v4858_v5 = vadd.f32 1.0, %v6310_v49  ;;  %v4888_v15 = vmul.f32 %v4872_v17, %v8350_v44  ;;  %v4765_v42 = vmul.f32 %v8440_v46, %v8440_v46  ;;  %v4766_v34 = vmul.f32 %v8442_v9, %v8442_v9 }
 0xd28   : > { %v4859_v12 = vadd.f32 1.0, %v6312_v26  ;;  %v4889_v27 = vmul.f32 %v4873_v53, %v8356_v31  ;;  %v4767_v50 = vmul.f32 %v8444_v39, %v8444_v39  ;;  %v4780_v10 = vmul.f32 %v4764_v51, %v8437_v25 }
 0xd29   : > { %v4874_v33 = vmul.f32 0.5, %v4858_v5  ;;  %v4921_v58 = vrot.slane %v4888_v15, 7  ;;  %v4781_v6 = vmul.f32 %v4765_v42, %v8440_v46  ;;  %v4782_v44 = vmul.f32 %v4766_v34, %v8442_v9 }
 0xd2a   : > { %v4875_v61 = vmul.f32 0.5, %v4859_v12  ;;  %v4922_v30 = vrot.slane %v4889_v27, 7  ;;  %v4783_v8 = vmul.f32 %v4767_v50, %v8444_v39  ;;  %v4796_v45 = vmul.f32 0.044715, %v4780_v10 }
 0xd2b   : > { %v4890_v1 = vmul.f32 %v4874_v33, %v8370_v3  ;;  %v4797_v31 = vmul.f32 0.044715, %v4781_v6  ;;  %v4798_v7 = vmul.f32 0.044715, %v4782_v44  ;;  %v4256_v43 = vmul.f32 %v8168_v37, %v8243_v35 }
 0xd2c   : > { %v4891_v20 = vmul.f32 %v4875_v61, %v8376_v56  ;;  %v4923_v4 = vsel %vm4920_vm4, %v4921_v58, %v4922_v30  ;;  %v4799_v17 = vmul.f32 0.044715, %v4783_v8  ;;  %v4812_v26 = vadd.f32 %v4796_v45, %v8437_v25 }
 0xd2d   : > { %v4924_v49 = vrot.slane %v4890_v1, 7  ;;  %v4813_v3 = vadd.f32 %v4797_v31, %v8440_v46  ;;  %v4814_v53 = vadd.f32 %v4798_v7, %v8442_v9  ;;  %v4257_v51 = vmul.f32 %v8168_v37, %v8292_v14 }
 0xd2e   : > { %v4925_v5 = vrot.slane %v4891_v20, 7  ;;  %v4815_v56 = vadd.f32 %v4799_v17, %v8444_v39  ;;  %v4828_v12 = vmul.f32 0.7978846, %v4812_v26  ;;  %v4272_v15 = vrot.slane %v4256_v43, 1 }
 0xd2f   : > { %v4313_v42 = vmul.f32 %v8180_v57, %v8243_v35  ;;  %v4829_v33 = vmul.f32 0.7978846, %v4813_v3  ;;  %v4830_v27 = vmul.f32 0.7978846, %v4814_v53  ;;  %v4273_v50 = vrot.slane %v4257_v51, 1 }
 0xd30   : > { %v4926_v34 = vsel %vm4920_vm4, %v4924_v49, %v4925_v5  ;;  %v4831_v61 = vmul.f32 0.7978846, %v4815_v56  ;;  %6313 = vtanh.f32 %v4828_v12  ;;  %v4292_v58 = vadd.f32 %v4272_v15, %v8183_v18 }
 0xd31   : > { %v4953_v10 = vpack.c.bf16 %v4926_v34, %v4923_v4  ;;  %6315 = vtanh.f32 %v4829_v33  ;;  %v4293_v6 = vadd.f32 %v4272_v15, %v4240_v40  ;;  %v4294_v44 = vadd.f32 %v4273_v50, %v8183_v18 }
 0xd32   : > { %v4295_v1 = vadd.f32 %v4273_v50, %v4242_v28  ;;  %6317 = vtanh.f32 %v4830_v27  ;;  %v4315_v35 = vmul.f32 %v8180_v57, %v8292_v14  ;;  %v4350_v30 = vrot.slane %v4313_v42, 2 }
 0xd33   : > { %5872 = vmatprep.mubr.bf16.mxu1 %v4953_v10  ;;  %v4408_v8 = vmul.f32 %v8192_v59, %v8292_v14  ;;  %6319 = vtanh.f32 %v4831_v61  ;;  %v4410_v45 = vmul.f32 %v8192_v59, %v8323_v52  ;;  %v4440_v20 = vmul.f32 %v8229_v54, %v8292_v14 }
 0xd34   : > { %v4441_v40 = vmul.f32 %v8229_v54, %v8323_v52  ;;  %v4352_v28 = vsel %vm4337_vm3, %v4350_v30, %v8187_v38  ;;  %v4353_v31 = vrot.slane %v4315_v35, 2  ;;  %v4386_v7 = vadd.f32 %v4350_v30, %v4292_v58 }
 0xd35   : > { %v4497_v43 = vmul.f32 %v8197_v48, %v8292_v14  ;;  %v4387_v4 = vadd.f32 %v4352_v28, %v4293_v6  ;;  %v4456_v49 = vrot.slane %v4440_v20, 1  ;;  %v4499_v26 = vmul.f32 %v8197_v48, %v8323_v52 }
 0xd36   : > { %v4457_v17 = vrot.slane %v4441_v40, 1  ;;  %v4355_v5 = vsel %vm4337_vm3, %v4353_v31, %v8187_v38  ;;  %v4388_v3 = vadd.f32 %v4353_v31, %v4294_v44  ;;  %v4423_v53 = vadd.f32 %v8211_v55, %v4386_v7 }
 0xd37   : > { %v4533_v51 = vrot.slane %v4497_v43, 2  ;;  %v4389_v56 = vadd.f32 %v4355_v5, %v4295_v1  ;;  %v4424_v12 = vadd.f32 %v4408_v8, %v4387_v4  ;;  %v4536_v15 = vrot.slane %v4499_v26, 2 }
 0xd38   : > { %v4591_v42 = vmul.f32 %v8238_v21, %v8323_v52  ;;  %v4425_v14 = vadd.f32 %v8211_v55, %v4388_v3  ;;  %v4476_v34 = vadd.f32 %v4456_v49, %v4423_v53  ;;  %v4593_v27 = vmul.f32 %v8238_v21, %v8287_v2 }
 0xd39   : > { %v4535_v33 = vsel %vm4337_vm3, %v4533_v51, %v8233_v24  ;;  %v4426_v50 = vadd.f32 %v4410_v45, %v4389_v56  ;;  %v4477_v10 = vadd.f32 %v4456_v49, %v4424_v12  ;;  %v4538_v61 = vsel %vm4337_vm3, %v4536_v15, %v8233_v24 }
 0xd3a   : > { %v4623_v58 = vmul.f32 %v8217_v0, %v8323_v52  ;;  %v6314_v6 = vpop.eup %6313  ;;  %v4478_v44 = vadd.f32 %v4457_v17, %v4425_v14  ;;  %v4569_v1 = vadd.f32 %v4533_v51, %v4476_v34  ;;  %v4624_v35 = vmul.f32 %v8217_v0, %v8287_v2 }
 0xd3b   : > { %v4680_v30 = vmul.f32 %v8202_v23, %v8323_v52  ;;  %v6316_v8 = vpop.eup %6315  ;;  %v4860_v20 = vadd.f32 1.0, %v6314_v6  ;;  %v4479_v21 = vadd.f32 %v4457_v17, %v4426_v50  ;;  %v4570_v45 = vadd.f32 %v4535_v33, %v4477_v10 }
 0xd3c   : > { %v4639_v40 = vrot.slane %v4623_v58, 1  ;;  %v6318_v28 = vpop.eup %6317  ;;  %v4861_v31 = vadd.f32 1.0, %v6316_v8  ;;  %v4571_v7 = vadd.f32 %v4536_v15, %v4478_v44  ;;  %v4606_v43 = vadd.f32 %v8246_v41, %v4569_v1 }
 0xd3d   : > { %v4640_v4 = vrot.slane %v4624_v35, 1  ;;  %v6320_v49 = vpop.eup %6319  ;;  %v4862_v26 = vadd.f32 1.0, %v6318_v28  ;;  %v4876_v5 = vmul.f32 0.5, %v4860_v20  ;;  %v4572_v3 = vadd.f32 %v4538_v61, %v4479_v21 }
 0xd3e   : > { %v4607_v53 = vadd.f32 %v4591_v42, %v4570_v45  ;;  %v4863_v0 = vadd.f32 1.0, %v6320_v49  ;;  %v4877_v51 = vmul.f32 0.5, %v4861_v31  ;;  %v4608_v56 = vadd.f32 %v8246_v41, %v4571_v7 }
 0xd3f   : > { %v4659_v12 = vadd.f32 %v4639_v40, %v4606_v43  ;;  %v4878_v14 = vmul.f32 0.5, %v4862_v26  ;;  %v4892_v17 = vmul.f32 %v4876_v5, %v8437_v25  ;;  %v4609_v34 = vadd.f32 %v4593_v27, %v4572_v3 }
 0xd40   : > { %v4660_v33 = vadd.f32 %v4639_v40, %v4607_v53  ;;  %v4879_v50 = vmul.f32 0.5, %v4863_v0  ;;  %v4893_v15 = vmul.f32 %v4877_v51, %v8440_v46  ;;  %v4661_v10 = vadd.f32 %v4640_v4, %v4608_v56 }
 0xd41   : > { %v4682_v58 = vmul.f32 %v8202_v23, %v8287_v2  ;;  %v4894_v61 = vmul.f32 %v4878_v14, %v8442_v9  ;;  %v4927_v42 = vrot.slane %v4892_v17, 7  ;;  %v4662_v6 = vadd.f32 %v4640_v4, %v4609_v34 }
 0xd42   : > { %v4716_v44 = vrot.slane %v4680_v30, 2  ;;  %v4895_v1 = vmul.f32 %v4879_v50, %v8444_v39  ;;  %v4928_v35 = vrot.slane %v4893_v15, 7  ;;  %v4228_v25 = vmul.f32 %v8163_v36, %v8323_v52 }
 0xd43   : > { %v4719_v8 = vrot.slane %v4682_v58, 2  ;;  %v4930_v27 = vrot.slane %v4894_v61, 7  ;;  %v4258_v23 = vmul.f32 %v8168_v37, %v8323_v52  ;;  %v4317_v43 = vmul.f32 %v8180_v57, %v8323_v52 }
 0xd44   : > { %v4718_v46 = vsel %vm4337_vm3, %v4716_v44, %v8240_v13  ;;  %v8523_v20 = vadd.f32 %v4716_v44, %v4659_v12  ;;  %v4929_v9 = vsel %vm4920_vm4, %v4927_v42, %v4928_v35  ;;  %v4931_v21 = vrot.slane %v4895_v1, 7 }
 0xd45   : > { %v4721_v39 = vsel %vm4337_vm3, %v4719_v8, %v8240_v13  ;;  %v8530_v30 = vadd.f32 %v4718_v46, %v4660_v33  ;;  %v8532_v45 = vadd.f32 %v4719_v8, %v4661_v10  ;;  %v4244_v28 = vadd.f32 %v8175_v29, %v4228_v25 }
 0xd46   : > { %v8534_v36 = vadd.f32 %v4721_v39, %v4662_v6  ;;  %v4768_v40 = vmul.f32 %v8523_v20, %v8523_v20  ;;  %v4932_v31 = vsel %vm4920_vm4, %v4930_v27, %v4931_v21  ;;  %v4274_v7 = vrot.slane %v4258_v23, 1 }
 0xd47   : > { %v4769_v37 = vmul.f32 %v8530_v30, %v8530_v30  ;;  %v4954_v4 = vpack.c.bf16 %v4932_v31, %v4929_v9  ;;  %v4770_v49 = vmul.f32 %v8532_v45, %v8532_v45  ;;  %v4356_v0 = vrot.slane %v4317_v43, 2 }
 0xd48   : > { %v4771_v26 = vmul.f32 %v8534_v36, %v8534_v36  ;;  %v4784_v5 = vmul.f32 %v4768_v40, %v8523_v20  ;;  %v4296_v3 = vadd.f32 %v4274_v7, %v8183_v18  ;;  %v4297_v53 = vadd.f32 %v4274_v7, %v4244_v28 }
 0xd49   : > { %v4785_v29 = vmul.f32 %v4769_v37, %v8530_v30  ;;  %5873 = vmatmul.mubr.bf16.vlgmr.msra.gmra.mrb[64].mxu1 %v4954_v4  ;;  %v4786_v51 = vmul.f32 %v4770_v49, %v8532_v45  ;;  %v4412_v56 = vmul.f32 %v8192_v59, %v8287_v2  ;;  %v4358_v14 = vsel %vm4337_vm3, %v4356_v0, %v8187_v38 }
 0xd4a   : > { %v4787_v57 = vmul.f32 %v4771_v26, %v8534_v36  ;;  %v4800_v52 = vmul.f32 0.044715, %v4784_v5  ;;  %v4390_v17 = vadd.f32 %v4356_v0, %v4296_v3  ;;  %v4442_v34 = vmul.f32 %v8229_v54, %v8287_v2 }
 0xd4b   : > { %v4801_v12 = vmul.f32 0.044715, %v4785_v29  ;;  %v4802_v18 = vmul.f32 0.044715, %v4786_v51  ;;  %v4391_v15 = vadd.f32 %v4358_v14, %v4297_v53  ;;  %v4501_v59 = vmul.f32 %v8197_v48, %v8287_v2 }
 0xd4c   : > { %v4803_v33 = vmul.f32 0.044715, %v4787_v57  ;;  %v4816_v50 = vadd.f32 %v4800_v52, %v8523_v20  ;;  %v4427_v58 = vadd.f32 %v8211_v55, %v4390_v17  ;;  %v4458_v61 = vrot.slane %v4442_v34, 1 }
 0xd4d   : > { %v4817_v10 = vadd.f32 %v4801_v12, %v8530_v30  ;;  %v4818_v42 = vadd.f32 %v4802_v18, %v8532_v45  ;;  %v4428_v44 = vadd.f32 %v4412_v56, %v4391_v15  ;;  %v4539_v35 = vrot.slane %v4501_v59, 2 }
 0xd4e   : > { %v4819_v38 = vadd.f32 %v4803_v33, %v8534_v36  ;;  %v4832_v6 = vmul.f32 0.7978846, %v4816_v50  ;;  %v4480_v1 = vadd.f32 %v4458_v61, %v4427_v58  ;;  %v4612_v8 = vadd.f32 %v8246_v41, %v8340_v11 }
 0xd4f   : > { %v4833_v54 = vmul.f32 0.7978846, %v4817_v10  ;;  %v4834_v25 = vmul.f32 0.7978846, %v4818_v42  ;;  %v4481_v55 = vadd.f32 %v4458_v61, %v4428_v44  ;;  %v4541_v48 = vsel %vm4337_vm3, %v4539_v35, %v8233_v24 }
 0xd50   : > { %v4835_v27 = vmul.f32 0.7978846, %v4819_v38  ;;  %6321 = vtanh.f32 %v4832_v6  ;;  %v4573_v2 = vadd.f32 %v4539_v35, %v4480_v1  ;;  %v4613_v46 = vadd.f32 %v8246_v41, %v8342_v60 }
 0xd51   : > { %6323 = vtanh.f32 %v4833_v54  ;;  %v4641_v23 = vrot.slane %v8312_v22, 1  ;;  %v4574_v9 = vadd.f32 %v4541_v48, %v4481_v55  ;;  %v8707_v21 = vrot.slane %v8221_v63, 1 }
 0xd52   : > { %6325 = vtanh.f32 %v4834_v25  ;;  %v4722_v11 = vrot.slane %v8318_v19, 2  ;;  %v4610_v40 = vadd.f32 %v8246_v41, %v4573_v2 }
 0xd53   : > { %v4665_v39 = vadd.f32 %v8707_v21, %v4612_v8  ;;  %6327 = vtanh.f32 %v4835_v27  ;;  %v8708_v28 = vmov %v8707_v21  ;;  %v4611_v24 = vadd.f32 %v8309_v62, %v4574_v9 }
 0xd54   : > { %v4666_v31 = vadd.f32 %v8708_v28, %v4613_v46  ;;  %v4663_v60 = vadd.f32 %v4641_v23, %v4610_v40  ;;  %v4724_v19 = vsel %vm4337_vm3, %v4722_v11, %v8240_v13 }
 0xd55   : > { %v8581_v37 = vadd.f32 %v8240_v13, %v4665_v39  ;;  %v4664_v7 = vadd.f32 %v4641_v23, %v4611_v24 }
 0xd56   : > { %v8584_v22 = vadd.f32 %v8240_v13, %v4666_v31  ;;  %v8590_v41 = vadd.f32 %v4722_v11, %v4663_v60 }
 0xd57   : > { %v4774_v43 = vmul.f32 %v8581_v37, %v8581_v37  ;;  %v8594_v62 = vadd.f32 %v4724_v19, %v4664_v7 }
 0xd58   : > { %v4775_v63 = vmul.f32 %v8584_v22, %v8584_v22  ;;  %v4772_v49 = vmul.f32 %v8590_v41, %v8590_v41 }
 0xd59   : > { %v4790_v4 = vmul.f32 %v4774_v43, %v8581_v37  ;;  %v4773_v29 = vmul.f32 %v8594_v62, %v8594_v62 }
 0xd5a   : > { %v4791_v26 = vmul.f32 %v4775_v63, %v8584_v22  ;;  %v6322_v5 = vpop.eup %6321  ;;  %v4788_v0 = vmul.f32 %v4772_v49, %v8590_v41 }
 0xd5b   : > { %v4806_v3 = vmul.f32 0.044715, %v4790_v4  ;;  %v6324_v13 = vpop.eup %6323  ;;  %v4864_v53 = vadd.f32 1.0, %v6322_v5  ;;  %v4789_v56 = vmul.f32 %v4773_v29, %v8594_v62 }
 0xd5c   : > { %v4807_v51 = vmul.f32 0.044715, %v4791_v26  ;;  %v6326_v57 = vpop.eup %6325  ;;  %v4865_v52 = vadd.f32 1.0, %v6324_v13  ;;  %v4804_v18 = vmul.f32 0.044715, %v4788_v0 }
 0xd5d   : > { %v4822_v12 = vadd.f32 %v4806_v3, %v8581_v37  ;;  %v6328_v14 = vpop.eup %6327  ;;  %v4866_v17 = vadd.f32 1.0, %v6326_v57  ;;  %v4880_v34 = vmul.f32 0.5, %v4864_v53  ;;  %v4805_v10 = vmul.f32 0.044715, %v4789_v56 }
 0xd5e   : > { %v4823_v33 = vadd.f32 %v4807_v51, %v8584_v22  ;;  %v4867_v50 = vadd.f32 1.0, %v6328_v14  ;;  %v4881_v15 = vmul.f32 0.5, %v4865_v52  ;;  %v4820_v42 = vadd.f32 %v4804_v18, %v8590_v41 }
 0xd5f   : > { %v4838_v58 = vmul.f32 0.7978846, %v4822_v12  ;;  %v4882_v61 = vmul.f32 0.5, %v4866_v17  ;;  %v4896_v59 = vmul.f32 %v4880_v34, %v8523_v20  ;;  %v4821_v54 = vadd.f32 %v4805_v10, %v8594_v62  ;;  %v8709_v17 = vld [vmem:[#allocation3_spill] sm:$0xff]  ;;  %v8710_v10 = vld [vmem:[#allocation5_spill] sm:$0xff] }
 0xd60   : > { %v4839_v38 = vmul.f32 0.7978846, %v4823_v33  ;;  %v4883_v6 = vmul.f32 0.5, %v4867_v50  ;;  %v4897_v44 = vmul.f32 %v4881_v15, %v8530_v30  ;;  %v4836_v8 = vmul.f32 0.7978846, %v4820_v42 }
 0xd61   : > { %6329 = vtanh.f32 %v4838_v58  ;;  %v4898_v1 = vmul.f32 %v4882_v61, %v8532_v45  ;;  %v4933_v35 = vrot.slane %v4896_v59, 7  ;;  %v4837_v55 = vmul.f32 0.7978846, %v4821_v54  ;;  %v8711_v59 = vld [vmem:[#allocation4_spill] sm:$0xff] }
 0xd62   : > { %6331 = vtanh.f32 %v4839_v38  ;;  %v4899_v25 = vmul.f32 %v4883_v6, %v8534_v36  ;;  %v4934_v27 = vrot.slane %v4897_v44, 7  ;;  %v8712_v38 = vld [vmem:[#allocation7_spill] sm:$0xff]  ;;  %v8713_v44 = vld [vmem:[#allocation6_spill] sm:$0xff] }
 0xd63   : > { %v4936_v48 = vrot.slane %v4898_v1, 7  ;;  %6333 = vtanh.f32 %v4836_v8 }
 0xd64   : > { %v4935_v20 = vsel %vm4920_vm4, %v4933_v35, %v4934_v27  ;;  %v4937_v2 = vrot.slane %v4899_v25, 7  ;;  %6335 = vtanh.f32 %v4837_v55 }
 0xd66   : > { %v4938_v30 = vsel %vm4920_vm4, %v4936_v48, %v4937_v2 }
 0xd67   : > { %v4955_v46 = vpack.c.bf16 %v4938_v30, %v4935_v20 }
 0xd69   : > { %5876 = vmatprep.mubr.bf16.mxu1 %v4955_v46 }
 0xd6b   : > { %v6330_v23 = vpop.eup %6329 }
 0xd6c   : > { %v6332_v9 = vpop.eup %6331  ;;  %v4870_v45 = vadd.f32 1.0, %v6330_v23 }
 0xd6d   : > { %v4871_v21 = vadd.f32 1.0, %v6332_v9  ;;  %v6334_v39 = vpop.eup %6333 }
 0xd6e   : > { %v4886_v11 = vmul.f32 0.5, %v4870_v45  ;;  %v6336_v40 = vpop.eup %6335  ;;  %v4868_v36 = vadd.f32 1.0, %v6334_v39 }
 0xd6f   : > { %v4887_v28 = vmul.f32 0.5, %v4871_v21  ;;  %v4869_v31 = vadd.f32 1.0, %v6336_v40 }
 0xd70   : > { %v4902_v24 = vmul.f32 %v4886_v11, %v8581_v37  ;;  %v4884_v60 = vmul.f32 0.5, %v4868_v36  ;;  %v5365_v37 = vld [vmem:[%s8666_s19] ss:$0 sm:$0xff] }
 0xd71   : > { %v4903_v7 = vmul.f32 %v4887_v28, %v8584_v22  ;;  %v4885_v43 = vmul.f32 0.5, %v4869_v31 }
 0xd72   : > { %v4942_v19 = vrot.slane %v4902_v24, 7  ;;  %v4900_v63 = vmul.f32 %v4884_v60, %v8590_v41 }
 0xd73   : > { %v4943_v4 = vrot.slane %v4903_v7, 7  ;;  %v4901_v49 = vmul.f32 %v4885_v43, %v8594_v62 }
 0xd74   : > { %v4939_v26 = vrot.slane %v4900_v63, 7 }
 0xd75   : > { %v4944_v5 = vsel %vm4920_vm4, %v4942_v19, %v4943_v4  ;;  %v4940_v29 = vrot.slane %v4901_v49, 7 }
 0xd77   : > { %v4941_v3 = vsel %vm4920_vm4, %v4939_v26, %v4940_v29 }
 0xd78   : > { %v4956_v13 = vpack.c.bf16 %v4944_v5, %v4941_v3 }
 0xd7a   : > { %5877 = vmatmul.mubr.bf16.gmra.mrb[68].mxu1 %v4956_v13 }
 0xe1c   : > { %v5874_v22 = vpop.f32.mrb[64].mxu1 }
 0xe1d   : > { %v5071_v53 = vadd.f32 %v5874_v22, %v5365_v37  ;;  %v5062_v0 = vpop.f32.mrb[65].mxu1 }
 0xe1e   : > { %v5063_v41 = vadd.f32 %v5365_v37, %v5062_v0  ;;  %v5875_v62 = vpop.f32.mrb[66].mxu1 }
 0xe1f   : > { %v5095_v51 = vadd.f32 %v5071_v53, %v8022_v16  ;;  %v5074_v57 = vadd.f32 %v5875_v62, %v5365_v37  ;;  %v5065_v52 = vpop.f32.mrb[67].mxu1 }
 0xe20   : > { %v5093_v56 = vadd.f32 %v5063_v41, %v8019_v32  ;;  %v5066_v12 = vadd.f32 %v5365_v37, %v5065_v52 }
 0xe21   : > { %5103 = vst.msk [vmem:[%s646_s25 + $0x10] sm:$0xff] %vm660_vm0, %v5095_v51  ;;  %v5096_v14 = vadd.f32 %v5074_v57, %v8030_v47 }
 0xe22   : > { %5101 = vst.msk [vmem:[%s646_s25] sm:$0xff] %vm660_vm0, %v5093_v56  ;;  %v5094_v34 = vadd.f32 %v5066_v12, %v8709_v17 }
 0xe23   : > { %5104 = vst.msk [vmem:[%s646_s25 + $0x18] sm:$0xff] %vm660_vm0, %v5096_v14 }
 0xe24   : > { %5102 = vst.msk [vmem:[%s646_s25 + $0x8] sm:$0xff] %vm660_vm0, %v5094_v34 }
 0xe4d   : > { %v5878_v18 = vpop.f32.mrb[68].mxu1 }
 0xe4e   : > { %v5087_v33 = vadd.f32 %v5878_v18, %v5365_v37  ;;  %v5078_v16 = vpop.f32.mrb[69].mxu1 }
 0xe4f   : > { %v5079_v50 = vadd.f32 %v5365_v37, %v5078_v16  ;;  %v5879_v15 = vpop.f32.mrb[70].mxu1 }
 0xe50   : > { %v5099_v32 = vadd.f32 %v5087_v33, %v8710_v10  ;;  %v5090_v58 = vadd.f32 %v5879_v15, %v5365_v37  ;;  %v5081_v61 = vpop.f32.mrb[71].mxu1 }
 0xe51   : > { %v5097_v42 = vadd.f32 %v5079_v50, %v8711_v59  ;;  %v5082_v47 = vadd.f32 %v5365_v37, %v5081_v61 }
 0xe52   : > { %5107 = vst.msk [vmem:[%s646_s25 + $0x30] sm:$0xff] %vm660_vm0, %v5099_v32  ;;  %v5100_v6 = vadd.f32 %v5090_v58, %v8712_v38 }
 0xe53   : > { %5105 = vst.msk [vmem:[%s646_s25 + $0x20] sm:$0xff] %vm660_vm0, %v5097_v42  ;;  %v5098_v54 = vadd.f32 %v5082_v47, %v8713_v44 }
 0xe54   : > { %5108 = vst.msk [vmem:[%s646_s25 + $0x38] sm:$0xff] %vm660_vm0, %v5100_v6 }
 0xe55   : > { %5106 = vst.msk [vmem:[%s646_s25 + $0x28] sm:$0xff] %vm660_vm0, %v5098_v54 }
 0xe56 PF: > { %s30_s1 = sadd.s32 1, %s6351_s1  }
 0xe57   : > { %p27_p4 = scmp.ge.s32.totalorder %s30_s1, 4  }
 0xe59   :  { %29 = sbr.rel (!%p27_p4) target bundleno = 6 (0x6), region = 134 }

</bundles_post_ra>
